<compile_context>
chip_gen: v6e
topology: v6e:2x2x1
jax: 0.10.0
libtpu: 0.0.40
codegen_flags: <defaults>
</compile_context>

<pallas_src>
import numpy as np

import jax
import jax.numpy as jnp
from jax import lax
from jax.experimental import pallas as pl
from jax.experimental.pallas import tpu as pltpu


def _elmo_bi_kernel(x_ref,        # (T, B, D)    f32  time-major input (D = 2*embed)
                    x2_ref,       # (T*B, 2D)    bf16 row t*B+b = [x[t,b] | x[T-1-t,b]]
                    wih2_ref,     # (2D, 8H)     bf16 input->gates, both dirs, per-gate interleaved cols
                    whh_ref,      # (2H, 8H)     bf16 block-diagonal recurrent weights
                    benc_ref,     # (1, 8H)      f32  combined encoder bias (b_ih + b_hh per dir)
                    wihd_ref,     # (D, 3D)      bf16 decoder weights, [i | g | o] columns only
                    bd_ref,       # (1, 3D)      f32
                    wout_ref,     # (D, OUT)     f32
                    bout_ref,     # (1, OUT)     f32
                    out_ref,      # (B, OUT)     f32  output
                    loss_ref,     # (1, 1)       f32  output
                    gx_ref,       # (T, B, 8H)   f32  scratch: hoisted input gates
                    hseq_ref):    # (T, B, 2H)   f32  scratch: [fwd h(t) | bwd h(T-1-t)]
    T, B, D = x_ref.shape
    H2, G = whh_ref.shape            # 2H (== D), 8H
    H = H2 // 2
    f32, bf16 = jnp.float32, jnp.bfloat16

    # ---- (1) hoisted input->hidden gates for BOTH directions: one big MXU matmul ----
    # x2 row layout pairs x[t] (fwd) with x[T-1-t] (bwd), and wih2's column layout is
    # [i_f i_b | f_f f_b | g_f g_b | o_f o_b], so gx[t] is exactly the per-step input term.
    gx = jnp.dot(x2_ref[...], wih2_ref[...], preferred_element_type=f32) + benc_ref[...]
    gx_ref[...] = gx.reshape(T, B, G)

    whh = whh_ref[...]               # loop-invariant recurrent weight (bf16), hoisted

    # ---- (2) fused forward + backward encoder recurrence ----
    zero = jnp.zeros((B, H2), f32)

    def enc_body(t, carry):
        h, c = carry                 # lanes [:H] = fwd state at time t, [H:] = bwd state at time T-1-t
        gates = gx_ref[t] + jnp.dot(h.astype(bf16), whh, preferred_element_type=f32)
        i = jax.nn.sigmoid(gates[:, 0 * H2:1 * H2])      # 128-lane aligned gate slabs
        f = jax.nn.sigmoid(gates[:, 1 * H2:2 * H2])
        g = jnp.tanh(gates[:, 2 * H2:3 * H2])
        o = jax.nn.sigmoid(gates[:, 3 * H2:4 * H2])
        c_new = f * c + i * g
        h_new = o * jnp.tanh(c_new)
        hseq_ref[t] = h_new
        return (h_new, c_new)

    lax.fori_loop(0, T, enc_body, (zero, zero), unroll=True)

    # ---- (3) decoder (zero initial state each call -> forget gate never contributes) ----
    # enc[:, -1, :] = [fwd hidden at T-1 | bwd hidden at T-1] = [hseq[T-1,:, :H] | hseq[0,:, H:]]
    h_last = hseq_ref[T - 1]
    h_first = hseq_ref[0]
    seed = jnp.concatenate([h_last[:, :H], h_first[:, H:]], axis=-1)       # (B, D)

    wihd = wihd_ref[...]
    bd = bd_ref[...]

    def dec_body(t, carry):
        y, sse = carry
        gates = jnp.dot(y.astype(bf16), wihd, preferred_element_type=f32) + bd
        i = jax.nn.sigmoid(gates[:, 0 * D:1 * D])
        g = jnp.tanh(gates[:, 1 * D:2 * D])
        o = jax.nn.sigmoid(gates[:, 2 * D:3 * D])
        h = o * jnp.tanh(i * g)                          # c = f*c0 + i*g = i*g  (c0 == 0)
        d = x_ref[t] - h                                 # MSE term (decoder detached upstream)
        return (h, sse + d * d)

    _, sse = lax.fori_loop(0, T, dec_body, (seed, jnp.zeros((B, D), f32)), unroll=True)

    row = jnp.sum(sse, axis=1, keepdims=True)                              # (B, 1)
    loss_ref[...] = jnp.sum(row, axis=0, keepdims=True) * (1.0 / (T * B * D))

    # ---- (4) "attention" pooling + output projection ----
    # softmax(dim=2) over a length-1 axis is exactly 1.0, so bmm(g^T, att) == sum_t g[t].
    # sum_t enc[t] == sum_t hseq[t]: time-reversal of the bwd half doesn't change a sum.
    pooled = jnp.sum(x_ref[...], axis=0) + jnp.sum(hseq_ref[...], axis=0)  # (B, D) f32
    out_ref[...] = (jnp.dot(pooled, wout_ref[...], preferred_element_type=f32)
                    + bout_ref[...])


def _prep_operands(inputs, params):
    """Build the fused / trimmed / interleaved kernel operands from PyTorch-style params."""
    B, T = inputs.shape[0], inputs.shape[1]
    D = int(np.prod(inputs.shape[2:]))          # 2 * embed_size after the .view()
    H = params["w_hh_f"].shape[0]               # embed_size

    x = inputs.reshape(B, T, D).astype(jnp.float32)
    x_tm = jnp.transpose(x, (1, 0, 2))                              # (T, B, D) time-major
    # Pair x[t] (fwd) with x[T-1-t] (bwd) so one matmul yields both directions' input gates.
    x2 = jnp.concatenate([x_tm, x_tm[::-1]], axis=-1)               # (T, B, 2D)
    x2 = x2.reshape(T * B, 2 * D).astype(jnp.bfloat16)

    def interleave(wf, wb):
        # [i|f|g|o] per direction -> [i_f i_b | f_f f_b | g_f g_b | o_f o_b]
        parts = []
        for k in range(4):
            parts.append(wf[..., k * H:(k + 1) * H])
            parts.append(wb[..., k * H:(k + 1) * H])
        return jnp.concatenate(parts, axis=-1)

    z_ih = jnp.zeros_like(params["w_ih_f"])                         # (D, 4H)
    z_hh = jnp.zeros_like(params["w_hh_f"])                         # (H, 4H)
    wih2 = jnp.concatenate([interleave(params["w_ih_f"], z_ih),
                            interleave(z_ih, params["w_ih_b"])], axis=0).astype(jnp.bfloat16)
    whh2 = jnp.concatenate([interleave(params["w_hh_f"], z_hh),
                            interleave(z_hh, params["w_hh_b"])], axis=0).astype(jnp.bfloat16)
    benc = interleave(params["b_f"], params["b_b"]).astype(jnp.float32)

    # Decoder: with a zero initial state the forget gate is dead -> keep only [i | g | o].
    wd, bd = params["w_ih_d"], params["b_d"]
    wihd3 = jnp.concatenate([wd[:, 0:D], wd[:, 2 * D:3 * D], wd[:, 3 * D:4 * D]],
                            axis=1).astype(jnp.bfloat16)
    bd3 = jnp.concatenate([bd[:, 0:D], bd[:, 2 * D:3 * D], bd[:, 3 * D:4 * D]],
                          axis=1).astype(jnp.float32)
    return x_tm, x2, wih2, whh2, benc, wihd3, bd3


def elmo_bi_forward(inputs, params):
    """Pallas implementation of ELMO_Bi.forward -> (outputs[B,1,1,out_size], ae_for_loss)."""
    B, T = inputs.shape[0], inputs.shape[1]
    D = int(np.prod(inputs.shape[2:]))
    H = params["w_hh_f"].shape[0]
    out_size = params["w_out"].shape[1]

    x_tm, x2, wih2, whh2, benc, wihd3, bd3 = _prep_operands(inputs, params)
    operands = (x_tm, x2, wih2, whh2, benc, wihd3, bd3,
                params["w_out"].astype(jnp.float32), params["b_out"].astype(jnp.float32))

    # Advisory scheduling hint.
    flops = int(2 * (T * B) * (2 * D) * (8 * H)      # hoisted input gates (both directions)
                + 2 * T * B * (2 * H) * (8 * H)      # fused encoder recurrence
                + 2 * T * B * D * (3 * D)            # trimmed decoder
                + 2 * B * D * out_size)              # output projection
    transcendentals = int(T * B * 5 * 2 * H + T * B * 4 * D)
    bytes_accessed = int(sum(int(o.size) * o.dtype.itemsize for o in operands)
                         + (B * out_size + 1) * 4)

    out2d, loss = pl.pallas_call(
        _elmo_bi_kernel,
        out_shape=(jax.ShapeDtypeStruct((B, out_size), jnp.float32),
                   jax.ShapeDtypeStruct((1, 1), jnp.float32)),
        # Single grid-less invocation: total footprint is far below VMEM on all generations,
        # and the recurrence is fundamentally sequential (no useful grid axis here).
        in_specs=[pl.BlockSpec(memory_space=pltpu.MemorySpace.VMEM)] * len(operands),
        out_specs=(pl.BlockSpec(memory_space=pltpu.MemorySpace.VMEM),
                   pl.BlockSpec(memory_space=pltpu.MemorySpace.VMEM)),
        scratch_shapes=[pltpu.VMEM((T, B, 8 * H), jnp.float32),     # hoisted input gates
                        pltpu.VMEM((T, B, 2 * H), jnp.float32)],    # fused hidden sequence
        cost_estimate=pl.CostEstimate(flops=flops, transcendentals=transcendentals,
                                      bytes_accessed=bytes_accessed),
    )(*operands)

    outputs = out2d.reshape(B, 1, 1, out_size)
    return outputs, loss[0, 0]


def init_params(key, embed_size, out_size):
    D = 2 * embed_size
    H = embed_size
    ks = jax.random.split(key, 12)

    def u(k, shape, scale):
        return jax.random.uniform(k, shape, jnp.float32, -scale, scale)

    s_enc = 1.0 / float(np.sqrt(H))
    s_dec = 1.0 / float(np.sqrt(D))
    # Biases are the combined b_ih + b_hh of the corresponding PyTorch LSTM.
    return dict(
        w_ih_f=u(ks[0], (D, 4 * H), s_enc), w_hh_f=u(ks[1], (H, 4 * H), s_enc), b_f=u(ks[2], (1, 4 * H), s_enc),
        w_ih_b=u(ks[3], (D, 4 * H), s_enc), w_hh_b=u(ks[4], (H, 4 * H), s_enc), b_b=u(ks[5], (1, 4 * H), s_enc),
        w_ih_d=u(ks[6], (D, 4 * D), s_dec), b_d=u(ks[7], (1, 4 * D), s_dec),
        # Attention params exist in the module but are value-dead in the forward
        # (softmax over a length-1 axis == 1); kept here only for the reference model.
        w_att=u(ks[8], (D, D), s_dec), b_att=u(ks[9], (1, D), s_dec),
        u_w=u(ks[10], (1, D), s_dec), u_b=jnp.zeros((1, 1), jnp.float32),
        w_out=u(ks[11], (D, out_size), s_dec), b_out=jnp.zeros((1, out_size), jnp.float32),
    )


def _reference_forward(inputs, params):
    """Pure-JAX reference mirroring the PyTorch ELMO_Bi.forward (verification only)."""
    B, T = inputs.shape[0], inputs.shape[1]
    D = int(np.prod(inputs.shape[2:]))
    H = params["w_hh_f"].shape[0]
    hp = jax.lax.Precision.HIGHEST
    x = inputs.reshape(B, T, D).astype(jnp.float32)

    def cell(x_t, h, c, wih, whh, b, nh):
        g = jnp.dot(x_t, wih, precision=hp) + jnp.dot(h, whh, precision=hp) + b
        i = jax.nn.sigmoid(g[:, :nh]); f = jax.nn.sigmoid(g[:, nh:2 * nh])
        gg = jnp.tanh(g[:, 2 * nh:3 * nh]); o = jax.nn.sigmoid(g[:, 3 * nh:])
        c = f * c + i * gg
        return o * jnp.tanh(c), c

    h = c = jnp.zeros((B, H), jnp.float32)
    fwd = []
    for t in range(T):
        h, c = cell(x[:, t], h, c, params["w_ih_f"], params["w_hh_f"], params["b_f"], H)
        fwd.append(h)
    h = c = jnp.zeros((B, H), jnp.float32)
    bwd = [None] * T
    for t in range(T - 1, -1, -1):
        h, c = cell(x[:, t], h, c, params["w_ih_b"], params["w_hh_b"], params["b_b"], H)
        bwd[t] = h
    enc = jnp.stack([jnp.concatenate([fwd[t], bwd[t]], axis=-1) for t in range(T)], axis=1)

    y = enc[:, -1, :]
    dec = []
    for _ in range(T):                                   # each decoder call starts from zero state
        g = jnp.dot(y, params["w_ih_d"], precision=hp) + params["b_d"]
        i = jax.nn.sigmoid(g[:, :D]); gg = jnp.tanh(g[:, 2 * D:3 * D]); o = jax.nn.sigmoid(g[:, 3 * D:])
        y = o * jnp.tanh(i * gg)
        dec.append(y)
    dec = jnp.stack(dec, axis=1)
    ae_loss = jnp.mean((x - dec) ** 2)

    enc_sum = x + enc
    att = jnp.tanh(jnp.einsum("btd,de->bte", enc_sum, params["w_att"], precision=hp) + params["b_att"])
    s = jnp.sum(att * params["u_w"], axis=-1, keepdims=True) + params["u_b"][0, 0]   # (B, T, 1)
    att_w = jax.nn.softmax(s, axis=2)                                                # == 1.0 exactly
    pooled = jnp.sum(enc_sum * att_w, axis=1)                                        # (B, D)
    out = jnp.dot(pooled, params["w_out"], precision=hp) + params["b_out"]
    return out.reshape(B, 1, 1, -1), ae_loss


if __name__ == "__main__":
    # Small shapes consistent with the module: batch=2, seq=8, a pair of embed_size=64
    # vectors per step (-> model dim 2E = 128, lane-dense), out_size=128.
    B, T, embed_size, out_size = 2, 8, 64, 128

    key = jax.random.PRNGKey(0)
    k_in, k_p = jax.random.split(key)
    inputs = jax.random.normal(k_in, (B, T, 2, embed_size), dtype=jnp.float32)
    params = init_params(k_p, embed_size, out_size)

    fwd = jax.jit(lambda xx: elmo_bi_forward(xx, params))
    outputs, ae_loss = fwd(inputs)
    jax.block_until_ready((outputs, ae_loss))

    ref_out, ref_loss = _reference_forward(inputs, params)
    assert outputs.shape == (B, 1, 1, out_size)
    assert bool(jnp.isfinite(ae_loss))
    # bf16 MXU operands on the recurrent path vs the f32 HIGHEST-precision reference.
    assert jnp.allclose(outputs, ref_out, atol=5e-2, rtol=5e-2), \
        float(jnp.max(jnp.abs(outputs - ref_out)))
    assert jnp.allclose(ae_loss, ref_loss, atol=5e-2, rtol=5e-2), \
        (float(ae_loss), float(ref_loss))

    print("KERNEL_OK")
</pallas_src>

<mosaic_0001>
module attributes {stable_mosaic.version = 11 : i64} {
  func.func @_elmo_bi_kernel(%arg0: memref<8x2x128xf32, #tpu.memory_space<vmem>>, %arg1: memref<16x256xbf16, #tpu.memory_space<vmem>>, %arg2: memref<256x512xbf16, #tpu.memory_space<vmem>>, %arg3: memref<128x512xbf16, #tpu.memory_space<vmem>>, %arg4: memref<1x512xf32, #tpu.memory_space<vmem>>, %arg5: memref<128x384xbf16, #tpu.memory_space<vmem>>, %arg6: memref<1x384xf32, #tpu.memory_space<vmem>>, %arg7: memref<128x128xf32, #tpu.memory_space<vmem>>, %arg8: memref<1x128xf32, #tpu.memory_space<vmem>>, %arg9: memref<2x128xf32, #tpu.memory_space<vmem>>, %arg10: memref<1x1xf32, #tpu.memory_space<vmem>>, %arg11: memref<8x2x512xf32, #tpu.memory_space<vmem>>, %arg12: memref<8x2x128xf32, #tpu.memory_space<vmem>>) attributes {dimension_semantics = [], scalar_prefetch = 0 : i64, scratch_operands = 2 : i64, tpu.core_type = #tpu.core_type<tc>} {
    %c0 = arith.constant 0 : index
    %c0_0 = arith.constant 0 : index
    %0 = vector.load %arg1[%c0, %c0_0] : memref<16x256xbf16, #tpu.memory_space<vmem>>, vector<16x256xbf16>
    %c0_1 = arith.constant 0 : index
    %c0_2 = arith.constant 0 : index
    %1 = vector.load %arg2[%c0_1, %c0_2] : memref<256x512xbf16, #tpu.memory_space<vmem>>, vector<256x512xbf16>
    %cst = arith.constant dense<0.000000e+00> : vector<16x512xf32>
    %2 = tpu.matmul %0, %1, %cst {dimension_numbers = #tpu.dot_dimension_numbers<[1], [0], [0], [1], [0, 0, 1, 1], [], []>} : vector<16x256xbf16>, vector<256x512xbf16>, vector<16x512xf32> -> vector<16x512xf32>
    %c0_3 = arith.constant 0 : index
    %c0_4 = arith.constant 0 : index
    %3 = vector.load %arg4[%c0_3, %c0_4] : memref<1x512xf32, #tpu.memory_space<vmem>>, vector<1x512xf32>
    %4 = vector.broadcast %3 : vector<1x512xf32> to vector<16x512xf32>
    %5 = arith.addf %2, %4 : vector<16x512xf32>
    %6 = vector.shape_cast %5 : vector<16x512xf32> to vector<8x2x512xf32>
    %c0_5 = arith.constant 0 : index
    %c0_6 = arith.constant 0 : index
    %c0_7 = arith.constant 0 : index
    %7 = vector.load %arg11[%c0_5, %c0_6, %c0_7] : memref<8x2x512xf32, #tpu.memory_space<vmem>>, vector<8x2x512xf32>
    tpu.vector_store %arg11[%c0_5, %c0_6, %c0_7], %6 {strides = array<i32>} : memref<8x2x512xf32, #tpu.memory_space<vmem>>, vector<8x2x512xf32>,
    %c0_8 = arith.constant 0 : index
    %c0_9 = arith.constant 0 : index
    %8 = vector.load %arg3[%c0_8, %c0_9] : memref<128x512xbf16, #tpu.memory_space<vmem>>, vector<128x512xbf16>
    %cst_10 = arith.constant 0.000000e+00 : f32
    %9 = vector.broadcast %cst_10 : f32 to vector<2x128xf32>
    %c0_i32 = arith.constant 0 : i32
    %10 = arith.index_cast %c0_i32 : i32 to index
    %c0_11 = arith.constant 0 : index
    %c0_12 = arith.constant 0 : index
    %11 = vector.load %arg11[%10, %c0_11, %c0_12] : memref<8x2x512xf32, #tpu.memory_space<vmem>>, vector<1x2x512xf32>
    %12 = vector.shape_cast %11 : vector<1x2x512xf32> to vector<2x512xf32>
    %13 = arith.truncf %9 : vector<2x128xf32> to vector<2x128xbf16>
    %cst_13 = arith.constant dense<0.000000e+00> : vector<2x512xf32>
    %14 = tpu.matmul %13, %8, %cst_13 {dimension_numbers = #tpu.dot_dimension_numbers<[1], [0], [0], [1], [0, 0, 1, 1], [], []>} : vector<2x128xbf16>, vector<128x512xbf16>, vector<2x512xf32> -> vector<2x512xf32>
    %15 = arith.addf %12, %14 : vector<2x512xf32>
    %16 = vector.extract_strided_slice %15 {offsets = [0, 0], sizes = [2, 128], strides = [1, 1]} : vector<2x512xf32> to vector<2x128xf32>
    %17 = arith.negf %16 : vector<2x128xf32>
    %18 = math.exp %17 : vector<2x128xf32>
    %cst_14 = arith.constant 1.000000e+00 : f32
    %19 = vector.broadcast %cst_14 : f32 to vector<2x128xf32>
    %20 = arith.addf %19, %18 : vector<2x128xf32>
    %21 = arith.divf %19, %20 : vector<2x128xf32>
    %22 = vector.extract_strided_slice %15 {offsets = [0, 128], sizes = [2, 128], strides = [1, 1]} : vector<2x512xf32> to vector<2x128xf32>
    %23 = arith.negf %22 : vector<2x128xf32>
    %24 = math.exp %23 : vector<2x128xf32>
    %cst_15 = arith.constant 1.000000e+00 : f32
    %25 = vector.broadcast %cst_15 : f32 to vector<2x128xf32>
    %26 = arith.addf %25, %24 : vector<2x128xf32>
    %27 = arith.divf %25, %26 : vector<2x128xf32>
    %28 = vector.extract_strided_slice %15 {offsets = [0, 256], sizes = [2, 128], strides = [1, 1]} : vector<2x512xf32> to vector<2x128xf32>
    %29 = math.tanh %28 : vector<2x128xf32>
    %30 = vector.extract_strided_slice %15 {offsets = [0, 384], sizes = [2, 128], strides = [1, 1]} : vector<2x512xf32> to vector<2x128xf32>
    %31 = arith.negf %30 : vector<2x128xf32>
    %32 = math.exp %31 : vector<2x128xf32>
    %cst_16 = arith.constant 1.000000e+00 : f32
    %33 = vector.broadcast %cst_16 : f32 to vector<2x128xf32>
    %34 = arith.addf %33, %32 : vector<2x128xf32>
    %35 = arith.divf %33, %34 : vector<2x128xf32>
    %36 = arith.mulf %27, %9 : vector<2x128xf32>
    %37 = arith.mulf %21, %29 : vector<2x128xf32>
    %38 = arith.addf %36, %37 : vector<2x128xf32>
    %39 = math.tanh %38 : vector<2x128xf32>
    %40 = arith.mulf %35, %39 : vector<2x128xf32>
    %41 = arith.index_cast %c0_i32 : i32 to index
    %c0_17 = arith.constant 0 : index
    %c0_18 = arith.constant 0 : index
    %42 = vector.load %arg12[%41, %c0_17, %c0_18] : memref<8x2x128xf32, #tpu.memory_space<vmem>>, vector<1x2x128xf32>
    %43 = vector.shape_cast %42 : vector<1x2x128xf32> to vector<2x128xf32>
    %44 = vector.shape_cast %40 : vector<2x128xf32> to vector<1x2x128xf32>
    tpu.vector_store %arg12[%41, %c0_17, %c0_18], %44 {strides = array<i32>} : memref<8x2x128xf32, #tpu.memory_space<vmem>>, vector<1x2x128xf32>,
    %c1_i32 = arith.constant 1 : i32
    %45 = arith.index_cast %c1_i32 : i32 to index
    %c0_19 = arith.constant 0 : index
    %c0_20 = arith.constant 0 : index
    %46 = vector.load %arg11[%45, %c0_19, %c0_20] : memref<8x2x512xf32, #tpu.memory_space<vmem>>, vector<1x2x512xf32>
    %47 = vector.shape_cast %46 : vector<1x2x512xf32> to vector<2x512xf32>
    %48 = arith.truncf %40 : vector<2x128xf32> to vector<2x128xbf16>
    %cst_21 = arith.constant dense<0.000000e+00> : vector<2x512xf32>
    %49 = tpu.matmul %48, %8, %cst_21 {dimension_numbers = #tpu.dot_dimension_numbers<[1], [0], [0], [1], [0, 0, 1, 1], [], []>} : vector<2x128xbf16>, vector<128x512xbf16>, vector<2x512xf32> -> vector<2x512xf32>
    %50 = arith.addf %47, %49 : vector<2x512xf32>
    %51 = vector.extract_strided_slice %50 {offsets = [0, 0], sizes = [2, 128], strides = [1, 1]} : vector<2x512xf32> to vector<2x128xf32>
    %52 = arith.negf %51 : vector<2x128xf32>
    %53 = math.exp %52 : vector<2x128xf32>
    %cst_22 = arith.constant 1.000000e+00 : f32
    %54 = vector.broadcast %cst_22 : f32 to vector<2x128xf32>
    %55 = arith.addf %54, %53 : vector<2x128xf32>
    %56 = arith.divf %54, %55 : vector<2x128xf32>
    %57 = vector.extract_strided_slice %50 {offsets = [0, 128], sizes = [2, 128], strides = [1, 1]} : vector<2x512xf32> to vector<2x128xf32>
    %58 = arith.negf %57 : vector<2x128xf32>
    %59 = math.exp %58 : vector<2x128xf32>
    %cst_23 = arith.constant 1.000000e+00 : f32
    %60 = vector.broadcast %cst_23 : f32 to vector<2x128xf32>
    %61 = arith.addf %60, %59 : vector<2x128xf32>
    %62 = arith.divf %60, %61 : vector<2x128xf32>
    %63 = vector.extract_strided_slice %50 {offsets = [0, 256], sizes = [2, 128], strides = [1, 1]} : vector<2x512xf32> to vector<2x128xf32>
    %64 = math.tanh %63 : vector<2x128xf32>
    %65 = vector.extract_strided_slice %50 {offsets = [0, 384], sizes = [2, 128], strides = [1, 1]} : vector<2x512xf32> to vector<2x128xf32>
    %66 = arith.negf %65 : vector<2x128xf32>
    %67 = math.exp %66 : vector<2x128xf32>
    %cst_24 = arith.constant 1.000000e+00 : f32
    %68 = vector.broadcast %cst_24 : f32 to vector<2x128xf32>
    %69 = arith.addf %68, %67 : vector<2x128xf32>
    %70 = arith.divf %68, %69 : vector<2x128xf32>
    %71 = arith.mulf %62, %38 : vector<2x128xf32>
    %72 = arith.mulf %56, %64 : vector<2x128xf32>
    %73 = arith.addf %71, %72 : vector<2x128xf32>
    %74 = math.tanh %73 : vector<2x128xf32>
    %75 = arith.mulf %70, %74 : vector<2x128xf32>
    %76 = arith.index_cast %c1_i32 : i32 to index
    %c0_25 = arith.constant 0 : index
    %c0_26 = arith.constant 0 : index
    %77 = vector.load %arg12[%76, %c0_25, %c0_26] : memref<8x2x128xf32, #tpu.memory_space<vmem>>, vector<1x2x128xf32>
    %78 = vector.shape_cast %77 : vector<1x2x128xf32> to vector<2x128xf32>
    %79 = vector.shape_cast %75 : vector<2x128xf32> to vector<1x2x128xf32>
    tpu.vector_store %arg12[%76, %c0_25, %c0_26], %79 {strides = array<i32>} : memref<8x2x128xf32, #tpu.memory_space<vmem>>, vector<1x2x128xf32>,
    %c2_i32 = arith.constant 2 : i32
    %80 = arith.index_cast %c2_i32 : i32 to index
    %c0_27 = arith.constant 0 : index
    %c0_28 = arith.constant 0 : index
    %81 = vector.load %arg11[%80, %c0_27, %c0_28] : memref<8x2x512xf32, #tpu.memory_space<vmem>>, vector<1x2x512xf32>
    %82 = vector.shape_cast %81 : vector<1x2x512xf32> to vector<2x512xf32>
    %83 = arith.truncf %75 : vector<2x128xf32> to vector<2x128xbf16>
    %cst_29 = arith.constant dense<0.000000e+00> : vector<2x512xf32>
    %84 = tpu.matmul %83, %8, %cst_29 {dimension_numbers = #tpu.dot_dimension_numbers<[1], [0], [0], [1], [0, 0, 1, 1], [], []>} : vector<2x128xbf16>, vector<128x512xbf16>, vector<2x512xf32> -> vector<2x512xf32>
    %85 = arith.addf %82, %84 : vector<2x512xf32>
    %86 = vector.extract_strided_slice %85 {offsets = [0, 0], sizes = [2, 128], strides = [1, 1]} : vector<2x512xf32> to vector<2x128xf32>
    %87 = arith.negf %86 : vector<2x128xf32>
    %88 = math.exp %87 : vector<2x128xf32>
    %cst_30 = arith.constant 1.000000e+00 : f32
    %89 = vector.broadcast %cst_30 : f32 to vector<2x128xf32>
    %90 = arith.addf %89, %88 : vector<2x128xf32>
    %91 = arith.divf %89, %90 : vector<2x128xf32>
    %92 = vector.extract_strided_slice %85 {offsets = [0, 128], sizes = [2, 128], strides = [1, 1]} : vector<2x512xf32> to vector<2x128xf32>
    %93 = arith.negf %92 : vector<2x128xf32>
    %94 = math.exp %93 : vector<2x128xf32>
    %cst_31 = arith.constant 1.000000e+00 : f32
    %95 = vector.broadcast %cst_31 : f32 to vector<2x128xf32>
    %96 = arith.addf %95, %94 : vector<2x128xf32>
    %97 = arith.divf %95, %96 : vector<2x128xf32>
    %98 = vector.extract_strided_slice %85 {offsets = [0, 256], sizes = [2, 128], strides = [1, 1]} : vector<2x512xf32> to vector<2x128xf32>
    %99 = math.tanh %98 : vector<2x128xf32>
    %100 = vector.extract_strided_slice %85 {offsets = [0, 384], sizes = [2, 128], strides = [1, 1]} : vector<2x512xf32> to vector<2x128xf32>
    %101 = arith.negf %100 : vector<2x128xf32>
    %102 = math.exp %101 : vector<2x128xf32>
    %cst_32 = arith.constant 1.000000e+00 : f32
    %103 = vector.broadcast %cst_32 : f32 to vector<2x128xf32>
    %104 = arith.addf %103, %102 : vector<2x128xf32>
    %105 = arith.divf %103, %104 : vector<2x128xf32>
    %106 = arith.mulf %97, %73 : vector<2x128xf32>
    %107 = arith.mulf %91, %99 : vector<2x128xf32>
    %108 = arith.addf %106, %107 : vector<2x128xf32>
    %109 = math.tanh %108 : vector<2x128xf32>
    %110 = arith.mulf %105, %109 : vector<2x128xf32>
    %111 = arith.index_cast %c2_i32 : i32 to index
    %c0_33 = arith.constant 0 : index
    %c0_34 = arith.constant 0 : index
    %112 = vector.load %arg12[%111, %c0_33, %c0_34] : memref<8x2x128xf32, #tpu.memory_space<vmem>>, vector<1x2x128xf32>
    %113 = vector.shape_cast %112 : vector<1x2x128xf32> to vector<2x128xf32>
    %114 = vector.shape_cast %110 : vector<2x128xf32> to vector<1x2x128xf32>
    tpu.vector_store %arg12[%111, %c0_33, %c0_34], %114 {strides = array<i32>} : memref<8x2x128xf32, #tpu.memory_space<vmem>>, vector<1x2x128xf32>,
    %c3_i32 = arith.constant 3 : i32
    %115 = arith.index_cast %c3_i32 : i32 to index
    %c0_35 = arith.constant 0 : index
    %c0_36 = arith.constant 0 : index
    %116 = vector.load %arg11[%115, %c0_35, %c0_36] : memref<8x2x512xf32, #tpu.memory_space<vmem>>, vector<1x2x512xf32>
    %117 = vector.shape_cast %116 : vector<1x2x512xf32> to vector<2x512xf32>
    %118 = arith.truncf %110 : vector<2x128xf32> to vector<2x128xbf16>
    %cst_37 = arith.constant dense<0.000000e+00> : vector<2x512xf32>
    %119 = tpu.matmul %118, %8, %cst_37 {dimension_numbers = #tpu.dot_dimension_numbers<[1], [0], [0], [1], [0, 0, 1, 1], [], []>} : vector<2x128xbf16>, vector<128x512xbf16>, vector<2x512xf32> -> vector<2x512xf32>
    %120 = arith.addf %117, %119 : vector<2x512xf32>
    %121 = vector.extract_strided_slice %120 {offsets = [0, 0], sizes = [2, 128], strides = [1, 1]} : vector<2x512xf32> to vector<2x128xf32>
    %122 = arith.negf %121 : vector<2x128xf32>
    %123 = math.exp %122 : vector<2x128xf32>
    %cst_38 = arith.constant 1.000000e+00 : f32
    %124 = vector.broadcast %cst_38 : f32 to vector<2x128xf32>
    %125 = arith.addf %124, %123 : vector<2x128xf32>
    %126 = arith.divf %124, %125 : vector<2x128xf32>
    %127 = vector.extract_strided_slice %120 {offsets = [0, 128], sizes = [2, 128], strides = [1, 1]} : vector<2x512xf32> to vector<2x128xf32>
    %128 = arith.negf %127 : vector<2x128xf32>
    %129 = math.exp %128 : vector<2x128xf32>
    %cst_39 = arith.constant 1.000000e+00 : f32
    %130 = vector.broadcast %cst_39 : f32 to vector<2x128xf32>
    %131 = arith.addf %130, %129 : vector<2x128xf32>
    %132 = arith.divf %130, %131 : vector<2x128xf32>
    %133 = vector.extract_strided_slice %120 {offsets = [0, 256], sizes = [2, 128], strides = [1, 1]} : vector<2x512xf32> to vector<2x128xf32>
    %134 = math.tanh %133 : vector<2x128xf32>
    %135 = vector.extract_strided_slice %120 {offsets = [0, 384], sizes = [2, 128], strides = [1, 1]} : vector<2x512xf32> to vector<2x128xf32>
    %136 = arith.negf %135 : vector<2x128xf32>
    %137 = math.exp %136 : vector<2x128xf32>
    %cst_40 = arith.constant 1.000000e+00 : f32
    %138 = vector.broadcast %cst_40 : f32 to vector<2x128xf32>
    %139 = arith.addf %138, %137 : vector<2x128xf32>
    %140 = arith.divf %138, %139 : vector<2x128xf32>
    %141 = arith.mulf %132, %108 : vector<2x128xf32>
    %142 = arith.mulf %126, %134 : vector<2x128xf32>
    %143 = arith.addf %141, %142 : vector<2x128xf32>
    %144 = math.tanh %143 : vector<2x128xf32>
    %145 = arith.mulf %140, %144 : vector<2x128xf32>
    %146 = arith.index_cast %c3_i32 : i32 to index
    %c0_41 = arith.constant 0 : index
    %c0_42 = arith.constant 0 : index
    %147 = vector.load %arg12[%146, %c0_41, %c0_42] : memref<8x2x128xf32, #tpu.memory_space<vmem>>, vector<1x2x128xf32>
    %148 = vector.shape_cast %147 : vector<1x2x128xf32> to vector<2x128xf32>
    %149 = vector.shape_cast %145 : vector<2x128xf32> to vector<1x2x128xf32>
    tpu.vector_store %arg12[%146, %c0_41, %c0_42], %149 {strides = array<i32>} : memref<8x2x128xf32, #tpu.memory_space<vmem>>, vector<1x2x128xf32>,
    %c4_i32 = arith.constant 4 : i32
    %150 = arith.index_cast %c4_i32 : i32 to index
    %c0_43 = arith.constant 0 : index
    %c0_44 = arith.constant 0 : index
    %151 = vector.load %arg11[%150, %c0_43, %c0_44] : memref<8x2x512xf32, #tpu.memory_space<vmem>>, vector<1x2x512xf32>
    %152 = vector.shape_cast %151 : vector<1x2x512xf32> to vector<2x512xf32>
    %153 = arith.truncf %145 : vector<2x128xf32> to vector<2x128xbf16>
    %cst_45 = arith.constant dense<0.000000e+00> : vector<2x512xf32>
    %154 = tpu.matmul %153, %8, %cst_45 {dimension_numbers = #tpu.dot_dimension_numbers<[1], [0], [0], [1], [0, 0, 1, 1], [], []>} : vector<2x128xbf16>, vector<128x512xbf16>, vector<2x512xf32> -> vector<2x512xf32>
    %155 = arith.addf %152, %154 : vector<2x512xf32>
    %156 = vector.extract_strided_slice %155 {offsets = [0, 0], sizes = [2, 128], strides = [1, 1]} : vector<2x512xf32> to vector<2x128xf32>
    %157 = arith.negf %156 : vector<2x128xf32>
    %158 = math.exp %157 : vector<2x128xf32>
    %cst_46 = arith.constant 1.000000e+00 : f32
    %159 = vector.broadcast %cst_46 : f32 to vector<2x128xf32>
    %160 = arith.addf %159, %158 : vector<2x128xf32>
    %161 = arith.divf %159, %160 : vector<2x128xf32>
    %162 = vector.extract_strided_slice %155 {offsets = [0, 128], sizes = [2, 128], strides = [1, 1]} : vector<2x512xf32> to vector<2x128xf32>
    %163 = arith.negf %162 : vector<2x128xf32>
    %164 = math.exp %163 : vector<2x128xf32>
    %cst_47 = arith.constant 1.000000e+00 : f32
    %165 = vector.broadcast %cst_47 : f32 to vector<2x128xf32>
    %166 = arith.addf %165, %164 : vector<2x128xf32>
    %167 = arith.divf %165, %166 : vector<2x128xf32>
    %168 = vector.extract_strided_slice %155 {offsets = [0, 256], sizes = [2, 128], strides = [1, 1]} : vector<2x512xf32> to vector<2x128xf32>
    %169 = math.tanh %168 : vector<2x128xf32>
    %170 = vector.extract_strided_slice %155 {offsets = [0, 384], sizes = [2, 128], strides = [1, 1]} : vector<2x512xf32> to vector<2x128xf32>
    %171 = arith.negf %170 : vector<2x128xf32>
    %172 = math.exp %171 : vector<2x128xf32>
    %cst_48 = arith.constant 1.000000e+00 : f32
    %173 = vector.broadcast %cst_48 : f32 to vector<2x128xf32>
    %174 = arith.addf %173, %172 : vector<2x128xf32>
    %175 = arith.divf %173, %174 : vector<2x128xf32>
    %176 = arith.mulf %167, %143 : vector<2x128xf32>
    %177 = arith.mulf %161, %169 : vector<2x128xf32>
    %178 = arith.addf %176, %177 : vector<2x128xf32>
    %179 = math.tanh %178 : vector<2x128xf32>
    %180 = arith.mulf %175, %179 : vector<2x128xf32>
    %181 = arith.index_cast %c4_i32 : i32 to index
    %c0_49 = arith.constant 0 : index
    %c0_50 = arith.constant 0 : index
    %182 = vector.load %arg12[%181, %c0_49, %c0_50] : memref<8x2x128xf32, #tpu.memory_space<vmem>>, vector<1x2x128xf32>
    %183 = vector.shape_cast %182 : vector<1x2x128xf32> to vector<2x128xf32>
    %184 = vector.shape_cast %180 : vector<2x128xf32> to vector<1x2x128xf32>
    tpu.vector_store %arg12[%181, %c0_49, %c0_50], %184 {strides = array<i32>} : memref<8x2x128xf32, #tpu.memory_space<vmem>>, vector<1x2x128xf32>,
    %c5_i32 = arith.constant 5 : i32
    %185 = arith.index_cast %c5_i32 : i32 to index
    %c0_51 = arith.constant 0 : index
    %c0_52 = arith.constant 0 : index
    %186 = vector.load %arg11[%185, %c0_51, %c0_52] : memref<8x2x512xf32, #tpu.memory_space<vmem>>, vector<1x2x512xf32>
    %187 = vector.shape_cast %186 : vector<1x2x512xf32> to vector<2x512xf32>
    %188 = arith.truncf %180 : vector<2x128xf32> to vector<2x128xbf16>
    %cst_53 = arith.constant dense<0.000000e+00> : vector<2x512xf32>
    %189 = tpu.matmul %188, %8, %cst_53 {dimension_numbers = #tpu.dot_dimension_numbers<[1], [0], [0], [1], [0, 0, 1, 1], [], []>} : vector<2x128xbf16>, vector<128x512xbf16>, vector<2x512xf32> -> vector<2x512xf32>
    %190 = arith.addf %187, %189 : vector<2x512xf32>
    %191 = vector.extract_strided_slice %190 {offsets = [0, 0], sizes = [2, 128], strides = [1, 1]} : vector<2x512xf32> to vector<2x128xf32>
    %192 = arith.negf %191 : vector<2x128xf32>
    %193 = math.exp %192 : vector<2x128xf32>
    %cst_54 = arith.constant 1.000000e+00 : f32
    %194 = vector.broadcast %cst_54 : f32 to vector<2x128xf32>
    %195 = arith.addf %194, %193 : vector<2x128xf32>
    %196 = arith.divf %194, %195 : vector<2x128xf32>
    %197 = vector.extract_strided_slice %190 {offsets = [0, 128], sizes = [2, 128], strides = [1, 1]} : vector<2x512xf32> to vector<2x128xf32>
    %198 = arith.negf %197 : vector<2x128xf32>
    %199 = math.exp %198 : vector<2x128xf32>
    %cst_55 = arith.constant 1.000000e+00 : f32
    %200 = vector.broadcast %cst_55 : f32 to vector<2x128xf32>
    %201 = arith.addf %200, %199 : vector<2x128xf32>
    %202 = arith.divf %200, %201 : vector<2x128xf32>
    %203 = vector.extract_strided_slice %190 {offsets = [0, 256], sizes = [2, 128], strides = [1, 1]} : vector<2x512xf32> to vector<2x128xf32>
    %204 = math.tanh %203 : vector<2x128xf32>
    %205 = vector.extract_strided_slice %190 {offsets = [0, 384], sizes = [2, 128], strides = [1, 1]} : vector<2x512xf32> to vector<2x128xf32>
    %206 = arith.negf %205 : vector<2x128xf32>
    %207 = math.exp %206 : vector<2x128xf32>
    %cst_56 = arith.constant 1.000000e+00 : f32
    %208 = vector.broadcast %cst_56 : f32 to vector<2x128xf32>
    %209 = arith.addf %208, %207 : vector<2x128xf32>
    %210 = arith.divf %208, %209 : vector<2x128xf32>
    %211 = arith.mulf %202, %178 : vector<2x128xf32>
    %212 = arith.mulf %196, %204 : vector<2x128xf32>
    %213 = arith.addf %211, %212 : vector<2x128xf32>
    %214 = math.tanh %213 : vector<2x128xf32>
    %215 = arith.mulf %210, %214 : vector<2x128xf32>
    %216 = arith.index_cast %c5_i32 : i32 to index
    %c0_57 = arith.constant 0 : index
    %c0_58 = arith.constant 0 : index
    %217 = vector.load %arg12[%216, %c0_57, %c0_58] : memref<8x2x128xf32, #tpu.memory_space<vmem>>, vector<1x2x128xf32>
    %218 = vector.shape_cast %217 : vector<1x2x128xf32> to vector<2x128xf32>
    %219 = vector.shape_cast %215 : vector<2x128xf32> to vector<1x2x128xf32>
    tpu.vector_store %arg12[%216, %c0_57, %c0_58], %219 {strides = array<i32>} : memref<8x2x128xf32, #tpu.memory_space<vmem>>, vector<1x2x128xf32>,
    %c6_i32 = arith.constant 6 : i32
    %220 = arith.index_cast %c6_i32 : i32 to index
    %c0_59 = arith.constant 0 : index
    %c0_60 = arith.constant 0 : index
    %221 = vector.load %arg11[%220, %c0_59, %c0_60] : memref<8x2x512xf32, #tpu.memory_space<vmem>>, vector<1x2x512xf32>
    %222 = vector.shape_cast %221 : vector<1x2x512xf32> to vector<2x512xf32>
    %223 = arith.truncf %215 : vector<2x128xf32> to vector<2x128xbf16>
    %cst_61 = arith.constant dense<0.000000e+00> : vector<2x512xf32>
    %224 = tpu.matmul %223, %8, %cst_61 {dimension_numbers = #tpu.dot_dimension_numbers<[1], [0], [0], [1], [0, 0, 1, 1], [], []>} : vector<2x128xbf16>, vector<128x512xbf16>, vector<2x512xf32> -> vector<2x512xf32>
    %225 = arith.addf %222, %224 : vector<2x512xf32>
    %226 = vector.extract_strided_slice %225 {offsets = [0, 0], sizes = [2, 128], strides = [1, 1]} : vector<2x512xf32> to vector<2x128xf32>
    %227 = arith.negf %226 : vector<2x128xf32>
    %228 = math.exp %227 : vector<2x128xf32>
    %cst_62 = arith.constant 1.000000e+00 : f32
    %229 = vector.broadcast %cst_62 : f32 to vector<2x128xf32>
    %230 = arith.addf %229, %228 : vector<2x128xf32>
    %231 = arith.divf %229, %230 : vector<2x128xf32>
    %232 = vector.extract_strided_slice %225 {offsets = [0, 128], sizes = [2, 128], strides = [1, 1]} : vector<2x512xf32> to vector<2x128xf32>
    %233 = arith.negf %232 : vector<2x128xf32>
    %234 = math.exp %233 : vector<2x128xf32>
    %cst_63 = arith.constant 1.000000e+00 : f32
    %235 = vector.broadcast %cst_63 : f32 to vector<2x128xf32>
    %236 = arith.addf %235, %234 : vector<2x128xf32>
    %237 = arith.divf %235, %236 : vector<2x128xf32>
    %238 = vector.extract_strided_slice %225 {offsets = [0, 256], sizes = [2, 128], strides = [1, 1]} : vector<2x512xf32> to vector<2x128xf32>
    %239 = math.tanh %238 : vector<2x128xf32>
    %240 = vector.extract_strided_slice %225 {offsets = [0, 384], sizes = [2, 128], strides = [1, 1]} : vector<2x512xf32> to vector<2x128xf32>
    %241 = arith.negf %240 : vector<2x128xf32>
    %242 = math.exp %241 : vector<2x128xf32>
    %cst_64 = arith.constant 1.000000e+00 : f32
    %243 = vector.broadcast %cst_64 : f32 to vector<2x128xf32>
    %244 = arith.addf %243, %242 : vector<2x128xf32>
    %245 = arith.divf %243, %244 : vector<2x128xf32>
    %246 = arith.mulf %237, %213 : vector<2x128xf32>
    %247 = arith.mulf %231, %239 : vector<2x128xf32>
    %248 = arith.addf %246, %247 : vector<2x128xf32>
    %249 = math.tanh %248 : vector<2x128xf32>
    %250 = arith.mulf %245, %249 : vector<2x128xf32>
    %251 = arith.index_cast %c6_i32 : i32 to index
    %c0_65 = arith.constant 0 : index
    %c0_66 = arith.constant 0 : index
    %252 = vector.load %arg12[%251, %c0_65, %c0_66] : memref<8x2x128xf32, #tpu.memory_space<vmem>>, vector<1x2x128xf32>
    %253 = vector.shape_cast %252 : vector<1x2x128xf32> to vector<2x128xf32>
    %254 = vector.shape_cast %250 : vector<2x128xf32> to vector<1x2x128xf32>
    tpu.vector_store %arg12[%251, %c0_65, %c0_66], %254 {strides = array<i32>} : memref<8x2x128xf32, #tpu.memory_space<vmem>>, vector<1x2x128xf32>,
    %c7_i32 = arith.constant 7 : i32
    %255 = arith.index_cast %c7_i32 : i32 to index
    %c0_67 = arith.constant 0 : index
    %c0_68 = arith.constant 0 : index
    %256 = vector.load %arg11[%255, %c0_67, %c0_68] : memref<8x2x512xf32, #tpu.memory_space<vmem>>, vector<1x2x512xf32>
    %257 = vector.shape_cast %256 : vector<1x2x512xf32> to vector<2x512xf32>
    %258 = arith.truncf %250 : vector<2x128xf32> to vector<2x128xbf16>
    %cst_69 = arith.constant dense<0.000000e+00> : vector<2x512xf32>
    %259 = tpu.matmul %258, %8, %cst_69 {dimension_numbers = #tpu.dot_dimension_numbers<[1], [0], [0], [1], [0, 0, 1, 1], [], []>} : vector<2x128xbf16>, vector<128x512xbf16>, vector<2x512xf32> -> vector<2x512xf32>
    %260 = arith.addf %257, %259 : vector<2x512xf32>
    %261 = vector.extract_strided_slice %260 {offsets = [0, 0], sizes = [2, 128], strides = [1, 1]} : vector<2x512xf32> to vector<2x128xf32>
    %262 = arith.negf %261 : vector<2x128xf32>
    %263 = math.exp %262 : vector<2x128xf32>
    %cst_70 = arith.constant 1.000000e+00 : f32
    %264 = vector.broadcast %cst_70 : f32 to vector<2x128xf32>
    %265 = arith.addf %264, %263 : vector<2x128xf32>
    %266 = arith.divf %264, %265 : vector<2x128xf32>
    %267 = vector.extract_strided_slice %260 {offsets = [0, 128], sizes = [2, 128], strides = [1, 1]} : vector<2x512xf32> to vector<2x128xf32>
    %268 = arith.negf %267 : vector<2x128xf32>
    %269 = math.exp %268 : vector<2x128xf32>
    %cst_71 = arith.constant 1.000000e+00 : f32
    %270 = vector.broadcast %cst_71 : f32 to vector<2x128xf32>
    %271 = arith.addf %270, %269 : vector<2x128xf32>
    %272 = arith.divf %270, %271 : vector<2x128xf32>
    %273 = vector.extract_strided_slice %260 {offsets = [0, 256], sizes = [2, 128], strides = [1, 1]} : vector<2x512xf32> to vector<2x128xf32>
    %274 = math.tanh %273 : vector<2x128xf32>
    %275 = vector.extract_strided_slice %260 {offsets = [0, 384], sizes = [2, 128], strides = [1, 1]} : vector<2x512xf32> to vector<2x128xf32>
    %276 = arith.negf %275 : vector<2x128xf32>
    %277 = math.exp %276 : vector<2x128xf32>
    %cst_72 = arith.constant 1.000000e+00 : f32
    %278 = vector.broadcast %cst_72 : f32 to vector<2x128xf32>
    %279 = arith.addf %278, %277 : vector<2x128xf32>
    %280 = arith.divf %278, %279 : vector<2x128xf32>
    %281 = arith.mulf %272, %248 : vector<2x128xf32>
    %282 = arith.mulf %266, %274 : vector<2x128xf32>
    %283 = arith.addf %281, %282 : vector<2x128xf32>
    %284 = math.tanh %283 : vector<2x128xf32>
    %285 = arith.mulf %280, %284 : vector<2x128xf32>
    %286 = arith.index_cast %c7_i32 : i32 to index
    %c0_73 = arith.constant 0 : index
    %c0_74 = arith.constant 0 : index
    %287 = vector.load %arg12[%286, %c0_73, %c0_74] : memref<8x2x128xf32, #tpu.memory_space<vmem>>, vector<1x2x128xf32>
    %288 = vector.shape_cast %287 : vector<1x2x128xf32> to vector<2x128xf32>
    %289 = vector.shape_cast %285 : vector<2x128xf32> to vector<1x2x128xf32>
    tpu.vector_store %arg12[%286, %c0_73, %c0_74], %289 {strides = array<i32>} : memref<8x2x128xf32, #tpu.memory_space<vmem>>, vector<1x2x128xf32>,
    %c8_i32 = arith.constant 8 : i32
    %c7 = arith.constant 7 : index
    %c0_75 = arith.constant 0 : index
    %c0_76 = arith.constant 0 : index
    %290 = vector.load %arg12[%c7, %c0_75, %c0_76] : memref<8x2x128xf32, #tpu.memory_space<vmem>>, vector<1x2x128xf32>
    %291 = vector.shape_cast %290 : vector<1x2x128xf32> to vector<2x128xf32>
    %c0_77 = arith.constant 0 : index
    %c0_78 = arith.constant 0 : index
    %c0_79 = arith.constant 0 : index
    %292 = vector.load %arg12[%c0_77, %c0_78, %c0_79] : memref<8x2x128xf32, #tpu.memory_space<vmem>>, vector<1x2x128xf32>
    %293 = vector.shape_cast %292 : vector<1x2x128xf32> to vector<2x128xf32>
    %294 = vector.extract_strided_slice %291 {offsets = [0, 0], sizes = [2, 64], strides = [1, 1]} : vector<2x128xf32> to vector<2x64xf32>
    %295 = vector.extract_strided_slice %293 {offsets = [0, 64], sizes = [2, 64], strides = [1, 1]} : vector<2x128xf32> to vector<2x64xf32>
    %296 = tpu.concatenate %294, %295 in 1 : vector<2x64xf32>, vector<2x64xf32> -> vector<2x128xf32>
    %c0_80 = arith.constant 0 : index
    %c0_81 = arith.constant 0 : index
    %297 = vector.load %arg5[%c0_80, %c0_81] : memref<128x384xbf16, #tpu.memory_space<vmem>>, vector<128x384xbf16>
    %c0_82 = arith.constant 0 : index
    %c0_83 = arith.constant 0 : index
    %298 = vector.load %arg6[%c0_82, %c0_83] : memref<1x384xf32, #tpu.memory_space<vmem>>, vector<1x384xf32>
    %cst_84 = arith.constant 0.000000e+00 : f32
    %299 = vector.broadcast %cst_84 : f32 to vector<2x128xf32>
    %c0_i32_85 = arith.constant 0 : i32
    %300 = arith.truncf %296 : vector<2x128xf32> to vector<2x128xbf16>
    %cst_86 = arith.constant dense<0.000000e+00> : vector<2x384xf32>
    %301 = tpu.matmul %300, %297, %cst_86 {dimension_numbers = #tpu.dot_dimension_numbers<[1], [0], [0], [1], [0, 0, 1, 1], [], []>} : vector<2x128xbf16>, vector<128x384xbf16>, vector<2x384xf32> -> vector<2x384xf32>
    %302 = vector.broadcast %298 : vector<1x384xf32> to vector<2x384xf32>
    %303 = arith.addf %301, %302 : vector<2x384xf32>
    %304 = vector.extract_strided_slice %303 {offsets = [0, 0], sizes = [2, 128], strides = [1, 1]} : vector<2x384xf32> to vector<2x128xf32>
    %305 = arith.negf %304 : vector<2x128xf32>
    %306 = math.exp %305 : vector<2x128xf32>
    %cst_87 = arith.constant 1.000000e+00 : f32
    %307 = vector.broadcast %cst_87 : f32 to vector<2x128xf32>
    %308 = arith.addf %307, %306 : vector<2x128xf32>
    %309 = arith.divf %307, %308 : vector<2x128xf32>
    %310 = vector.extract_strided_slice %303 {offsets = [0, 128], sizes = [2, 128], strides = [1, 1]} : vector<2x384xf32> to vector<2x128xf32>
    %311 = math.tanh %310 : vector<2x128xf32>
    %312 = vector.extract_strided_slice %303 {offsets = [0, 256], sizes = [2, 128], strides = [1, 1]} : vector<2x384xf32> to vector<2x128xf32>
    %313 = arith.negf %312 : vector<2x128xf32>
    %314 = math.exp %313 : vector<2x128xf32>
    %cst_88 = arith.constant 1.000000e+00 : f32
    %315 = vector.broadcast %cst_88 : f32 to vector<2x128xf32>
    %316 = arith.addf %315, %314 : vector<2x128xf32>
    %317 = arith.divf %315, %316 : vector<2x128xf32>
    %318 = arith.mulf %309, %311 : vector<2x128xf32>
    %319 = math.tanh %318 : vector<2x128xf32>
    %320 = arith.mulf %317, %319 : vector<2x128xf32>
    %321 = arith.index_cast %c0_i32_85 : i32 to index
    %c0_89 = arith.constant 0 : index
    %c0_90 = arith.constant 0 : index
    %322 = vector.load %arg0[%321, %c0_89, %c0_90] : memref<8x2x128xf32, #tpu.memory_space<vmem>>, vector<1x2x128xf32>
    %323 = vector.shape_cast %322 : vector<1x2x128xf32> to vector<2x128xf32>
    %324 = arith.subf %323, %320 : vector<2x128xf32>
    %325 = arith.mulf %324, %324 : vector<2x128xf32>
    %326 = arith.addf %299, %325 : vector<2x128xf32>
    %c1_i32_91 = arith.constant 1 : i32
    %327 = arith.truncf %320 : vector<2x128xf32> to vector<2x128xbf16>
    %cst_92 = arith.constant dense<0.000000e+00> : vector<2x384xf32>
    %328 = tpu.matmul %327, %297, %cst_92 {dimension_numbers = #tpu.dot_dimension_numbers<[1], [0], [0], [1], [0, 0, 1, 1], [], []>} : vector<2x128xbf16>, vector<128x384xbf16>, vector<2x384xf32> -> vector<2x384xf32>
    %329 = vector.broadcast %298 : vector<1x384xf32> to vector<2x384xf32>
    %330 = arith.addf %328, %329 : vector<2x384xf32>
    %331 = vector.extract_strided_slice %330 {offsets = [0, 0], sizes = [2, 128], strides = [1, 1]} : vector<2x384xf32> to vector<2x128xf32>
    %332 = arith.negf %331 : vector<2x128xf32>
    %333 = math.exp %332 : vector<2x128xf32>
    %cst_93 = arith.constant 1.000000e+00 : f32
    %334 = vector.broadcast %cst_93 : f32 to vector<2x128xf32>
    %335 = arith.addf %334, %333 : vector<2x128xf32>
    %336 = arith.divf %334, %335 : vector<2x128xf32>
    %337 = vector.extract_strided_slice %330 {offsets = [0, 128], sizes = [2, 128], strides = [1, 1]} : vector<2x384xf32> to vector<2x128xf32>
    %338 = math.tanh %337 : vector<2x128xf32>
    %339 = vector.extract_strided_slice %330 {offsets = [0, 256], sizes = [2, 128], strides = [1, 1]} : vector<2x384xf32> to vector<2x128xf32>
    %340 = arith.negf %339 : vector<2x128xf32>
    %341 = math.exp %340 : vector<2x128xf32>
    %cst_94 = arith.constant 1.000000e+00 : f32
    %342 = vector.broadcast %cst_94 : f32 to vector<2x128xf32>
    %343 = arith.addf %342, %341 : vector<2x128xf32>
    %344 = arith.divf %342, %343 : vector<2x128xf32>
    %345 = arith.mulf %336, %338 : vector<2x128xf32>
    %346 = math.tanh %345 : vector<2x128xf32>
    %347 = arith.mulf %344, %346 : vector<2x128xf32>
    %348 = arith.index_cast %c1_i32_91 : i32 to index
    %c0_95 = arith.constant 0 : index
    %c0_96 = arith.constant 0 : index
    %349 = vector.load %arg0[%348, %c0_95, %c0_96] : memref<8x2x128xf32, #tpu.memory_space<vmem>>, vector<1x2x128xf32>
    %350 = vector.shape_cast %349 : vector<1x2x128xf32> to vector<2x128xf32>
    %351 = arith.subf %350, %347 : vector<2x128xf32>
    %352 = arith.mulf %351, %351 : vector<2x128xf32>
    %353 = arith.addf %326, %352 : vector<2x128xf32>
    %c2_i32_97 = arith.constant 2 : i32
    %354 = arith.truncf %347 : vector<2x128xf32> to vector<2x128xbf16>
    %cst_98 = arith.constant dense<0.000000e+00> : vector<2x384xf32>
    %355 = tpu.matmul %354, %297, %cst_98 {dimension_numbers = #tpu.dot_dimension_numbers<[1], [0], [0], [1], [0, 0, 1, 1], [], []>} : vector<2x128xbf16>, vector<128x384xbf16>, vector<2x384xf32> -> vector<2x384xf32>
    %356 = vector.broadcast %298 : vector<1x384xf32> to vector<2x384xf32>
    %357 = arith.addf %355, %356 : vector<2x384xf32>
    %358 = vector.extract_strided_slice %357 {offsets = [0, 0], sizes = [2, 128], strides = [1, 1]} : vector<2x384xf32> to vector<2x128xf32>
    %359 = arith.negf %358 : vector<2x128xf32>
    %360 = math.exp %359 : vector<2x128xf32>
    %cst_99 = arith.constant 1.000000e+00 : f32
    %361 = vector.broadcast %cst_99 : f32 to vector<2x128xf32>
    %362 = arith.addf %361, %360 : vector<2x128xf32>
    %363 = arith.divf %361, %362 : vector<2x128xf32>
    %364 = vector.extract_strided_slice %357 {offsets = [0, 128], sizes = [2, 128], strides = [1, 1]} : vector<2x384xf32> to vector<2x128xf32>
    %365 = math.tanh %364 : vector<2x128xf32>
    %366 = vector.extract_strided_slice %357 {offsets = [0, 256], sizes = [2, 128], strides = [1, 1]} : vector<2x384xf32> to vector<2x128xf32>
    %367 = arith.negf %366 : vector<2x128xf32>
    %368 = math.exp %367 : vector<2x128xf32>
    %cst_100 = arith.constant 1.000000e+00 : f32
    %369 = vector.broadcast %cst_100 : f32 to vector<2x128xf32>
    %370 = arith.addf %369, %368 : vector<2x128xf32>
    %371 = arith.divf %369, %370 : vector<2x128xf32>
    %372 = arith.mulf %363, %365 : vector<2x128xf32>
    %373 = math.tanh %372 : vector<2x128xf32>
    %374 = arith.mulf %371, %373 : vector<2x128xf32>
    %375 = arith.index_cast %c2_i32_97 : i32 to index
    %c0_101 = arith.constant 0 : index
    %c0_102 = arith.constant 0 : index
    %376 = vector.load %arg0[%375, %c0_101, %c0_102] : memref<8x2x128xf32, #tpu.memory_space<vmem>>, vector<1x2x128xf32>
    %377 = vector.shape_cast %376 : vector<1x2x128xf32> to vector<2x128xf32>
    %378 = arith.subf %377, %374 : vector<2x128xf32>
    %379 = arith.mulf %378, %378 : vector<2x128xf32>
    %380 = arith.addf %353, %379 : vector<2x128xf32>
    %c3_i32_103 = arith.constant 3 : i32
    %381 = arith.truncf %374 : vector<2x128xf32> to vector<2x128xbf16>
    %cst_104 = arith.constant dense<0.000000e+00> : vector<2x384xf32>
    %382 = tpu.matmul %381, %297, %cst_104 {dimension_numbers = #tpu.dot_dimension_numbers<[1], [0], [0], [1], [0, 0, 1, 1], [], []>} : vector<2x128xbf16>, vector<128x384xbf16>, vector<2x384xf32> -> vector<2x384xf32>
    %383 = vector.broadcast %298 : vector<1x384xf32> to vector<2x384xf32>
    %384 = arith.addf %382, %383 : vector<2x384xf32>
    %385 = vector.extract_strided_slice %384 {offsets = [0, 0], sizes = [2, 128], strides = [1, 1]} : vector<2x384xf32> to vector<2x128xf32>
    %386 = arith.negf %385 : vector<2x128xf32>
    %387 = math.exp %386 : vector<2x128xf32>
    %cst_105 = arith.constant 1.000000e+00 : f32
    %388 = vector.broadcast %cst_105 : f32 to vector<2x128xf32>
    %389 = arith.addf %388, %387 : vector<2x128xf32>
    %390 = arith.divf %388, %389 : vector<2x128xf32>
    %391 = vector.extract_strided_slice %384 {offsets = [0, 128], sizes = [2, 128], strides = [1, 1]} : vector<2x384xf32> to vector<2x128xf32>
    %392 = math.tanh %391 : vector<2x128xf32>
    %393 = vector.extract_strided_slice %384 {offsets = [0, 256], sizes = [2, 128], strides = [1, 1]} : vector<2x384xf32> to vector<2x128xf32>
    %394 = arith.negf %393 : vector<2x128xf32>
    %395 = math.exp %394 : vector<2x128xf32>
    %cst_106 = arith.constant 1.000000e+00 : f32
    %396 = vector.broadcast %cst_106 : f32 to vector<2x128xf32>
    %397 = arith.addf %396, %395 : vector<2x128xf32>
    %398 = arith.divf %396, %397 : vector<2x128xf32>
    %399 = arith.mulf %390, %392 : vector<2x128xf32>
    %400 = math.tanh %399 : vector<2x128xf32>
    %401 = arith.mulf %398, %400 : vector<2x128xf32>
    %402 = arith.index_cast %c3_i32_103 : i32 to index
    %c0_107 = arith.constant 0 : index
    %c0_108 = arith.constant 0 : index
    %403 = vector.load %arg0[%402, %c0_107, %c0_108] : memref<8x2x128xf32, #tpu.memory_space<vmem>>, vector<1x2x128xf32>
    %404 = vector.shape_cast %403 : vector<1x2x128xf32> to vector<2x128xf32>
    %405 = arith.subf %404, %401 : vector<2x128xf32>
    %406 = arith.mulf %405, %405 : vector<2x128xf32>
    %407 = arith.addf %380, %406 : vector<2x128xf32>
    %c4_i32_109 = arith.constant 4 : i32
    %408 = arith.truncf %401 : vector<2x128xf32> to vector<2x128xbf16>
    %cst_110 = arith.constant dense<0.000000e+00> : vector<2x384xf32>
    %409 = tpu.matmul %408, %297, %cst_110 {dimension_numbers = #tpu.dot_dimension_numbers<[1], [0], [0], [1], [0, 0, 1, 1], [], []>} : vector<2x128xbf16>, vector<128x384xbf16>, vector<2x384xf32> -> vector<2x384xf32>
    %410 = vector.broadcast %298 : vector<1x384xf32> to vector<2x384xf32>
    %411 = arith.addf %409, %410 : vector<2x384xf32>
    %412 = vector.extract_strided_slice %411 {offsets = [0, 0], sizes = [2, 128], strides = [1, 1]} : vector<2x384xf32> to vector<2x128xf32>
    %413 = arith.negf %412 : vector<2x128xf32>
    %414 = math.exp %413 : vector<2x128xf32>
    %cst_111 = arith.constant 1.000000e+00 : f32
    %415 = vector.broadcast %cst_111 : f32 to vector<2x128xf32>
    %416 = arith.addf %415, %414 : vector<2x128xf32>
    %417 = arith.divf %415, %416 : vector<2x128xf32>
    %418 = vector.extract_strided_slice %411 {offsets = [0, 128], sizes = [2, 128], strides = [1, 1]} : vector<2x384xf32> to vector<2x128xf32>
    %419 = math.tanh %418 : vector<2x128xf32>
    %420 = vector.extract_strided_slice %411 {offsets = [0, 256], sizes = [2, 128], strides = [1, 1]} : vector<2x384xf32> to vector<2x128xf32>
    %421 = arith.negf %420 : vector<2x128xf32>
    %422 = math.exp %421 : vector<2x128xf32>
    %cst_112 = arith.constant 1.000000e+00 : f32
    %423 = vector.broadcast %cst_112 : f32 to vector<2x128xf32>
    %424 = arith.addf %423, %422 : vector<2x128xf32>
    %425 = arith.divf %423, %424 : vector<2x128xf32>
    %426 = arith.mulf %417, %419 : vector<2x128xf32>
    %427 = math.tanh %426 : vector<2x128xf32>
    %428 = arith.mulf %425, %427 : vector<2x128xf32>
    %429 = arith.index_cast %c4_i32_109 : i32 to index
    %c0_113 = arith.constant 0 : index
    %c0_114 = arith.constant 0 : index
    %430 = vector.load %arg0[%429, %c0_113, %c0_114] : memref<8x2x128xf32, #tpu.memory_space<vmem>>, vector<1x2x128xf32>
    %431 = vector.shape_cast %430 : vector<1x2x128xf32> to vector<2x128xf32>
    %432 = arith.subf %431, %428 : vector<2x128xf32>
    %433 = arith.mulf %432, %432 : vector<2x128xf32>
    %434 = arith.addf %407, %433 : vector<2x128xf32>
    %c5_i32_115 = arith.constant 5 : i32
    %435 = arith.truncf %428 : vector<2x128xf32> to vector<2x128xbf16>
    %cst_116 = arith.constant dense<0.000000e+00> : vector<2x384xf32>
    %436 = tpu.matmul %435, %297, %cst_116 {dimension_numbers = #tpu.dot_dimension_numbers<[1], [0], [0], [1], [0, 0, 1, 1], [], []>} : vector<2x128xbf16>, vector<128x384xbf16>, vector<2x384xf32> -> vector<2x384xf32>
    %437 = vector.broadcast %298 : vector<1x384xf32> to vector<2x384xf32>
    %438 = arith.addf %436, %437 : vector<2x384xf32>
    %439 = vector.extract_strided_slice %438 {offsets = [0, 0], sizes = [2, 128], strides = [1, 1]} : vector<2x384xf32> to vector<2x128xf32>
    %440 = arith.negf %439 : vector<2x128xf32>
    %441 = math.exp %440 : vector<2x128xf32>
    %cst_117 = arith.constant 1.000000e+00 : f32
    %442 = vector.broadcast %cst_117 : f32 to vector<2x128xf32>
    %443 = arith.addf %442, %441 : vector<2x128xf32>
    %444 = arith.divf %442, %443 : vector<2x128xf32>
    %445 = vector.extract_strided_slice %438 {offsets = [0, 128], sizes = [2, 128], strides = [1, 1]} : vector<2x384xf32> to vector<2x128xf32>
    %446 = math.tanh %445 : vector<2x128xf32>
    %447 = vector.extract_strided_slice %438 {offsets = [0, 256], sizes = [2, 128], strides = [1, 1]} : vector<2x384xf32> to vector<2x128xf32>
    %448 = arith.negf %447 : vector<2x128xf32>
    %449 = math.exp %448 : vector<2x128xf32>
    %cst_118 = arith.constant 1.000000e+00 : f32
    %450 = vector.broadcast %cst_118 : f32 to vector<2x128xf32>
    %451 = arith.addf %450, %449 : vector<2x128xf32>
    %452 = arith.divf %450, %451 : vector<2x128xf32>
    %453 = arith.mulf %444, %446 : vector<2x128xf32>
    %454 = math.tanh %453 : vector<2x128xf32>
    %455 = arith.mulf %452, %454 : vector<2x128xf32>
    %456 = arith.index_cast %c5_i32_115 : i32 to index
    %c0_119 = arith.constant 0 : index
    %c0_120 = arith.constant 0 : index
    %457 = vector.load %arg0[%456, %c0_119, %c0_120] : memref<8x2x128xf32, #tpu.memory_space<vmem>>, vector<1x2x128xf32>
    %458 = vector.shape_cast %457 : vector<1x2x128xf32> to vector<2x128xf32>
    %459 = arith.subf %458, %455 : vector<2x128xf32>
    %460 = arith.mulf %459, %459 : vector<2x128xf32>
    %461 = arith.addf %434, %460 : vector<2x128xf32>
    %c6_i32_121 = arith.constant 6 : i32
    %462 = arith.truncf %455 : vector<2x128xf32> to vector<2x128xbf16>
    %cst_122 = arith.constant dense<0.000000e+00> : vector<2x384xf32>
    %463 = tpu.matmul %462, %297, %cst_122 {dimension_numbers = #tpu.dot_dimension_numbers<[1], [0], [0], [1], [0, 0, 1, 1], [], []>} : vector<2x128xbf16>, vector<128x384xbf16>, vector<2x384xf32> -> vector<2x384xf32>
    %464 = vector.broadcast %298 : vector<1x384xf32> to vector<2x384xf32>
    %465 = arith.addf %463, %464 : vector<2x384xf32>
    %466 = vector.extract_strided_slice %465 {offsets = [0, 0], sizes = [2, 128], strides = [1, 1]} : vector<2x384xf32> to vector<2x128xf32>
    %467 = arith.negf %466 : vector<2x128xf32>
    %468 = math.exp %467 : vector<2x128xf32>
    %cst_123 = arith.constant 1.000000e+00 : f32
    %469 = vector.broadcast %cst_123 : f32 to vector<2x128xf32>
    %470 = arith.addf %469, %468 : vector<2x128xf32>
    %471 = arith.divf %469, %470 : vector<2x128xf32>
    %472 = vector.extract_strided_slice %465 {offsets = [0, 128], sizes = [2, 128], strides = [1, 1]} : vector<2x384xf32> to vector<2x128xf32>
    %473 = math.tanh %472 : vector<2x128xf32>
    %474 = vector.extract_strided_slice %465 {offsets = [0, 256], sizes = [2, 128], strides = [1, 1]} : vector<2x384xf32> to vector<2x128xf32>
    %475 = arith.negf %474 : vector<2x128xf32>
    %476 = math.exp %475 : vector<2x128xf32>
    %cst_124 = arith.constant 1.000000e+00 : f32
    %477 = vector.broadcast %cst_124 : f32 to vector<2x128xf32>
    %478 = arith.addf %477, %476 : vector<2x128xf32>
    %479 = arith.divf %477, %478 : vector<2x128xf32>
    %480 = arith.mulf %471, %473 : vector<2x128xf32>
    %481 = math.tanh %480 : vector<2x128xf32>
    %482 = arith.mulf %479, %481 : vector<2x128xf32>
    %483 = arith.index_cast %c6_i32_121 : i32 to index
    %c0_125 = arith.constant 0 : index
    %c0_126 = arith.constant 0 : index
    %484 = vector.load %arg0[%483, %c0_125, %c0_126] : memref<8x2x128xf32, #tpu.memory_space<vmem>>, vector<1x2x128xf32>
    %485 = vector.shape_cast %484 : vector<1x2x128xf32> to vector<2x128xf32>
    %486 = arith.subf %485, %482 : vector<2x128xf32>
    %487 = arith.mulf %486, %486 : vector<2x128xf32>
    %488 = arith.addf %461, %487 : vector<2x128xf32>
    %c7_i32_127 = arith.constant 7 : i32
    %489 = arith.truncf %482 : vector<2x128xf32> to vector<2x128xbf16>
    %cst_128 = arith.constant dense<0.000000e+00> : vector<2x384xf32>
    %490 = tpu.matmul %489, %297, %cst_128 {dimension_numbers = #tpu.dot_dimension_numbers<[1], [0], [0], [1], [0, 0, 1, 1], [], []>} : vector<2x128xbf16>, vector<128x384xbf16>, vector<2x384xf32> -> vector<2x384xf32>
    %491 = vector.broadcast %298 : vector<1x384xf32> to vector<2x384xf32>
    %492 = arith.addf %490, %491 : vector<2x384xf32>
    %493 = vector.extract_strided_slice %492 {offsets = [0, 0], sizes = [2, 128], strides = [1, 1]} : vector<2x384xf32> to vector<2x128xf32>
    %494 = arith.negf %493 : vector<2x128xf32>
    %495 = math.exp %494 : vector<2x128xf32>
    %cst_129 = arith.constant 1.000000e+00 : f32
    %496 = vector.broadcast %cst_129 : f32 to vector<2x128xf32>
    %497 = arith.addf %496, %495 : vector<2x128xf32>
    %498 = arith.divf %496, %497 : vector<2x128xf32>
    %499 = vector.extract_strided_slice %492 {offsets = [0, 128], sizes = [2, 128], strides = [1, 1]} : vector<2x384xf32> to vector<2x128xf32>
    %500 = math.tanh %499 : vector<2x128xf32>
    %501 = vector.extract_strided_slice %492 {offsets = [0, 256], sizes = [2, 128], strides = [1, 1]} : vector<2x384xf32> to vector<2x128xf32>
    %502 = arith.negf %501 : vector<2x128xf32>
    %503 = math.exp %502 : vector<2x128xf32>
    %cst_130 = arith.constant 1.000000e+00 : f32
    %504 = vector.broadcast %cst_130 : f32 to vector<2x128xf32>
    %505 = arith.addf %504, %503 : vector<2x128xf32>
    %506 = arith.divf %504, %505 : vector<2x128xf32>
    %507 = arith.mulf %498, %500 : vector<2x128xf32>
    %508 = math.tanh %507 : vector<2x128xf32>
    %509 = arith.mulf %506, %508 : vector<2x128xf32>
    %510 = arith.index_cast %c7_i32_127 : i32 to index
    %c0_131 = arith.constant 0 : index
    %c0_132 = arith.constant 0 : index
    %511 = vector.load %arg0[%510, %c0_131, %c0_132] : memref<8x2x128xf32, #tpu.memory_space<vmem>>, vector<1x2x128xf32>
    %512 = vector.shape_cast %511 : vector<1x2x128xf32> to vector<2x128xf32>
    %513 = arith.subf %512, %509 : vector<2x128xf32>
    %514 = arith.mulf %513, %513 : vector<2x128xf32>
    %515 = arith.addf %488, %514 : vector<2x128xf32>
    %c8_i32_133 = arith.constant 8 : i32
    %cst_134 = arith.constant dense<0.000000e+00> : vector<2xf32>
    %516 = vector.multi_reduction <add>, %515, %cst_134 [1] : vector<2x128xf32> to vector<2xf32>
    %517 = vector.shape_cast %516 : vector<2xf32> to vector<2x1xf32>
    %cst_135 = arith.constant dense<0.000000e+00> : vector<1xf32>
    %518 = vector.multi_reduction <add>, %517, %cst_135 [0] : vector<2x1xf32> to vector<1xf32>
    %519 = vector.shape_cast %518 : vector<1xf32> to vector<1x1xf32>
    %cst_136 = arith.constant 4.8828125E-4 : f32
    %520 = vector.broadcast %cst_136 : f32 to vector<1x1xf32>
    %521 = arith.mulf %519, %520 : vector<1x1xf32>
    %c0_137 = arith.constant 0 : index
    %c0_138 = arith.constant 0 : index
    %522 = vector.load %arg10[%c0_137, %c0_138] : memref<1x1xf32, #tpu.memory_space<vmem>>, vector<1x1xf32>
    tpu.vector_store %arg10[%c0_137, %c0_138], %521 {strides = array<i32>} : memref<1x1xf32, #tpu.memory_space<vmem>>, vector<1x1xf32>,
    %c0_139 = arith.constant 0 : index
    %c0_140 = arith.constant 0 : index
    %c0_141 = arith.constant 0 : index
    %523 = vector.load %arg0[%c0_139, %c0_140, %c0_141] : memref<8x2x128xf32, #tpu.memory_space<vmem>>, vector<8x2x128xf32>
    %cst_142 = arith.constant dense<0.000000e+00> : vector<2x128xf32>
    %524 = vector.multi_reduction <add>, %523, %cst_142 [0] : vector<8x2x128xf32> to vector<2x128xf32>
    %c0_143 = arith.constant 0 : index
    %c0_144 = arith.constant 0 : index
    %c0_145 = arith.constant 0 : index
    %525 = vector.load %arg12[%c0_143, %c0_144, %c0_145] : memref<8x2x128xf32, #tpu.memory_space<vmem>>, vector<8x2x128xf32>
    %cst_146 = arith.constant dense<0.000000e+00> : vector<2x128xf32>
    %526 = vector.multi_reduction <add>, %525, %cst_146 [0] : vector<8x2x128xf32> to vector<2x128xf32>
    %527 = arith.addf %524, %526 : vector<2x128xf32>
    %c0_147 = arith.constant 0 : index
    %c0_148 = arith.constant 0 : index
    %528 = vector.load %arg7[%c0_147, %c0_148] : memref<128x128xf32, #tpu.memory_space<vmem>>, vector<128x128xf32>
    %cst_149 = arith.constant dense<0.000000e+00> : vector<2x128xf32>
    %529 = tpu.matmul %527, %528, %cst_149 {dimension_numbers = #tpu.dot_dimension_numbers<[1], [0], [0], [1], [0, 0, 1, 1], [], []>} : vector<2x128xf32>, vector<128x128xf32>, vector<2x128xf32> -> vector<2x128xf32>
    %c0_150 = arith.constant 0 : index
    %c0_151 = arith.constant 0 : index
    %530 = vector.load %arg8[%c0_150, %c0_151] : memref<1x128xf32, #tpu.memory_space<vmem>>, vector<1x128xf32>
    %531 = vector.broadcast %530 : vector<1x128xf32> to vector<2x128xf32>
    %532 = arith.addf %529, %531 : vector<2x128xf32>
    %c0_152 = arith.constant 0 : index
    %c0_153 = arith.constant 0 : index
    %533 = vector.load %arg9[%c0_152, %c0_153] : memref<2x128xf32, #tpu.memory_space<vmem>>, vector<2x128xf32>
    tpu.vector_store %arg9[%c0_152, %c0_153], %532 {strides = array<i32>} : memref<2x128xf32, #tpu.memory_space<vmem>>, vector<2x128xf32>,
    return
  }
}

</mosaic_0001>

<bundles_post_ra>
// kernel: _lambda_.1
= control target key start
LH: loop header
LB: loop body
LE: loop exit
PB: predicated region body
PF: predicated region fallthrough
CT: control target
= control target key end

     0   :  { %16 = vsyncpa [#allocation5], 0  ;;  %s5427_s0 = inlined_call_operand.vmem [shape: f32[8,2,128], index: 0, kind: input, shape index: {}]   ;;  %s5428_s1 = inlined_call_operand.vmem [shape: bf16[16,256], index: 1, kind: input, shape index: {}]   ;;  %s5429_s2 = inlined_call_operand.hbm [shape: bf16[256,512], index: 2, kind: input, shape index: {}]   ;;  %s5430_s3 = inlined_call_operand.hbm [shape: bf16[128,512], index: 3, kind: input, shape index: {}]   ;;  %s5431_s4 = inlined_call_operand.vmem [shape: f32[1,512], index: 4, kind: input, shape index: {}]   ;;  %s5432_s5 = inlined_call_operand.vmem [shape: bf16[128,384], index: 5, kind: input, shape index: {}]   ;;  %s5433_s6 = inlined_call_operand.hbm [shape: f32[1,384], index: 6, kind: input, shape index: {}]   ;;  %s5434_s7 = inlined_call_operand.hbm [shape: f32[128,128], index: 7, kind: input, shape index: {}]   ;;  %s5435_s8 = inlined_call_operand.vmem [shape: f32[1,128], index: 8, kind: input, shape index: {}]   ;;  %s5436_s9 = inlined_call_operand.hbm [shape: f32[2,128], index: 9, kind: output, shape index: {0}]   ;;  %s5437_s10 = inlined_call_operand.hbm [shape: f32[1,1], index: 10, kind: output, shape index: {1}]  }
   0x1   :  { %17 = vsyncpa [#allocation8], 0 }
   0x2   :  { %18 = vsyncpa [#allocation11], 0 }
   0x3   :  { %19 = vsyncpa [#allocation6], 0 }
   0x4   :  { %20 = vsyncpa [#allocation14], 0  ;;  %s4253_s13 = smov [#allocation7]   ;;  %s4254_s15 = smov [#allocation4]  }
   0x5   :  { %s42_s14 = sshll.u32 %s4253_s13, 4  ;;  %s30_s16 = sshll.u32 %s4254_s15, 4  ;;  %s43_s14 = int_to_ptr.vmem [resolvable:$true] %s42_s14  ;;  %s31_s16 = int_to_ptr.vmem [resolvable:$true] %s30_s16 }
   0x6   :  { %s4131_s17 = scalar_lea.vmem %s43_s14, 4096  ;;  %p4136_p1 = scmp.lt.s32.totalorder %s43_s14, %s43_s14 }
   0x7   :  { %p4132_p0 = scmp.ne.s32.totalorder %s43_s14, %s4131_s17  ;;  %p4137_p2 = scmp.lt.s32.totalorder %s4131_s17, %s4131_s17 }
   0x9   :  { %p4138_p3 = por %p4137_p2, %p4136_p1 }
   0xb   :  { %p4139_p4 = pnand %p4138_p3, %p4132_p0 }
   0xd   :  { %4142 = shalt.err (!%p4139_p4)
}
   0xe   :  { %s4255_s18 = smov 256   ;;  %s4256_s19 = smov 16  }
   0xf   :  { %48 = dma.hbm_to_vmem [thread:$0]  %s5430_s3, 4096, %s43_s14, [#allocation8], %s4255_s18, %s4255_s18, %s4256_s19  }
  0x10   :  { %s4151_s22 = scalar_lea.vmem %s31_s16, 8192  ;;  %p4156_p6 = scmp.lt.s32.totalorder %s31_s16, %s31_s16 }
  0x11   :  { %p4152_p5 = scmp.ne.s32.totalorder %s31_s16, %s4151_s22  ;;  %p4157_p7 = scmp.lt.s32.totalorder %s4151_s22, %s4151_s22 }
  0x13   :  { %p4158_p8 = por %p4157_p7, %p4156_p6 }
  0x15   :  { %p4159_p9 = pnand %p4158_p8, %p4152_p5 }
  0x17   :  { %4162 = shalt.err (!%p4159_p9)
}
  0x18   :  { %36 = dma.hbm_to_vmem [thread:$0]  %s5429_s2, 8192, %s31_s16, [#allocation5], %s4255_s18, %s4255_s18, %s4256_s19  }
  0x19   :  { %s4257_s25 = smov [#allocation9]   ;;  %s4258_s27 = smov [#allocation10]  }
  0x1a   :  { %s59_s26 = sshll.u32 %s4257_s25, 4  ;;  %s68_s28 = sshll.u32 %s4258_s27, 4  ;;  %s60_s26 = int_to_ptr.vmem [resolvable:$true] %s59_s26  ;;  %s69_s28 = int_to_ptr.vmem [resolvable:$true] %s68_s28 }
  0x1b   :  { %s4171_s29 = scalar_lea.vmem %s60_s26, 48  ;;  %s4175_s3 = scalar_lea.vmem %s60_s26, 64 }
  0x1c   :  { %p4172_p10 = scmp.ne.s32.totalorder %s60_s26, %s4171_s29  ;;  %p4176_p11 = scmp.lt.s32.totalorder %s60_s26, %s60_s26 }
  0x1d   :  { %p4177_p12 = scmp.lt.s32.totalorder %s4175_s3, %s4171_s29 }
  0x1f   :  { %p4178_p13 = por %p4177_p12, %p4176_p11 }
  0x21   :  { %p4179_p0 = pnand %p4178_p13, %p4172_p10 }
  0x23   :  { %4182 = shalt.err (!%p4179_p0)
}
  0x24   :  { %62 = dma.hbm_to_vmem [thread:$0]  %s5433_s6, 48, %s60_s26, [#allocation8]  }
  0x25   :  { %s4191_s12 = scalar_lea.vmem %s69_s28, 2048  ;;  %p4196_p2 = scmp.lt.s32.totalorder %s69_s28, %s69_s28 }
  0x26   :  { %p4192_p1 = scmp.ne.s32.totalorder %s69_s28, %s4191_s12  ;;  %p4197_p3 = scmp.lt.s32.totalorder %s4191_s12, %s4191_s12 }
  0x28   :  { %p4198_p4 = por %p4197_p3, %p4196_p2 }
  0x2a   :  { %p4199_p5 = pnand %p4198_p4, %p4192_p1 }
  0x2c   :  { %4202 = shalt.err (!%p4199_p5)
}
  0x2d   :  { %s4259_s2 = smov 128   ;;  %s4260_s13 = smov 8  }
  0x2e   :  { %74 = dma.hbm_to_vmem [thread:$0]  %s5434_s7, 2048, %s69_s28, [#allocation11], %s4259_s2, %s4259_s2, %s4260_s13  }
  0x2f   :  { %4243 = dma.done.wait [#allocation5], 8192  }
  0x30   :  { %4244 = vsyncadd [#allocation5], 4294959104 }
  0x31   :  { %4245 = dma.done.wait [#allocation8], 4144  }
  0x32   :  { %4246 = vsyncadd [#allocation8], 4294963152 }
  0x33   :  { %4247 = dma.done.wait [#allocation11], 2048  }
  0x34   :  { %4248 = vsyncadd [#allocation11], 4294965248  ;;  %v3665_v0 = vld [vmem:[#allocation4 + $0xe4] ss:$16 sps:$4 sm:$0xff]   ;;  %v3667_v1 = vld [vmem:[#allocation4 + $0xec] ss:$16 sps:$4 sm:$0xff]  }
  0x35   :  { %508 = vmatprep.subr.bf16.mxu0 %v3665_v0  ;;  %v3669_v2 = vld [vmem:[#allocation4 + $0xe0] ss:$16 sps:$4 sm:$0xff]   ;;  %v3670_v3 = vld [vmem:[#allocation4 + $0xe8] ss:$16 sps:$4 sm:$0xff]   ;;  %551 = vmatprep.subr.bf16.mxu1 %v3667_v1  ;;  %v3671_v4 = vld [vmem:[#allocation4 + $0xc4] ss:$16 sps:$4 sm:$0xff]  }
  0x36   :  { %509 = vmatpush1.bf16.msra.mxu0 %v3669_v2  ;;  %552 = vmatpush1.bf16.msra.mxu1 %v3670_v3  ;;  %v3673_v5 = vld [vmem:[#allocation4 + $0xcc] ss:$16 sps:$4 sm:$0xff]   ;;  %v3675_v6 = vld [vmem:[#allocation4 + $0xc0] ss:$16 sps:$4 sm:$0xff]   ;;  %v3676_v7 = vld [vmem:[#allocation4 + $0xc8] ss:$16 sps:$4 sm:$0xff]  }
  0x37   :  { %510 = vmatprep.subr.bf16.mxu0 %v3671_v4  ;;  %553 = vmatprep.subr.bf16.mxu1 %v3673_v5  ;;  %v3677_v8 = vld [vmem:[#allocation4 + $0xa4] ss:$16 sps:$4 sm:$0xff]   ;;  %v3679_v9 = vld [vmem:[#allocation4 + $0xac] ss:$16 sps:$4 sm:$0xff]   ;;  %v3681_v10 = vld [vmem:[#allocation4 + $0xa0] ss:$16 sps:$4 sm:$0xff]  }
  0x38   :  { %v3682_v11 = vld [vmem:[#allocation4 + $0xa8] ss:$16 sps:$4 sm:$0xff]   ;;  %v3683_v12 = vld [vmem:[#allocation4 + $0x84] ss:$16 sps:$4 sm:$0xff]   ;;  %v3685_v13 = vld [vmem:[#allocation4 + $0x8c] ss:$16 sps:$4 sm:$0xff]  }
  0x39   :  { %v3687_v14 = vld [vmem:[#allocation4 + $0x80] ss:$16 sps:$4 sm:$0xff]   ;;  %v3688_v15 = vld [vmem:[#allocation4 + $0x88] ss:$16 sps:$4 sm:$0xff]   ;;  %v3689_v16 = vld [vmem:[#allocation4 + $0x64] ss:$16 sps:$4 sm:$0xff]  }
  0x3a   :  { %511 = vmatpush1.bf16.msra.mxu0 %v3675_v6  ;;  %554 = vmatpush1.bf16.msra.mxu1 %v3676_v7  ;;  %v3691_v17 = vld [vmem:[#allocation4 + $0x6c] ss:$16 sps:$4 sm:$0xff]   ;;  %v3693_v18 = vld [vmem:[#allocation4 + $0x60] ss:$16 sps:$4 sm:$0xff]   ;;  %v3694_v19 = vld [vmem:[#allocation4 + $0x68] ss:$16 sps:$4 sm:$0xff]  }
  0x3b   :  { %512 = vmatprep.subr.bf16.mxu0 %v3677_v8  ;;  %555 = vmatprep.subr.bf16.mxu1 %v3679_v9  ;;  %v3695_v20 = vld [vmem:[#allocation4 + $0x44] ss:$16 sps:$4 sm:$0xff]   ;;  %v3697_v21 = vld [vmem:[#allocation4 + $0x4c] ss:$16 sps:$4 sm:$0xff]   ;;  %v3699_v22 = vld [vmem:[#allocation4 + $0x40] ss:$16 sps:$4 sm:$0xff]  }
  0x3c   :  { %v3700_v23 = vld [vmem:[#allocation4 + $0x48] ss:$16 sps:$4 sm:$0xff]   ;;  %v3701_v24 = vld [vmem:[#allocation4 + $0x24] ss:$16 sps:$4 sm:$0xff]   ;;  %v3703_v25 = vld [vmem:[#allocation4 + $0x2c] ss:$16 sps:$4 sm:$0xff]  }
  0x3d   :  { %v3705_v26 = vld [vmem:[#allocation4 + $0x20] ss:$16 sps:$4 sm:$0xff]   ;;  %v3706_v27 = vld [vmem:[#allocation4 + $0x28] ss:$16 sps:$4 sm:$0xff]   ;;  %v3707_v28 = vld [vmem:[#allocation4 + $0x4] ss:$16 sps:$4 sm:$0xff]  }
  0x3e   :  { %513 = vmatpush1.bf16.msra.mxu0 %v3681_v10  ;;  %556 = vmatpush1.bf16.msra.mxu1 %v3682_v11  ;;  %v3709_v29 = vld [vmem:[#allocation4 + $0xc] ss:$16 sps:$4 sm:$0xff]   ;;  %v3711_v30 = vld [vmem:[#allocation4] ss:$16 sps:$4 sm:$0xff]   ;;  %v3712_v31 = vld [vmem:[#allocation4 + $0x8] ss:$16 sps:$4 sm:$0xff]  }
  0x3f   :  { %514 = vmatprep.subr.bf16.mxu0 %v3683_v12  ;;  %557 = vmatprep.subr.bf16.mxu1 %v3685_v13  ;;  %v3713_v32 = vld [vmem:[#allocation4 + $0x1e4] ss:$16 sps:$4 sm:$0xff]   ;;  %v3715_v33 = vld [vmem:[#allocation4 + $0x1ec] ss:$16 sps:$4 sm:$0xff]   ;;  %v3717_v34 = vld [vmem:[#allocation4 + $0x1e0] ss:$16 sps:$4 sm:$0xff]  }
  0x40   :  { %v3718_v35 = vld [vmem:[#allocation4 + $0x1e8] ss:$16 sps:$4 sm:$0xff]   ;;  %v3719_v36 = vld [vmem:[#allocation4 + $0x1c4] ss:$16 sps:$4 sm:$0xff]   ;;  %v3721_v37 = vld [vmem:[#allocation4 + $0x1cc] ss:$16 sps:$4 sm:$0xff]  }
  0x41   :  { %v3723_v38 = vld [vmem:[#allocation4 + $0x1c0] ss:$16 sps:$4 sm:$0xff]   ;;  %v3724_v39 = vld [vmem:[#allocation4 + $0x1c8] ss:$16 sps:$4 sm:$0xff]   ;;  %v3725_v40 = vld [vmem:[#allocation4 + $0x1a4] ss:$16 sps:$4 sm:$0xff]  }
  0x42   :  { %515 = vmatpush1.bf16.msra.mxu0 %v3687_v14  ;;  %558 = vmatpush1.bf16.msra.mxu1 %v3688_v15  ;;  %v3727_v41 = vld [vmem:[#allocation4 + $0x1ac] ss:$16 sps:$4 sm:$0xff]   ;;  %v3729_v42 = vld [vmem:[#allocation4 + $0x1a0] ss:$16 sps:$4 sm:$0xff]   ;;  %v3730_v43 = vld [vmem:[#allocation4 + $0x1a8] ss:$16 sps:$4 sm:$0xff]  }
  0x43   :  { %516 = vmatprep.subr.bf16.mxu0 %v3689_v16  ;;  %559 = vmatprep.subr.bf16.mxu1 %v3691_v17  ;;  %v3731_v44 = vld [vmem:[#allocation4 + $0x184] ss:$16 sps:$4 sm:$0xff]   ;;  %v3733_v45 = vld [vmem:[#allocation4 + $0x18c] ss:$16 sps:$4 sm:$0xff]   ;;  %v3735_v46 = vld [vmem:[#allocation4 + $0x180] ss:$16 sps:$4 sm:$0xff]  }
  0x44   :  { %v3736_v47 = vld [vmem:[#allocation4 + $0x188] ss:$16 sps:$4 sm:$0xff]   ;;  %v3763_v48 = vld [vmem:[%s5428_s1 + $0x4] ss:$8 sps:$4 sm:$0xff]   ;;  %v3741_v51 = vld [vmem:[#allocation4 + $0x160] ss:$16 sps:$4 sm:$0xff]  }
  0x45   :  { %v3737_v49 = vld [vmem:[#allocation4 + $0x164] ss:$16 sps:$4 sm:$0xff]   ;;  %v3739_v50 = vld [vmem:[#allocation4 + $0x16c] ss:$16 sps:$4 sm:$0xff]   ;;  %540 = vmatprep.mubr.bf16.mxu0 %v3763_v48  ;;  %583 = vmatprep.mubr.bf16.mxu1 %v3763_v48  ;;  %v3742_v52 = vld [vmem:[#allocation4 + $0x168] ss:$16 sps:$4 sm:$0xff]  }
  0x46   :  { %517 = vmatpush1.bf16.msra.mxu0 %v3693_v18  ;;  %560 = vmatpush1.bf16.msra.mxu1 %v3694_v19  ;;  %v3743_v53 = vld [vmem:[#allocation4 + $0x144] ss:$16 sps:$4 sm:$0xff]   ;;  %v3745_v54 = vld [vmem:[#allocation4 + $0x14c] ss:$16 sps:$4 sm:$0xff]   ;;  %v3747_v55 = vld [vmem:[#allocation4 + $0x140] ss:$16 sps:$4 sm:$0xff]  }
  0x47   :  { %518 = vmatprep.subr.bf16.mxu0 %v3695_v20  ;;  %561 = vmatprep.subr.bf16.mxu1 %v3697_v21  ;;  %v3748_v56 = vld [vmem:[#allocation4 + $0x148] ss:$16 sps:$4 sm:$0xff]   ;;  %v3749_v57 = vld [vmem:[#allocation4 + $0x124] ss:$16 sps:$4 sm:$0xff]   ;;  %v3751_v58 = vld [vmem:[#allocation4 + $0x12c] ss:$16 sps:$4 sm:$0xff]  }
  0x48   :  { %v3753_v59 = vld [vmem:[#allocation4 + $0x120] ss:$16 sps:$4 sm:$0xff]   ;;  %v3754_v60 = vld [vmem:[#allocation4 + $0x128] ss:$16 sps:$4 sm:$0xff]   ;;  %v3755_v61 = vld [vmem:[#allocation4 + $0x104] ss:$16 sps:$4 sm:$0xff]  }
  0x49   :  { %v3757_v62 = vld [vmem:[#allocation4 + $0x10c] ss:$16 sps:$4 sm:$0xff]   ;;  %v3759_v63 = vld [vmem:[#allocation4 + $0x100] ss:$16 sps:$4 sm:$0xff]   ;;  %v3760_v0 = vld [vmem:[#allocation4 + $0x108] ss:$16 sps:$4 sm:$0xff]  }
  0x4a   :  { %519 = vmatpush1.bf16.msra.mxu0 %v3699_v22  ;;  %562 = vmatpush1.bf16.msra.mxu1 %v3700_v23  ;;  %v4337_v1 = vld [vmem:[#allocation7 + $0xe4] ss:$16 sps:$4 sm:$0xff]   ;;  %v4339_v2 = vld [vmem:[#allocation7 + $0xec] ss:$16 sps:$4 sm:$0xff]   ;;  %v3761_v3 = vld [vmem:[%s5428_s1] ss:$8 sps:$4 sm:$0xff]  }
  0x4b   :  { %520 = vmatprep.subr.bf16.mxu0 %v3701_v24  ;;  %563 = vmatprep.subr.bf16.mxu1 %v3703_v25  ;;  %v4344_v4 = vld [vmem:[#allocation7 + $0xe0] ss:$16 sps:$4 sm:$0xff]   ;;  %v4346_v5 = vld [vmem:[#allocation7 + $0xe8] ss:$16 sps:$4 sm:$0xff]   ;;  %v4350_v6 = vld [vmem:[#allocation7 + $0xc4] ss:$16 sps:$4 sm:$0xff]  }
  0x4c   :  { %v4352_v7 = vld [vmem:[#allocation7 + $0xcc] ss:$16 sps:$4 sm:$0xff]   ;;  %v4354_v8 = vld [vmem:[#allocation7 + $0xc0] ss:$16 sps:$4 sm:$0xff]   ;;  %v4356_v9 = vld [vmem:[#allocation7 + $0xc8] ss:$16 sps:$4 sm:$0xff]  }
  0x4d   :  { %v4358_v10 = vld [vmem:[#allocation7 + $0xa4] ss:$16 sps:$4 sm:$0xff]   ;;  %v4360_v11 = vld [vmem:[#allocation7 + $0xac] ss:$16 sps:$4 sm:$0xff]   ;;  %v4366_v12 = vld [vmem:[#allocation7 + $0xa0] ss:$16 sps:$4 sm:$0xff]  }
  0x4e   :  { %521 = vmatpush1.bf16.msra.mxu0 %v3705_v26  ;;  %564 = vmatpush1.bf16.msra.mxu1 %v3706_v27  ;;  %v4368_v13 = vld [vmem:[#allocation7 + $0xa8] ss:$16 sps:$4 sm:$0xff]   ;;  %v4261_v14 = vmov 0   ;;  %v4372_v15 = vld [vmem:[#allocation7 + $0x84] ss:$16 sps:$4 sm:$0xff]   ;;  %vm4264_vm0 = vmmov 0  }
  0x4f   :  { %522 = vmatprep.subr.bf16.mxu0 %v3707_v28  ;;  %565 = vmatprep.subr.bf16.mxu1 %v3709_v29  ;;  %v4374_v16 = vld [vmem:[#allocation7 + $0x8c] ss:$16 sps:$4 sm:$0xff]   ;;  %v4382_v17 = vld [vmem:[#allocation7 + $0x80] ss:$16 sps:$4 sm:$0xff]   ;;  %v4384_v18 = vld [vmem:[#allocation7 + $0x88] ss:$16 sps:$4 sm:$0xff]  }
  0x50   :  { %v4388_v19 = vld [vmem:[#allocation7 + $0x64] ss:$16 sps:$4 sm:$0xff]   ;;  %v4390_v20 = vld [vmem:[#allocation7 + $0x6c] ss:$16 sps:$4 sm:$0xff]   ;;  %v4394_v21 = vld [vmem:[#allocation7 + $0x60] ss:$16 sps:$4 sm:$0xff]  }
  0x51   :  { %v4396_v22 = vld [vmem:[#allocation7 + $0x68] ss:$16 sps:$4 sm:$0xff]   ;;  %v4400_v23 = vld [vmem:[#allocation7 + $0x44] ss:$16 sps:$4 sm:$0xff]   ;;  %v4402_v24 = vld [vmem:[#allocation7 + $0x4c] ss:$16 sps:$4 sm:$0xff]  }
  0x52   :  { %523 = vmatpush1.bf16.msra.mxu0 %v3711_v30  ;;  %566 = vmatpush1.bf16.msra.mxu1 %v3712_v31  ;;  %v4406_v25 = vld [vmem:[#allocation7 + $0x40] ss:$16 sps:$4 sm:$0xff]   ;;  %v4408_v26 = vld [vmem:[#allocation7 + $0x48] ss:$16 sps:$4 sm:$0xff]   ;;  %v4412_v27 = vld [vmem:[#allocation7 + $0x24] ss:$16 sps:$4 sm:$0xff]  }
  0x53   :  { %524 = vmatprep.subr.bf16.mxu0 %v3713_v32  ;;  %567 = vmatprep.subr.bf16.mxu1 %v3715_v33  ;;  %v4414_v28 = vld [vmem:[#allocation7 + $0x2c] ss:$16 sps:$4 sm:$0xff]   ;;  %v4418_v29 = vld [vmem:[#allocation7 + $0x20] ss:$16 sps:$4 sm:$0xff]   ;;  %v4420_v30 = vld [vmem:[#allocation7 + $0x28] ss:$16 sps:$4 sm:$0xff]  }
  0x54   :  { %v4424_v31 = vld [vmem:[#allocation7 + $0x4] ss:$16 sps:$4 sm:$0xff]   ;;  %v4426_v32 = vld [vmem:[#allocation7 + $0xc] ss:$16 sps:$4 sm:$0xff]   ;;  %v4430_v33 = vld [vmem:[#allocation7] ss:$16 sps:$4 sm:$0xff]  }
  0x55   :  { %vm2009_vm1 = vcmask 523264   ;;  %vm3011_vm2 = vcmask 1041408  }
  0x56   :  { %525 = vmatpush2.bf16.msra.mxu0 %v3717_v34  ;;  %568 = vmatpush2.bf16.msra.mxu1 %v3718_v35  ;;  %v4432_v34 = vld [vmem:[#allocation7 + $0x8] ss:$16 sps:$4 sm:$0xff]   ;;  %v158_v35 = vlaneseq }
  0x57   :  { %526 = vmatprep.subr.bf16.mxu0 %v3719_v36  ;;  %569 = vmatprep.subr.bf16.mxu1 %v3721_v37 }
  0x58   :  { %v4476_v36 = vshrl.u32 %v158_v35, 7 }
  0x5a   :  { %527 = vmatpush2.bf16.msra.mxu0 %v3723_v38  ;;  %570 = vmatpush2.bf16.msra.mxu1 %v3724_v39  ;;  %v5440_v37 = vsub.s32 0, %v4476_v36  ;;  %v5439_v38 = vsub.s32 2, %v4476_v36  ;;  %v156_v39 = vld [vmem:[%s5431_s4] sm:$0xf] }
  0x5b   :  { %528 = vmatprep.subr.bf16.mxu0 %v3725_v40  ;;  %571 = vmatprep.subr.bf16.mxu1 %v3727_v41  ;;  %v4262_v40 = vmov 1983009808  }
  0x5c   :  { %v607_v41 = vunpack.c.l.s4 %v4262_v40 }
  0x5e   :  { %529 = vmatpush2.bf16.msra.mxu0 %v3729_v42  ;;  %572 = vmatpush2.bf16.msra.mxu1 %v3730_v43  ;;  %v5438_v42 = vsub.s32 1, %v4476_v36  ;;  %v172_v43 = vsub.s32 3, %v4476_v36 }
  0x5f   :  { %530 = vmatprep.subr.bf16.mxu0 %v3731_v44  ;;  %573 = vmatprep.subr.bf16.mxu1 %v3733_v45  ;;  %v161_v44 = vrot.slane %v156_v39, %v5440_v37  ;;  %v169_v45 = vrot.slane %v156_v39, %v5439_v38 }
  0x60   :  { %v173_v48 = vrot.slane %v156_v39, %v172_v43 }
  0x62   :  { %531 = vmatpush2.bf16.msra.mxu0 %v3735_v46  ;;  %574 = vmatpush2.bf16.msra.mxu1 %v3736_v47  ;;  %v608_v46 = vunpack.c.0.s8 %v607_v41  ;;  %v165_v47 = vrot.slane %v156_v39, %v5438_v42 }
  0x63   :  { %532 = vmatprep.subr.bf16.mxu0 %v3737_v49  ;;  %575 = vmatprep.subr.bf16.mxu1 %v3739_v50 }
  0x66   :  { %533 = vmatpush2.bf16.msra.mxu0 %v3741_v51  ;;  %576 = vmatpush2.bf16.msra.mxu1 %v3742_v52 }
  0x67   :  { %534 = vmatprep.subr.bf16.mxu0 %v3743_v53  ;;  %577 = vmatprep.subr.bf16.mxu1 %v3745_v54 }
  0x6a   :  { %535 = vmatpush2.bf16.msra.mxu0 %v3747_v55  ;;  %578 = vmatpush2.bf16.msra.mxu1 %v3748_v56  ;;  %v4492_v55 = vsub.s32 %v608_v46, %v4476_v36 }
  0x6b   :  { %536 = vmatprep.subr.bf16.mxu0 %v3749_v57  ;;  %579 = vmatprep.subr.bf16.mxu1 %v3751_v58 }
  0x6e   :  { %537 = vmatpush2.bf16.msra.mxu0 %v3753_v59  ;;  %580 = vmatpush2.bf16.msra.mxu1 %v3754_v60 }
  0x6f   :  { %538 = vmatprep.subr.bf16.mxu0 %v3755_v61  ;;  %581 = vmatprep.subr.bf16.mxu1 %v3757_v62 }
  0x72   :  { %539 = vmatpush2.bf16.msra.mxu0 %v3759_v63  ;;  %582 = vmatpush2.bf16.msra.mxu1 %v3760_v0 }
  0x73   :  { %883 = vmatprep.subr.bf16.mxu0 %v4337_v1  ;;  %924 = vmatprep.subr.bf16.mxu1 %v4339_v2 }
  0x75   :  { %541 = vmatmul.mubr.bf16.vlgmr.msra.gmra.mxu0 %v3761_v3  ;;  %584 = vmatmul.mubr.bf16.vlgmr.msra.gmra.mxu1 %v3761_v3 }
  0x76   :  { %884 = vmatpush1.bf16.msra.mxu0 %v4344_v4  ;;  %925 = vmatpush1.bf16.msra.mxu1 %v4346_v5 }
  0x77   :  { %885 = vmatprep.subr.bf16.mxu0 %v4350_v6  ;;  %926 = vmatprep.subr.bf16.mxu1 %v4352_v7 }
  0x78   :  { %915 = vmatprep.mubr.bf16.mxu0 %v4261_v14  ;;  %956 = vmatprep.mubr.bf16.mxu1 %v4261_v14 }
  0x7a   :  { %886 = vmatpush1.bf16.msra.mxu0 %v4354_v8  ;;  %927 = vmatpush1.bf16.msra.mxu1 %v4356_v9 }
  0x7b   :  { %887 = vmatprep.subr.bf16.mxu0 %v4358_v10  ;;  %928 = vmatprep.subr.bf16.mxu1 %v4360_v11 }
  0x7e   :  { %888 = vmatpush1.bf16.msra.mxu0 %v4366_v12  ;;  %929 = vmatpush1.bf16.msra.mxu1 %v4368_v13 }
  0x7f   :  { %889 = vmatprep.subr.bf16.mxu0 %v4372_v15  ;;  %930 = vmatprep.subr.bf16.mxu1 %v4374_v16 }
  0x82   :  { %890 = vmatpush1.bf16.msra.mxu0 %v4382_v17  ;;  %931 = vmatpush1.bf16.msra.mxu1 %v4384_v18 }
  0x83   :  { %891 = vmatprep.subr.bf16.mxu0 %v4388_v19  ;;  %932 = vmatprep.subr.bf16.mxu1 %v4390_v20 }
  0x86   :  { %892 = vmatpush1.bf16.msra.mxu0 %v4394_v21  ;;  %933 = vmatpush1.bf16.msra.mxu1 %v4396_v22 }
  0x87   :  { %893 = vmatprep.subr.bf16.mxu0 %v4400_v23  ;;  %934 = vmatprep.subr.bf16.mxu1 %v4402_v24 }
  0x8a   :  { %894 = vmatpush1.bf16.msra.mxu0 %v4406_v25  ;;  %935 = vmatpush1.bf16.msra.mxu1 %v4408_v26 }
  0x8b   :  { %895 = vmatprep.subr.bf16.mxu0 %v4412_v27  ;;  %936 = vmatprep.subr.bf16.mxu1 %v4414_v28 }
  0x8e   :  { %896 = vmatpush1.bf16.msra.mxu0 %v4418_v29  ;;  %937 = vmatpush1.bf16.msra.mxu1 %v4420_v30 }
  0x8f   :  { %897 = vmatprep.subr.bf16.mxu0 %v4424_v31  ;;  %938 = vmatprep.subr.bf16.mxu1 %v4426_v32 }
  0x92   :  { %898 = vmatpush1.bf16.msra.mxu0 %v4430_v33  ;;  %939 = vmatpush1.bf16.msra.mxu1 %v4432_v34 }
  0x93   :  { %1023 = vmatprep.subr.bf16.mxu0 %v4337_v1  ;;  %1064 = vmatprep.subr.bf16.mxu1 %v4339_v2 }
  0x95   :  { %916 = vmatmul.mubr.bf16.vlgmr.msra.gmra.mxu0 %v4261_v14  ;;  %957 = vmatmul.mubr.bf16.vlgmr.msra.gmra.mxu1 %v4261_v14 }
  0x96   :  { %1024 = vmatpush1.bf16.msra.mxu0 %v4344_v4  ;;  %1065 = vmatpush1.bf16.msra.mxu1 %v4346_v5 }
  0x97   :  { %1025 = vmatprep.subr.bf16.mxu0 %v4350_v6  ;;  %1066 = vmatprep.subr.bf16.mxu1 %v4352_v7 }
  0x98   :  { %1055 = vmatprep.mubr.bf16.mxu0 %v4261_v14  ;;  %1096 = vmatprep.mubr.bf16.mxu1 %v4261_v14 }
  0x9a   :  { %1026 = vmatpush1.bf16.msra.mxu0 %v4354_v8  ;;  %1067 = vmatpush1.bf16.msra.mxu1 %v4356_v9 }
  0x9b   :  { %1027 = vmatprep.subr.bf16.mxu0 %v4358_v10  ;;  %1068 = vmatprep.subr.bf16.mxu1 %v4360_v11 }
  0x9e   :  { %1028 = vmatpush1.bf16.msra.mxu0 %v4366_v12  ;;  %1069 = vmatpush1.bf16.msra.mxu1 %v4368_v13 }
  0x9f   :  { %1029 = vmatprep.subr.bf16.mxu0 %v4372_v15  ;;  %1070 = vmatprep.subr.bf16.mxu1 %v4374_v16 }
  0xa2   :  { %1030 = vmatpush1.bf16.msra.mxu0 %v4382_v17  ;;  %1071 = vmatpush1.bf16.msra.mxu1 %v4384_v18 }
  0xa3   :  { %1031 = vmatprep.subr.bf16.mxu0 %v4388_v19  ;;  %1072 = vmatprep.subr.bf16.mxu1 %v4390_v20 }
  0xa6   :  { %1032 = vmatpush1.bf16.msra.mxu0 %v4394_v21  ;;  %1073 = vmatpush1.bf16.msra.mxu1 %v4396_v22 }
  0xa7   :  { %1033 = vmatprep.subr.bf16.mxu0 %v4400_v23  ;;  %1074 = vmatprep.subr.bf16.mxu1 %v4402_v24 }
  0xaa   :  { %1034 = vmatpush1.bf16.msra.mxu0 %v4406_v25  ;;  %1075 = vmatpush1.bf16.msra.mxu1 %v4408_v26 }
  0xab   :  { %1035 = vmatprep.subr.bf16.mxu0 %v4412_v27  ;;  %1076 = vmatprep.subr.bf16.mxu1 %v4414_v28 }
  0xae   :  { %1036 = vmatpush1.bf16.msra.mxu0 %v4418_v29  ;;  %1077 = vmatpush1.bf16.msra.mxu1 %v4420_v30 }
  0xaf   :  { %1037 = vmatprep.subr.bf16.mxu0 %v4424_v31  ;;  %1078 = vmatprep.subr.bf16.mxu1 %v4426_v32 }
  0xb2   :  { %1038 = vmatpush1.bf16.msra.mxu0 %v4430_v33  ;;  %1079 = vmatpush1.bf16.msra.mxu1 %v4432_v34 }
  0xb3   :  { %1164 = vmatprep.subr.bf16.mxu0 %v4337_v1  ;;  %1205 = vmatprep.subr.bf16.mxu1 %v4339_v2 }
 0x135   :  { %v542_v49 = vpop.f32.mrf.mxu0  ;;  %v585_v50 = vpop.f32.mrf.mxu1 }
 0x136   :  { %v543_v51 = vadd.f32 %v542_v49, %v161_v44  ;;  %v586_v52 = vadd.f32 %v585_v50, %v169_v45 }
 0x137   :  { %v544_v53 = vpop.f32.mrf.mxu0  ;;  %v587_v54 = vpop.f32.mrf.mxu1 }
 0x138   :  { %v545_v56 = vadd.f32 %v544_v53, %v165_v47  ;;  %v588_v57 = vadd.f32 %v587_v54, %v173_v48 }
 0x139   :  { %v546_v58 = vpop.f32.mrf.mxu0  ;;  %v589_v59 = vpop.f32.mrf.mxu1 }
 0x13a   :  { %v602_v60 = vcombine.low %v543_v51, %v545_v56  ;;  %v603_v61 = vcombine.high %v543_v51, %v545_v56  ;;  %v604_v62 = vcombine.low %v586_v52, %v588_v57  ;;  %v605_v63 = vcombine.high %v586_v52, %v588_v57 }
 0x13b   :  { %v547_v0 = vadd.f32 %v546_v58, %v161_v44  ;;  %v590_v3 = vadd.f32 %v589_v59, %v169_v45  ;;  %v548_v35 = vpop.f32.mrf.mxu0  ;;  %v591_v39 = vpop.f32.mrf.mxu1 }
 0x13c   :  { %v4495_v40 = vrot.slane %v602_v60, %v4492_v55  ;;  %v4498_v41 = vrot.slane %v603_v61, %v4492_v55  ;;  %v4501_v43 = vrot.slane %v604_v62, %v4492_v55  ;;  %v4504_v46 = vrot.slane %v605_v63, %v4492_v55 }
 0x13d   :  { %v549_v49 = vadd.f32 %v548_v35, %v165_v47  ;;  %v592_v50 = vadd.f32 %v591_v39, %v173_v48 }
 0x13e   :  { %v635_v44 = vcombine.high %v4495_v40, %v4501_v43  ;;  %v636_v45 = vcombine.low %v4498_v41, %v4504_v46  ;;  %v637_v51 = vcombine.high %v4498_v41, %v4504_v46  ;;  %v634_v38 = vcombine.low %v4495_v40, %v4501_v43 }
 0x13f   :  { %v638_v52 = vcombine.low %v547_v0, %v549_v49  ;;  %v639_v53 = vcombine.high %v547_v0, %v549_v49  ;;  %v640_v54 = vcombine.low %v590_v3, %v592_v50  ;;  %v641_v56 = vcombine.high %v590_v3, %v592_v50 }
 0x141   :  { %v4513_v57 = vrot.slane %v638_v52, %v4492_v55  ;;  %v4516_v58 = vrot.slane %v639_v53, %v4492_v55  ;;  %v4519_v47 = vrot.slane %v640_v54, %v4492_v55  ;;  %v4522_v48 = vrot.slane %v641_v56, %v4492_v55 }
 0x155   :  { %v917_v63 = vpop.f32.mrf.mxu0  ;;  %v958_v0 = vpop.f32.mrf.mxu1 }
 0x157   :  { %v919_v3 = vpop.f32.mrf.mxu0  ;;  %v960_v35 = vpop.f32.mrf.mxu1 }
 0x158   :  { %v969_v39 = vcombine.low %v917_v63, %v919_v3  ;;  %v970_v49 = vcombine.low %v958_v0, %v960_v35 }
 0x159   :  { %v921_v50 = vpop.f32.mrf.mxu0  ;;  %v962_v52 = vpop.f32.mrf.mxu1 }
 0x15a   :  { %v977_v53 = vrot.slane %v969_v39, %v4492_v55  ;;  %v984_v54 = vrot.slane %v970_v49, %v4492_v55 }
 0x15b   :  { %v922_v56 = vpop.f32.mrf.mxu0  ;;  %v963_v42 = vpop.f32.mrf.mxu1 }
 0x15c   :  { %v985_v37 = vcombine.low %v977_v53, %v984_v54 }
 0x15e   :  { %v987_v61 = vadd.f32 %v985_v37, %v634_v38 }
 0x160   :  { %v3295_v62 = vmul.f32 -1.442695, %v987_v61  ;;  %v995_v60 = vrot.slane %v987_v61, 2  ;;  %v1006_v63 = vrot.slane %v987_v61, 6  ;;  %v1003_v35 = vrot.slane %v987_v61, 4 }
 0x162   :  { %3844 = vpow2.f32 %v3295_v62  ;;  %v3296_v59 = vmul.f32 -1.442695, %v995_v60  ;;  %v3297_v0 = vmul.f32 -1.442695, %v1006_v63 }
 0x164   :  { %3846 = vpow2.f32 %v3296_v59 }
 0x165   :  { %3848 = vpow2.f32 %v3297_v0 }
 0x16f   :  { %v3845_v3 = vpop.eup %3844 }
 0x170   :  { %v991_v50 = vadd.f32 1.0, %v3845_v3 }
 0x171   :  { %v3847_v39 = vpop.eup %3846 }
 0x172   :  { %3850 = vrcp.f32 %v991_v50  ;;  %v1000_v49 = vadd.f32 1.0, %v3847_v39  ;;  %v3849_v42 = vpop.eup %3848 }
 0x173   :  { %3852 = vtanh.f32 %v1003_v35  ;;  %v1011_v38 = vadd.f32 1.0, %v3849_v42 }
 0x174   :  { %3854 = vrcp.f32 %v1000_v49 }
 0x175   :  { %3856 = vrcp.f32 %v1011_v38 }
 0x17f   :  { %v3851_v52 = vpop.eup %3850 }
 0x180   :  { %v3853_v53 = vpop.eup %3852 }
 0x181   :  { %v3855_v37 = vpop.eup %3854  ;;  %v1015_v62 = vmul.f32 %v3853_v53, %v3851_v52 }
 0x182   :  { %v1014_v54 = vmul.f32 0.0, %v3855_v37  ;;  %v3857_v59 = vpop.eup %3856 }
 0x184   :  { %v4536_v60 = vadd.f32 %v1015_v62, %v1014_v54 }
 0x186   :  { %3858 = vtanh.f32 %v4536_v60 }
 0x193   :  { %v3859_v61 = vpop.eup %3858 }
 0x194   :  { %v1018_v56 = vmul.f32 %v3859_v61, %v3857_v59 }
 0x196   :  { %1019 = vst [vmem:[#allocation3] sm:$0x3] %v1018_v56  ;;  %v1022_v63 = vpack.c.bf16 %v1018_v56, %v1018_v56 }
 0x198   :  { %1056 = vmatmul.mubr.bf16.vlgmr.msra.gmra.mxu0 %v1022_v63  ;;  %1097 = vmatmul.mubr.bf16.vlgmr.msra.gmra.mxu1 %v1022_v63 }
 0x199   :  { %1165 = vmatpush1.bf16.msra.mxu0 %v4344_v4  ;;  %1206 = vmatpush1.bf16.msra.mxu1 %v4346_v5 }
 0x19a   :  { %1166 = vmatprep.subr.bf16.mxu0 %v4350_v6  ;;  %1207 = vmatprep.subr.bf16.mxu1 %v4352_v7 }
 0x19b   :  { %1196 = vmatprep.mubr.bf16.mxu0 %v4261_v14  ;;  %1237 = vmatprep.mubr.bf16.mxu1 %v4261_v14 }
 0x19d   :  { %1167 = vmatpush1.bf16.msra.mxu0 %v4354_v8  ;;  %1208 = vmatpush1.bf16.msra.mxu1 %v4356_v9 }
 0x19e   :  { %1168 = vmatprep.subr.bf16.mxu0 %v4358_v10  ;;  %1209 = vmatprep.subr.bf16.mxu1 %v4360_v11 }
 0x1a1   :  { %1169 = vmatpush1.bf16.msra.mxu0 %v4366_v12  ;;  %1210 = vmatpush1.bf16.msra.mxu1 %v4368_v13 }
 0x1a2   :  { %1170 = vmatprep.subr.bf16.mxu0 %v4372_v15  ;;  %1211 = vmatprep.subr.bf16.mxu1 %v4374_v16 }
 0x1a5   :  { %1171 = vmatpush1.bf16.msra.mxu0 %v4382_v17  ;;  %1212 = vmatpush1.bf16.msra.mxu1 %v4384_v18 }
 0x1a6   :  { %1172 = vmatprep.subr.bf16.mxu0 %v4388_v19  ;;  %1213 = vmatprep.subr.bf16.mxu1 %v4390_v20 }
 0x1a9   :  { %1173 = vmatpush1.bf16.msra.mxu0 %v4394_v21  ;;  %1214 = vmatpush1.bf16.msra.mxu1 %v4396_v22 }
 0x1aa   :  { %1174 = vmatprep.subr.bf16.mxu0 %v4400_v23  ;;  %1215 = vmatprep.subr.bf16.mxu1 %v4402_v24 }
 0x1ad   :  { %1175 = vmatpush1.bf16.msra.mxu0 %v4406_v25  ;;  %1216 = vmatpush1.bf16.msra.mxu1 %v4408_v26 }
 0x1ae   :  { %1176 = vmatprep.subr.bf16.mxu0 %v4412_v27  ;;  %1217 = vmatprep.subr.bf16.mxu1 %v4414_v28 }
 0x1b1   :  { %1177 = vmatpush1.bf16.msra.mxu0 %v4418_v29  ;;  %1218 = vmatpush1.bf16.msra.mxu1 %v4420_v30 }
 0x1b2   :  { %1178 = vmatprep.subr.bf16.mxu0 %v4424_v31  ;;  %1219 = vmatprep.subr.bf16.mxu1 %v4426_v32 }
 0x1b5   :  { %1179 = vmatpush1.bf16.msra.mxu0 %v4430_v33  ;;  %1220 = vmatpush1.bf16.msra.mxu1 %v4432_v34 }
 0x1b6   :  { %1305 = vmatprep.subr.bf16.mxu0 %v4337_v1  ;;  %1346 = vmatprep.subr.bf16.mxu1 %v4339_v2 }
 0x258   :  { %v1057_v0 = vpop.f32.mrf.mxu0  ;;  %v1098_v3 = vpop.f32.mrf.mxu1 }
 0x25a   :  { %v1059_v35 = vpop.f32.mrf.mxu0  ;;  %v1100_v50 = vpop.f32.mrf.mxu1 }
 0x25b   :  { %v1109_v39 = vcombine.low %v1057_v0, %v1059_v35  ;;  %v1110_v49 = vcombine.low %v1098_v3, %v1100_v50 }
 0x25c   :  { %v1061_v42 = vpop.f32.mrf.mxu0  ;;  %v1102_v52 = vpop.f32.mrf.mxu1 }
 0x25d   :  { %v1117_v53 = vrot.slane %v1109_v39, %v4492_v55  ;;  %v1124_v37 = vrot.slane %v1110_v49, %v4492_v55 }
 0x25e   :  { %v1062_v38 = vpop.f32.mrf.mxu0  ;;  %v1103_v54 = vpop.f32.mrf.mxu1 }
 0x25f   :  { %v1125_v62 = vcombine.low %v1117_v53, %v1124_v37 }
 0x261   :  { %v1127_v59 = vadd.f32 %v1125_v62, %v635_v44 }
 0x263   :  { %v3298_v61 = vmul.f32 -1.442695, %v1127_v59  ;;  %v1135_v56 = vrot.slane %v1127_v59, 2  ;;  %v1146_v0 = vrot.slane %v1127_v59, 6  ;;  %v1143_v50 = vrot.slane %v1127_v59, 4 }
 0x265   :  { %3860 = vpow2.f32 %v3298_v61  ;;  %v3299_v63 = vmul.f32 -1.442695, %v1135_v56  ;;  %v3300_v3 = vmul.f32 -1.442695, %v1146_v0 }
 0x267   :  { %3862 = vpow2.f32 %v3299_v63 }
 0x268   :  { %3864 = vpow2.f32 %v3300_v3 }
 0x272   :  { %v3861_v35 = vpop.eup %3860 }
 0x273   :  { %v1131_v42 = vadd.f32 1.0, %v3861_v35 }
 0x274   :  { %v3863_v39 = vpop.eup %3862 }
 0x275   :  { %3866 = vrcp.f32 %v1131_v42  ;;  %v1140_v49 = vadd.f32 1.0, %v3863_v39  ;;  %v3865_v52 = vpop.eup %3864 }
 0x276   :  { %3868 = vtanh.f32 %v1143_v50  ;;  %v1151_v44 = vadd.f32 1.0, %v3865_v52 }
 0x277   :  { %3870 = vrcp.f32 %v1140_v49 }
 0x278   :  { %3872 = vrcp.f32 %v1151_v44 }
 0x282   :  { %v3867_v53 = vpop.eup %3866 }
 0x283   :  { %v3869_v40 = vpop.eup %3868 }
 0x284   :  { %v3871_v43 = vpop.eup %3870  ;;  %v1155_v38 = vmul.f32 %v3869_v40, %v3867_v53 }
 0x285   :  { %v1154_v37 = vmul.f32 %v3871_v43, %v4536_v60  ;;  %v3873_v62 = vpop.eup %3872 }
 0x287   :  { %v4579_v54 = vadd.f32 %v1155_v38, %v1154_v37 }
 0x289   :  { %3874 = vtanh.f32 %v4579_v54 }
 0x296   :  { %v3875_v59 = vpop.eup %3874 }
 0x297   :  { %v1158_v61 = vmul.f32 %v3875_v59, %v3873_v62 }
 0x299   :  { %1160 = vst [vmem:[#allocation3 + $0x2] sm:$0x3] %v1158_v61  ;;  %v1163_v56 = vpack.c.bf16 %v1158_v61, %v1158_v61 }
 0x29b   :  { %1197 = vmatmul.mubr.bf16.vlgmr.msra.gmra.mxu0 %v1163_v56  ;;  %1238 = vmatmul.mubr.bf16.vlgmr.msra.gmra.mxu1 %v1163_v56 }
 0x29c   :  { %1306 = vmatpush1.bf16.msra.mxu0 %v4344_v4  ;;  %1347 = vmatpush1.bf16.msra.mxu1 %v4346_v5 }
 0x29d   :  { %1307 = vmatprep.subr.bf16.mxu0 %v4350_v6  ;;  %1348 = vmatprep.subr.bf16.mxu1 %v4352_v7 }
 0x29e   :  { %1337 = vmatprep.mubr.bf16.mxu0 %v4261_v14  ;;  %1378 = vmatprep.mubr.bf16.mxu1 %v4261_v14 }
 0x2a0   :  { %1308 = vmatpush1.bf16.msra.mxu0 %v4354_v8  ;;  %1349 = vmatpush1.bf16.msra.mxu1 %v4356_v9 }
 0x2a1   :  { %1309 = vmatprep.subr.bf16.mxu0 %v4358_v10  ;;  %1350 = vmatprep.subr.bf16.mxu1 %v4360_v11 }
 0x2a4   :  { %1310 = vmatpush1.bf16.msra.mxu0 %v4366_v12  ;;  %1351 = vmatpush1.bf16.msra.mxu1 %v4368_v13 }
 0x2a5   :  { %1311 = vmatprep.subr.bf16.mxu0 %v4372_v15  ;;  %1352 = vmatprep.subr.bf16.mxu1 %v4374_v16 }
 0x2a8   :  { %1312 = vmatpush1.bf16.msra.mxu0 %v4382_v17  ;;  %1353 = vmatpush1.bf16.msra.mxu1 %v4384_v18 }
 0x2a9   :  { %1313 = vmatprep.subr.bf16.mxu0 %v4388_v19  ;;  %1354 = vmatprep.subr.bf16.mxu1 %v4390_v20 }
 0x2ac   :  { %1314 = vmatpush1.bf16.msra.mxu0 %v4394_v21  ;;  %1355 = vmatpush1.bf16.msra.mxu1 %v4396_v22 }
 0x2ad   :  { %1315 = vmatprep.subr.bf16.mxu0 %v4400_v23  ;;  %1356 = vmatprep.subr.bf16.mxu1 %v4402_v24 }
 0x2b0   :  { %1316 = vmatpush1.bf16.msra.mxu0 %v4406_v25  ;;  %1357 = vmatpush1.bf16.msra.mxu1 %v4408_v26 }
 0x2b1   :  { %1317 = vmatprep.subr.bf16.mxu0 %v4412_v27  ;;  %1358 = vmatprep.subr.bf16.mxu1 %v4414_v28 }
 0x2b4   :  { %1318 = vmatpush1.bf16.msra.mxu0 %v4418_v29  ;;  %1359 = vmatpush1.bf16.msra.mxu1 %v4420_v30 }
 0x2b5   :  { %1319 = vmatprep.subr.bf16.mxu0 %v4424_v31  ;;  %1360 = vmatprep.subr.bf16.mxu1 %v4426_v32 }
 0x2b8   :  { %1320 = vmatpush1.bf16.msra.mxu0 %v4430_v33  ;;  %1361 = vmatpush1.bf16.msra.mxu1 %v4432_v34 }
 0x2b9   :  { %1446 = vmatprep.subr.bf16.mxu0 %v4337_v1  ;;  %1487 = vmatprep.subr.bf16.mxu1 %v4339_v2 }
 0x35b   :  { %v1198_v60 = vpop.f32.mrf.mxu0  ;;  %v1239_v63 = vpop.f32.mrf.mxu1 }
 0x35d   :  { %v1200_v0 = vpop.f32.mrf.mxu0  ;;  %v1241_v3 = vpop.f32.mrf.mxu1 }
 0x35e   :  { %v1250_v35 = vcombine.low %v1198_v60, %v1200_v0  ;;  %v1251_v50 = vcombine.low %v1239_v63, %v1241_v3 }
 0x35f   :  { %v1202_v42 = vpop.f32.mrf.mxu0  ;;  %v1243_v39 = vpop.f32.mrf.mxu1 }
 0x360   :  { %v1258_v49 = vrot.slane %v1250_v35, %v4492_v55  ;;  %v1265_v52 = vrot.slane %v1251_v50, %v4492_v55 }
 0x361   :  { %v1203_v53 = vpop.f32.mrf.mxu0  ;;  %v1244_v40 = vpop.f32.mrf.mxu1 }
 0x362   :  { %v1266_v43 = vcombine.low %v1258_v49, %v1265_v52 }
 0x364   :  { %v1268_v44 = vadd.f32 %v1266_v43, %v636_v45 }
 0x366   :  { %v3301_v37 = vmul.f32 -1.442695, %v1268_v44  ;;  %v1276_v38 = vrot.slane %v1268_v44, 2  ;;  %v1287_v59 = vrot.slane %v1268_v44, 6  ;;  %v1284_v60 = vrot.slane %v1268_v44, 4 }
 0x368   :  { %3876 = vpow2.f32 %v3301_v37  ;;  %v3302_v62 = vmul.f32 -1.442695, %v1276_v38  ;;  %v3303_v61 = vmul.f32 -1.442695, %v1287_v59 }
 0x36a   :  { %3878 = vpow2.f32 %v3302_v62 }
 0x36b   :  { %3880 = vpow2.f32 %v3303_v61 }
 0x375   :  { %v3877_v56 = vpop.eup %3876 }
 0x376   :  { %v1272_v63 = vadd.f32 1.0, %v3877_v56 }
 0x377   :  { %v3879_v0 = vpop.eup %3878 }
 0x378   :  { %3882 = vrcp.f32 %v1272_v63  ;;  %v1281_v3 = vadd.f32 1.0, %v3879_v0  ;;  %v3881_v35 = vpop.eup %3880 }
 0x379   :  { %3884 = vtanh.f32 %v1284_v60  ;;  %v1292_v39 = vadd.f32 1.0, %v3881_v35 }
 0x37a   :  { %3886 = vrcp.f32 %v1281_v3 }
 0x37b   :  { %3888 = vrcp.f32 %v1292_v39 }
 0x385   :  { %v3883_v50 = vpop.eup %3882 }
 0x386   :  { %v3885_v42 = vpop.eup %3884 }
 0x387   :  { %v3887_v45 = vpop.eup %3886  ;;  %v1296_v52 = vmul.f32 %v3885_v42, %v3883_v50 }
 0x388   :  { %v1295_v49 = vmul.f32 %v3887_v45, %v4579_v54  ;;  %v3889_v40 = vpop.eup %3888 }
 0x38a   :  { %v4622_v53 = vadd.f32 %v1296_v52, %v1295_v49 }
 0x38c   :  { %3890 = vtanh.f32 %v4622_v53 }
 0x399   :  { %v3891_v43 = vpop.eup %3890 }
 0x39a   :  { %v1299_v44 = vmul.f32 %v3891_v43, %v3889_v40 }
 0x39c   :  { %1301 = vst [vmem:[#allocation3 + $0x4] sm:$0x3] %v1299_v44  ;;  %v1304_v37 = vpack.c.bf16 %v1299_v44, %v1299_v44 }
 0x39e   :  { %1338 = vmatmul.mubr.bf16.vlgmr.msra.gmra.mxu0 %v1304_v37  ;;  %1379 = vmatmul.mubr.bf16.vlgmr.msra.gmra.mxu1 %v1304_v37 }
 0x39f   :  { %1447 = vmatpush1.bf16.msra.mxu0 %v4344_v4  ;;  %1488 = vmatpush1.bf16.msra.mxu1 %v4346_v5 }
 0x3a0   :  { %1448 = vmatprep.subr.bf16.mxu0 %v4350_v6  ;;  %1489 = vmatprep.subr.bf16.mxu1 %v4352_v7 }
 0x3a1   :  { %1478 = vmatprep.mubr.bf16.mxu0 %v4261_v14  ;;  %1519 = vmatprep.mubr.bf16.mxu1 %v4261_v14 }
 0x3a3   :  { %1449 = vmatpush1.bf16.msra.mxu0 %v4354_v8  ;;  %1490 = vmatpush1.bf16.msra.mxu1 %v4356_v9 }
 0x3a4   :  { %1450 = vmatprep.subr.bf16.mxu0 %v4358_v10  ;;  %1491 = vmatprep.subr.bf16.mxu1 %v4360_v11 }
 0x3a7   :  { %1451 = vmatpush1.bf16.msra.mxu0 %v4366_v12  ;;  %1492 = vmatpush1.bf16.msra.mxu1 %v4368_v13 }
 0x3a8   :  { %1452 = vmatprep.subr.bf16.mxu0 %v4372_v15  ;;  %1493 = vmatprep.subr.bf16.mxu1 %v4374_v16 }
 0x3ab   :  { %1453 = vmatpush1.bf16.msra.mxu0 %v4382_v17  ;;  %1494 = vmatpush1.bf16.msra.mxu1 %v4384_v18 }
 0x3ac   :  { %1454 = vmatprep.subr.bf16.mxu0 %v4388_v19  ;;  %1495 = vmatprep.subr.bf16.mxu1 %v4390_v20 }
 0x3af   :  { %1455 = vmatpush1.bf16.msra.mxu0 %v4394_v21  ;;  %1496 = vmatpush1.bf16.msra.mxu1 %v4396_v22 }
 0x3b0   :  { %1456 = vmatprep.subr.bf16.mxu0 %v4400_v23  ;;  %1497 = vmatprep.subr.bf16.mxu1 %v4402_v24 }
 0x3b3   :  { %1457 = vmatpush1.bf16.msra.mxu0 %v4406_v25  ;;  %1498 = vmatpush1.bf16.msra.mxu1 %v4408_v26 }
 0x3b4   :  { %1458 = vmatprep.subr.bf16.mxu0 %v4412_v27  ;;  %1499 = vmatprep.subr.bf16.mxu1 %v4414_v28 }
 0x3b7   :  { %1459 = vmatpush1.bf16.msra.mxu0 %v4418_v29  ;;  %1500 = vmatpush1.bf16.msra.mxu1 %v4420_v30 }
 0x3b8   :  { %1460 = vmatprep.subr.bf16.mxu0 %v4424_v31  ;;  %1501 = vmatprep.subr.bf16.mxu1 %v4426_v32 }
 0x3bb   :  { %1461 = vmatpush1.bf16.msra.mxu0 %v4430_v33  ;;  %1502 = vmatpush1.bf16.msra.mxu1 %v4432_v34 }
 0x3bc   :  { %1587 = vmatprep.subr.bf16.mxu0 %v4337_v1  ;;  %1628 = vmatprep.subr.bf16.mxu1 %v4339_v2 }
 0x45e   :  { %v1339_v54 = vpop.f32.mrf.mxu0  ;;  %v1380_v38 = vpop.f32.mrf.mxu1 }
 0x460   :  { %v1341_v62 = vpop.f32.mrf.mxu0  ;;  %v1382_v59 = vpop.f32.mrf.mxu1 }
 0x461   :  { %v1391_v61 = vcombine.low %v1339_v54, %v1341_v62  ;;  %v1392_v56 = vcombine.low %v1380_v38, %v1382_v59 }
 0x462   :  { %v1343_v60 = vpop.f32.mrf.mxu0  ;;  %v1384_v63 = vpop.f32.mrf.mxu1 }
 0x463   :  { %v1399_v0 = vrot.slane %v1391_v61, %v4492_v55  ;;  %v1406_v3 = vrot.slane %v1392_v56, %v4492_v55 }
 0x464   :  { %v1344_v35 = vpop.f32.mrf.mxu0  ;;  %v1385_v50 = vpop.f32.mrf.mxu1 }
 0x465   :  { %v1407_v42 = vcombine.low %v1399_v0, %v1406_v3 }
 0x467   :  { %v1409_v1 = vadd.f32 %v1407_v42, %v637_v51 }
 0x469   :  { %v3304_v2 = vmul.f32 -1.442695, %v1409_v1  ;;  %v1417_v45 = vrot.slane %v1409_v1, 2  ;;  %v1428_v49 = vrot.slane %v1409_v1, 6  ;;  %v1425_v43 = vrot.slane %v1409_v1, 4 }
 0x46b   :  { %3892 = vpow2.f32 %v3304_v2  ;;  %v3305_v39 = vmul.f32 -1.442695, %v1417_v45  ;;  %v3306_v52 = vmul.f32 -1.442695, %v1428_v49 }
 0x46d   :  { %3894 = vpow2.f32 %v3305_v39 }
 0x46e   :  { %3896 = vpow2.f32 %v3306_v52 }
 0x478   :  { %v3893_v40 = vpop.eup %3892 }
 0x479   :  { %v1413_v44 = vadd.f32 1.0, %v3893_v40 }
 0x47a   :  { %v3895_v37 = vpop.eup %3894 }
 0x47b   :  { %3898 = vrcp.f32 %v1413_v44  ;;  %v1422_v54 = vadd.f32 1.0, %v3895_v37  ;;  %v3897_v38 = vpop.eup %3896 }
 0x47c   :  { %3900 = vtanh.f32 %v1425_v43  ;;  %v1433_v51 = vadd.f32 1.0, %v3897_v38 }
 0x47d   :  { %3902 = vrcp.f32 %v1422_v54 }
 0x47e   :  { %3904 = vrcp.f32 %v1433_v51 }
 0x488   :  { %v3899_v62 = vpop.eup %3898 }
 0x489   :  { %v3901_v41 = vpop.eup %3900 }
 0x48a   :  { %v3903_v46 = vpop.eup %3902  ;;  %v1437_v61 = vmul.f32 %v3901_v41, %v3899_v62 }
 0x48b   :  { %v1436_v59 = vmul.f32 %v3903_v46, %v4622_v53  ;;  %v3905_v60 = vpop.eup %3904 }
 0x48d   :  { %v4665_v56 = vadd.f32 %v1437_v61, %v1436_v59  ;;  %v4715_v61 = vld [vmem:[#allocation7 + $0xe0] ss:$16 sps:$4 sm:$0xff]  }
 0x48f   :  { %3906 = vtanh.f32 %v4665_v56 }
 0x49c   :  { %v3907_v63 = vpop.eup %3906 }
 0x49d   :  { %v1440_v0 = vmul.f32 %v3907_v63, %v3905_v60  ;;  %v4718_v60 = vld [vmem:[#allocation7 + $0xe8] ss:$16 sps:$4 sm:$0xff]   ;;  %v4724_v63 = vld [vmem:[#allocation7 + $0xcc] ss:$16 sps:$4 sm:$0xff]  }
 0x49f   :  { %1442 = vst [vmem:[#allocation3 + $0x6] sm:$0x3] %v1440_v0  ;;  %v1445_v3 = vpack.c.bf16 %v1440_v0, %v1440_v0  ;;  %v4729_v0 = vld [vmem:[#allocation7 + $0xc0] ss:$16 sps:$4 sm:$0xff]  }
 0x4a1   :  { %1479 = vmatmul.mubr.bf16.vlgmr.msra.gmra.mxu0 %v1445_v3  ;;  %1520 = vmatmul.mubr.bf16.vlgmr.msra.gmra.mxu1 %v1445_v3  ;;  %v4732_v3 = vld [vmem:[#allocation7 + $0xc8] ss:$16 sps:$4 sm:$0xff]  }
 0x4a2   :  { %1588 = vmatpush1.bf16.msra.mxu0 %v4344_v4  ;;  %1629 = vmatpush1.bf16.msra.mxu1 %v4346_v5  ;;  %v4700_v4 = vld [vmem:[#allocation7 + $0xe4] ss:$16 sps:$4 sm:$0xff]   ;;  %v4703_v5 = vld [vmem:[#allocation7 + $0xec] ss:$16 sps:$4 sm:$0xff]  }
 0x4a3   :  { %1589 = vmatprep.subr.bf16.mxu0 %v4350_v6  ;;  %1630 = vmatprep.subr.bf16.mxu1 %v4352_v7 }
 0x4a4   :  { %1619 = vmatprep.mubr.bf16.mxu0 %v4261_v14  ;;  %1660 = vmatprep.mubr.bf16.mxu1 %v4261_v14 }
 0x4a6   :  { %1590 = vmatpush1.bf16.msra.mxu0 %v4354_v8  ;;  %1631 = vmatpush1.bf16.msra.mxu1 %v4356_v9 }
 0x4a7   :  { %1591 = vmatprep.subr.bf16.mxu0 %v4358_v10  ;;  %1632 = vmatprep.subr.bf16.mxu1 %v4360_v11 }
 0x4aa   :  { %1592 = vmatpush1.bf16.msra.mxu0 %v4366_v12  ;;  %1633 = vmatpush1.bf16.msra.mxu1 %v4368_v13 }
 0x4ab   :  { %1593 = vmatprep.subr.bf16.mxu0 %v4372_v15  ;;  %1634 = vmatprep.subr.bf16.mxu1 %v4374_v16 }
 0x4ae   :  { %1594 = vmatpush1.bf16.msra.mxu0 %v4382_v17  ;;  %1635 = vmatpush1.bf16.msra.mxu1 %v4384_v18 }
 0x4af   :  { %1595 = vmatprep.subr.bf16.mxu0 %v4388_v19  ;;  %1636 = vmatprep.subr.bf16.mxu1 %v4390_v20  ;;  %v5441_v20 = vcombine.low %v4513_v57, %v4519_v47 }
 0x4b2   :  { %1596 = vmatpush1.bf16.msra.mxu0 %v4394_v21  ;;  %1637 = vmatpush1.bf16.msra.mxu1 %v4396_v22 }
 0x4b3   :  { %1597 = vmatprep.subr.bf16.mxu0 %v4400_v23  ;;  %1638 = vmatprep.subr.bf16.mxu1 %v4402_v24 }
 0x4b6   :  { %1598 = vmatpush1.bf16.msra.mxu0 %v4406_v25  ;;  %1639 = vmatpush1.bf16.msra.mxu1 %v4408_v26 }
 0x4b7   :  { %1599 = vmatprep.subr.bf16.mxu0 %v4412_v27  ;;  %1640 = vmatprep.subr.bf16.mxu1 %v4414_v28 }
 0x4ba   :  { %1600 = vmatpush1.bf16.msra.mxu0 %v4418_v29  ;;  %1641 = vmatpush1.bf16.msra.mxu1 %v4420_v30 }
 0x4bb   :  { %1601 = vmatprep.subr.bf16.mxu0 %v4424_v31  ;;  %1642 = vmatprep.subr.bf16.mxu1 %v4426_v32 }
 0x4be   :  { %1602 = vmatpush1.bf16.msra.mxu0 %v4430_v33  ;;  %1643 = vmatpush1.bf16.msra.mxu1 %v4432_v34 }
 0x4bf   :  { %1728 = vmatprep.subr.bf16.mxu0 %v4700_v4  ;;  %1769 = vmatprep.subr.bf16.mxu1 %v4703_v5 }
 0x561   :  { %v1480_v6 = vpop.f32.mrf.mxu0  ;;  %v1521_v7 = vpop.f32.mrf.mxu1 }
 0x563   :  { %v1482_v8 = vpop.f32.mrf.mxu0  ;;  %v1523_v9 = vpop.f32.mrf.mxu1 }
 0x564   :  { %v1532_v10 = vcombine.low %v1480_v6, %v1482_v8  ;;  %v1533_v11 = vcombine.low %v1521_v7, %v1523_v9  ;;  %v4735_v6 = vld [vmem:[#allocation7 + $0xa4] ss:$16 sps:$4 sm:$0xff]   ;;  %v4738_v7 = vld [vmem:[#allocation7 + $0xac] ss:$16 sps:$4 sm:$0xff]   ;;  %v4741_v8 = vld [vmem:[#allocation7 + $0xa0] ss:$16 sps:$4 sm:$0xff]  }
 0x565   :  { %v1484_v12 = vpop.f32.mrf.mxu0  ;;  %v1525_v13 = vpop.f32.mrf.mxu1  ;;  %v4744_v9 = vld [vmem:[#allocation7 + $0xa8] ss:$16 sps:$4 sm:$0xff]  }
 0x566   :  { %v1540_v15 = vrot.slane %v1532_v10, %v4492_v55  ;;  %v1547_v16 = vrot.slane %v1533_v11, %v4492_v55  ;;  %v4747_v10 = vld [vmem:[#allocation7 + $0x84] ss:$16 sps:$4 sm:$0xff]   ;;  %v4750_v11 = vld [vmem:[#allocation7 + $0x8c] ss:$16 sps:$4 sm:$0xff]   ;;  %v4753_v12 = vld [vmem:[#allocation7 + $0x80] ss:$16 sps:$4 sm:$0xff]  }
 0x567   :  { %v1485_v17 = vpop.f32.mrf.mxu0  ;;  %v1526_v18 = vpop.f32.mrf.mxu1  ;;  %v4756_v13 = vld [vmem:[#allocation7 + $0x88] ss:$16 sps:$4 sm:$0xff]  }
 0x568   :  { %v1548_v19 = vcombine.low %v1540_v15, %v1547_v16  ;;  %v4759_v15 = vld [vmem:[#allocation7 + $0x64] ss:$16 sps:$4 sm:$0xff]   ;;  %v4762_v16 = vld [vmem:[#allocation7 + $0x6c] ss:$16 sps:$4 sm:$0xff]   ;;  %v4765_v17 = vld [vmem:[#allocation7 + $0x60] ss:$16 sps:$4 sm:$0xff]  }
 0x569   :  { %v4768_v18 = vld [vmem:[#allocation7 + $0x68] ss:$16 sps:$4 sm:$0xff]  }
 0x56a   :  { %v1550_v21 = vadd.f32 %v1548_v19, %v5441_v20 }
 0x56c   :  { %v3307_v22 = vmul.f32 -1.442695, %v1550_v21  ;;  %v1558_v53 = vrot.slane %v1550_v21, 2  ;;  %v1569_v50 = vrot.slane %v1550_v21, 6  ;;  %v1566_v2 = vrot.slane %v1550_v21, 4 }
 0x56e   :  { %3908 = vpow2.f32 %v3307_v22  ;;  %v3308_v35 = vmul.f32 -1.442695, %v1558_v53  ;;  %v3309_v42 = vmul.f32 -1.442695, %v1569_v50 }
 0x570   :  { %3910 = vpow2.f32 %v3308_v35 }
 0x571   :  { %3912 = vpow2.f32 %v3309_v42 }
 0x57b   :  { %v3909_v1 = vpop.eup %3908 }
 0x57c   :  { %v1554_v45 = vadd.f32 1.0, %v3909_v1 }
 0x57d   :  { %v3911_v39 = vpop.eup %3910 }
 0x57e   :  { %3914 = vrcp.f32 %v1554_v45  ;;  %v1563_v49 = vadd.f32 1.0, %v3911_v39  ;;  %v3913_v52 = vpop.eup %3912 }
 0x57f   :  { %3916 = vtanh.f32 %v1566_v2  ;;  %v1574_v37 = vadd.f32 1.0, %v3913_v52 }
 0x580   :  { %3918 = vrcp.f32 %v1563_v49 }
 0x581   :  { %3920 = vrcp.f32 %v1574_v37 }
 0x58b   :  { %v3915_v40 = vpop.eup %3914 }
 0x58c   :  { %v3917_v43 = vpop.eup %3916 }
 0x58d   :  { %v3919_v44 = vpop.eup %3918  ;;  %v1578_v38 = vmul.f32 %v3917_v43, %v3915_v40 }
 0x58e   :  { %v1577_v54 = vmul.f32 %v3919_v44, %v4665_v56  ;;  %v3921_v41 = vpop.eup %3920  ;;  %v4721_v56 = vld [vmem:[#allocation7 + $0xc4] ss:$16 sps:$4 sm:$0xff]  }
 0x590   :  { %v4712_v62 = vadd.f32 %v1578_v38, %v1577_v54 }
 0x592   :  { %3922 = vtanh.f32 %v4712_v62 }
 0x59f   :  { %v3923_v46 = vpop.eup %3922 }
 0x5a0   :  { %v1581_v51 = vmul.f32 %v3923_v46, %v3921_v41  ;;  %v4089_v46 = vld [vmem:[#allocation7 + $0x4c] ss:$16 sps:$4 sm:$0xff]  }
 0x5a2   :  { %1583 = vst [vmem:[#allocation3 + $0x8] sm:$0x3] %v1581_v51  ;;  %v1586_v59 = vpack.c.bf16 %v1581_v51, %v1581_v51  ;;  %v4090_v51 = vld [vmem:[#allocation7 + $0x40] ss:$16 sps:$4 sm:$0xff]  }
 0x5a4   :  { %1620 = vmatmul.mubr.bf16.vlgmr.msra.gmra.mxu0 %v1586_v59  ;;  %1661 = vmatmul.mubr.bf16.vlgmr.msra.gmra.mxu1 %v1586_v59  ;;  %v4091_v59 = vld [vmem:[#allocation7 + $0x48] ss:$16 sps:$4 sm:$0xff]  }
 0x5a5   :  { %1729 = vmatpush1.bf16.msra.mxu0 %v4715_v61  ;;  %1770 = vmatpush1.bf16.msra.mxu1 %v4718_v60 }
 0x5a6   :  { %1730 = vmatprep.subr.bf16.mxu0 %v4721_v56  ;;  %1771 = vmatprep.subr.bf16.mxu1 %v4724_v63 }
 0x5a7   :  { %1760 = vmatprep.mubr.bf16.mxu0 %v4261_v14  ;;  %1801 = vmatprep.mubr.bf16.mxu1 %v4261_v14 }
 0x5a9   :  { %1731 = vmatpush1.bf16.msra.mxu0 %v4729_v0  ;;  %1772 = vmatpush1.bf16.msra.mxu1 %v4732_v3 }
 0x5aa   :  { %1732 = vmatprep.subr.bf16.mxu0 %v4735_v6  ;;  %1773 = vmatprep.subr.bf16.mxu1 %v4738_v7 }
 0x5ad   :  { %1733 = vmatpush1.bf16.msra.mxu0 %v4741_v8  ;;  %1774 = vmatpush1.bf16.msra.mxu1 %v4744_v9 }
 0x5ae   :  { %1734 = vmatprep.subr.bf16.mxu0 %v4747_v10  ;;  %1775 = vmatprep.subr.bf16.mxu1 %v4750_v11 }
 0x5b1   :  { %1735 = vmatpush1.bf16.msra.mxu0 %v4753_v12  ;;  %1776 = vmatpush1.bf16.msra.mxu1 %v4756_v13 }
 0x5b2   :  { %1736 = vmatprep.subr.bf16.mxu0 %v4759_v15  ;;  %1777 = vmatprep.subr.bf16.mxu1 %v4762_v16 }
 0x5b5   :  { %1737 = vmatpush1.bf16.msra.mxu0 %v4765_v17  ;;  %1778 = vmatpush1.bf16.msra.mxu1 %v4768_v18 }
 0x5b6   :  { %1738 = vmatprep.subr.bf16.mxu0 %v4400_v23  ;;  %1779 = vmatprep.subr.bf16.mxu1 %v4402_v24 }
 0x5b9   :  { %1739 = vmatpush1.bf16.msra.mxu0 %v4406_v25  ;;  %1780 = vmatpush1.bf16.msra.mxu1 %v4408_v26 }
 0x5ba   :  { %1740 = vmatprep.subr.bf16.mxu0 %v4412_v27  ;;  %1781 = vmatprep.subr.bf16.mxu1 %v4414_v28 }
 0x5bd   :  { %1741 = vmatpush1.bf16.msra.mxu0 %v4418_v29  ;;  %1782 = vmatpush1.bf16.msra.mxu1 %v4420_v30 }
 0x5be   :  { %1742 = vmatprep.subr.bf16.mxu0 %v4424_v31  ;;  %1783 = vmatprep.subr.bf16.mxu1 %v4426_v32 }
 0x5c1   :  { %1743 = vmatpush1.bf16.msra.mxu0 %v4430_v33  ;;  %1784 = vmatpush1.bf16.msra.mxu1 %v4432_v34  ;;  %v5442_v34 = vcombine.high %v4513_v57, %v4519_v47 }
 0x5c2   :  { %1869 = vmatprep.subr.bf16.mxu0 %v4700_v4  ;;  %1910 = vmatprep.subr.bf16.mxu1 %v4703_v5 }
 0x664   :  { %v1621_v23 = vpop.f32.mrf.mxu0  ;;  %v1662_v24 = vpop.f32.mrf.mxu1 }
 0x666   :  { %v1623_v25 = vpop.f32.mrf.mxu0  ;;  %v1664_v26 = vpop.f32.mrf.mxu1 }
 0x667   :  { %v1673_v27 = vcombine.low %v1621_v23, %v1623_v25  ;;  %v1674_v28 = vcombine.low %v1662_v24, %v1664_v26  ;;  %v5443_v26 = vcombine.low %v4516_v58, %v4522_v48 }
 0x668   :  { %v1625_v29 = vpop.f32.mrf.mxu0  ;;  %v1666_v30 = vpop.f32.mrf.mxu1 }
 0x669   :  { %v1681_v31 = vrot.slane %v1673_v27, %v4492_v55  ;;  %v1688_v32 = vrot.slane %v1674_v28, %v4492_v55 }
 0x66a   :  { %v1626_v19 = vpop.f32.mrf.mxu0  ;;  %v1667_v33 = vpop.f32.mrf.mxu1 }
 0x66b   :  { %v1689_v20 = vcombine.low %v1681_v31, %v1688_v32 }
 0x66d   :  { %v1691_v4 = vadd.f32 %v1689_v20, %v5442_v34 }
 0x66f   :  { %v3310_v5 = vmul.f32 -1.442695, %v1691_v4  ;;  %v1699_v21 = vrot.slane %v1691_v4, 2  ;;  %v1710_v53 = vrot.slane %v1691_v4, 6  ;;  %v1707_v42 = vrot.slane %v1691_v4, 4 }
 0x671   :  { %3924 = vpow2.f32 %v3310_v5  ;;  %v3311_v22 = vmul.f32 -1.442695, %v1699_v21  ;;  %v3312_v35 = vmul.f32 -1.442695, %v1710_v53 }
 0x673   :  { %3926 = vpow2.f32 %v3311_v22 }
 0x674   :  { %3928 = vpow2.f32 %v3312_v35 }
 0x67e   :  { %v3925_v50 = vpop.eup %3924 }
 0x67f   :  { %v1695_v1 = vadd.f32 1.0, %v3925_v50 }
 0x680   :  { %v3927_v2 = vpop.eup %3926 }
 0x681   :  { %3930 = vrcp.f32 %v1695_v1  ;;  %v1704_v45 = vadd.f32 1.0, %v3927_v2  ;;  %v3929_v39 = vpop.eup %3928 }
 0x682   :  { %3932 = vtanh.f32 %v1707_v42  ;;  %v1715_v52 = vadd.f32 1.0, %v3929_v39 }
 0x683   :  { %3934 = vrcp.f32 %v1704_v45 }
 0x684   :  { %3936 = vrcp.f32 %v1715_v52  ;;  %v4837_v52 = vld [vmem:[%s5432_s5 + $0xb0] ss:$12 sps:$4 sm:$0xff]  }
 0x68e   :  { %v3931_v49 = vpop.eup %3930 }
 0x68f   :  { %v3933_v57 = vpop.eup %3932 }
 0x690   :  { %v3935_v47 = vpop.eup %3934  ;;  %v1719_v43 = vmul.f32 %v3933_v57, %v3931_v49  ;;  %v4827_v57 = vld [vmem:[%s5432_s5 + $0xac] ss:$12 sps:$4 sm:$0xff]  }
 0x691   :  { %v1718_v40 = vmul.f32 %v3935_v47, %v4712_v62  ;;  %v3937_v37 = vpop.eup %3936  ;;  %v4088_v62 = vld [vmem:[#allocation7 + $0x44] ss:$16 sps:$4 sm:$0xff]  }
 0x692   :  { %v4832_v47 = vld [vmem:[%s5432_s5 + $0xa8] ss:$12 sps:$4 sm:$0xff]  }
 0x693   :  { %v4791_v44 = vadd.f32 %v1719_v43, %v1718_v40  ;;  %v4263_v40 = vmov 0.0   ;;  %v4846_v43 = vld [vmem:[%s5432_s5 + $0x94] ss:$12 sps:$4 sm:$0xff]  }
 0x695   :  { %3938 = vtanh.f32 %v4791_v44 }
 0x6a2   :  { %v3939_v54 = vpop.eup %3938 }
 0x6a3   :  { %v1722_v38 = vmul.f32 %v3939_v54, %v3937_v37  ;;  %v4857_v37 = vld [vmem:[%s5432_s5 + $0x98] ss:$12 sps:$4 sm:$0xff]   ;;  %v4865_v54 = vld [vmem:[%s5432_s5 + $0x7c] ss:$12 sps:$4 sm:$0xff]  }
 0x6a5   :  { %1724 = vst [vmem:[#allocation3 + $0xa] sm:$0x3] %v1722_v38  ;;  %v1727_v41 = vpack.c.bf16 %v1722_v38, %v1722_v38  ;;  %v4871_v38 = vld [vmem:[%s5432_s5 + $0x78] ss:$12 sps:$4 sm:$0xff]  }
 0x6a7   :  { %1761 = vmatmul.mubr.bf16.vlgmr.msra.gmra.mxu0 %v1727_v41  ;;  %1802 = vmatmul.mubr.bf16.vlgmr.msra.gmra.mxu1 %v1727_v41  ;;  %v4876_v41 = vld [vmem:[%s5432_s5 + $0x80] ss:$12 sps:$4 sm:$0xff]  }
 0x6a8   :  { %1870 = vmatpush1.bf16.msra.mxu0 %v4715_v61  ;;  %1911 = vmatpush1.bf16.msra.mxu1 %v4718_v60  ;;  %v4092_v61 = vld [vmem:[#allocation7 + $0x24] ss:$16 sps:$4 sm:$0xff]   ;;  %v4093_v60 = vld [vmem:[#allocation7 + $0x2c] ss:$16 sps:$4 sm:$0xff]  }
 0x6a9   :  { %1871 = vmatprep.subr.bf16.mxu0 %v4721_v56  ;;  %1912 = vmatprep.subr.bf16.mxu1 %v4724_v63  ;;  %v4094_v56 = vld [vmem:[#allocation7 + $0x20] ss:$16 sps:$4 sm:$0xff]   ;;  %v4095_v63 = vld [vmem:[#allocation7 + $0x28] ss:$16 sps:$4 sm:$0xff]  }
 0x6aa   :  { %1901 = vmatprep.mubr.bf16.mxu0 %v4261_v14  ;;  %1942 = vmatprep.mubr.bf16.mxu1 %v4261_v14 }
 0x6ac   :  { %1872 = vmatpush1.bf16.msra.mxu0 %v4729_v0  ;;  %1913 = vmatpush1.bf16.msra.mxu1 %v4732_v3  ;;  %v4096_v0 = vld [vmem:[#allocation7 + $0x4] ss:$16 sps:$4 sm:$0xff]   ;;  %v4097_v3 = vld [vmem:[#allocation7 + $0xc] ss:$16 sps:$4 sm:$0xff]  }
 0x6ad   :  { %1873 = vmatprep.subr.bf16.mxu0 %v4735_v6  ;;  %1914 = vmatprep.subr.bf16.mxu1 %v4738_v7  ;;  %v4098_v6 = vld [vmem:[#allocation7] ss:$16 sps:$4 sm:$0xff]   ;;  %v4099_v7 = vld [vmem:[#allocation7 + $0x8] ss:$16 sps:$4 sm:$0xff]  }
 0x6b0   :  { %1874 = vmatpush1.bf16.msra.mxu0 %v4741_v8  ;;  %1915 = vmatpush1.bf16.msra.mxu1 %v4744_v9 }
 0x6b1   :  { %1875 = vmatprep.subr.bf16.mxu0 %v4747_v10  ;;  %1916 = vmatprep.subr.bf16.mxu1 %v4750_v11 }
 0x6b4   :  { %1876 = vmatpush1.bf16.msra.mxu0 %v4753_v12  ;;  %1917 = vmatpush1.bf16.msra.mxu1 %v4756_v13 }
 0x6b5   :  { %1877 = vmatprep.subr.bf16.mxu0 %v4759_v15  ;;  %1918 = vmatprep.subr.bf16.mxu1 %v4762_v16 }
 0x6b8   :  { %1878 = vmatpush1.bf16.msra.mxu0 %v4765_v17  ;;  %1919 = vmatpush1.bf16.msra.mxu1 %v4768_v18 }
 0x6b9   :  { %1879 = vmatprep.subr.bf16.mxu0 %v4088_v62  ;;  %1920 = vmatprep.subr.bf16.mxu1 %v4089_v46  ;;  %v4884_v62 = vld [vmem:[%s5432_s5 + $0x64] ss:$12 sps:$4 sm:$0xff]   ;;  %v4890_v46 = vld [vmem:[%s5432_s5 + $0x60] ss:$12 sps:$4 sm:$0xff]  }
 0x6bc   :  { %1880 = vmatpush1.bf16.msra.mxu0 %v4090_v51  ;;  %1921 = vmatpush1.bf16.msra.mxu1 %v4091_v59  ;;  %v4895_v51 = vld [vmem:[%s5432_s5 + $0x68] ss:$12 sps:$4 sm:$0xff]   ;;  %v4903_v59 = vld [vmem:[%s5432_s5 + $0x4c] ss:$12 sps:$4 sm:$0xff]  }
 0x6bd   :  { %1881 = vmatprep.subr.bf16.mxu0 %v4092_v61  ;;  %1922 = vmatprep.subr.bf16.mxu1 %v4093_v60  ;;  %v4909_v61 = vld [vmem:[%s5432_s5 + $0x48] ss:$12 sps:$4 sm:$0xff]   ;;  %v4914_v60 = vld [vmem:[%s5432_s5 + $0x50] ss:$12 sps:$4 sm:$0xff]  }
 0x6c0   :  { %1882 = vmatpush1.bf16.msra.mxu0 %v4094_v56  ;;  %1923 = vmatpush1.bf16.msra.mxu1 %v4095_v63  ;;  %v4922_v56 = vld [vmem:[%s5432_s5 + $0x34] ss:$12 sps:$4 sm:$0xff]   ;;  %v4928_v63 = vld [vmem:[%s5432_s5 + $0x30] ss:$12 sps:$4 sm:$0xff]  }
 0x6c1   :  { %1883 = vmatprep.subr.bf16.mxu0 %v4096_v0  ;;  %1924 = vmatprep.subr.bf16.mxu1 %v4097_v3  ;;  %v4933_v0 = vld [vmem:[%s5432_s5 + $0x38] ss:$12 sps:$4 sm:$0xff]   ;;  %v4939_v3 = vld [vmem:[%s5432_s5 + $0x1c] ss:$12 sps:$4 sm:$0xff]  }
 0x6c4   :  { %1884 = vmatpush1.bf16.msra.mxu0 %v4098_v6  ;;  %1925 = vmatpush1.bf16.msra.mxu1 %v4099_v7  ;;  %v4946_v6 = vld [vmem:[%s5432_s5 + $0x18] ss:$12 sps:$4 sm:$0xff]   ;;  %v4951_v7 = vld [vmem:[%s5432_s5 + $0x20] ss:$12 sps:$4 sm:$0xff]  }
 0x6c5   :  { %2189 = vmatprep.subr.bf16.mxu0 %v4827_v57  ;;  %3456 = vmatprep.subr.bf16.mxu1 %v4263_v40 }
 0x767   :  { %v1762_v8 = vpop.f32.mrf.mxu0  ;;  %v1803_v9 = vpop.f32.mrf.mxu1 }
 0x769   :  { %v1764_v10 = vpop.f32.mrf.mxu0  ;;  %v1805_v11 = vpop.f32.mrf.mxu1 }
 0x76a   :  { %v1814_v12 = vcombine.low %v1762_v8, %v1764_v10  ;;  %v1815_v13 = vcombine.low %v1803_v9, %v1805_v11  ;;  %v4958_v8 = vld [vmem:[%s5432_s5 + $0x4] ss:$12 sps:$4 sm:$0xff]   ;;  %v4967_v9 = vld [vmem:[%s5432_s5] ss:$12 sps:$4 sm:$0xff]   ;;  %v4972_v10 = vld [vmem:[%s5432_s5 + $0x8] ss:$12 sps:$4 sm:$0xff]  }
 0x76b   :  { %v1766_v15 = vpop.f32.mrf.mxu0  ;;  %v1807_v16 = vpop.f32.mrf.mxu1 }
 0x76c   :  { %v1822_v17 = vrot.slane %v1814_v12, %v4492_v55  ;;  %v1829_v18 = vrot.slane %v1815_v13, %v4492_v55 }
 0x76d   :  { %v1767_v23 = vpop.f32.mrf.mxu0  ;;  %v1808_v24 = vpop.f32.mrf.mxu1 }
 0x76e   :  { %v1830_v25 = vcombine.low %v1822_v17, %v1829_v18 }
 0x770   :  { %v1832_v27 = vadd.f32 %v1830_v25, %v5443_v26 }
 0x772   :  { %v3313_v28 = vmul.f32 -1.442695, %v1832_v27  ;;  %v1840_v29 = vrot.slane %v1832_v27, 2  ;;  %v1851_v31 = vrot.slane %v1832_v27, 6  ;;  %v1848_v33 = vrot.slane %v1832_v27, 4 }
 0x774   :  { %3940 = vpow2.f32 %v3313_v28  ;;  %v3314_v30 = vmul.f32 -1.442695, %v1840_v29  ;;  %v3315_v32 = vmul.f32 -1.442695, %v1851_v31  ;;  %v5444_v29 = vcombine.high %v4516_v58, %v4522_v48 }
 0x776   :  { %3942 = vpow2.f32 %v3314_v30 }
 0x777   :  { %3944 = vpow2.f32 %v3315_v32 }
 0x781   :  { %v3941_v19 = vpop.eup %3940 }
 0x782   :  { %v1836_v20 = vadd.f32 1.0, %v3941_v19 }
 0x783   :  { %v3943_v34 = vpop.eup %3942 }
 0x784   :  { %3946 = vrcp.f32 %v1836_v20  ;;  %v1845_v4 = vadd.f32 1.0, %v3943_v34  ;;  %v3945_v5 = vpop.eup %3944 }
 0x785   :  { %3948 = vtanh.f32 %v1848_v33  ;;  %v1856_v35 = vadd.f32 1.0, %v3945_v5 }
 0x786   :  { %3950 = vrcp.f32 %v1845_v4 }
 0x787   :  { %3952 = vrcp.f32 %v1856_v35 }
 0x791   :  { %v3947_v21 = vpop.eup %3946 }
 0x792   :  { %v3949_v22 = vpop.eup %3948 }
 0x793   :  { %v3951_v53 = vpop.eup %3950  ;;  %v1860_v42 = vmul.f32 %v3949_v22, %v3947_v21 }
 0x794   :  { %v1859_v50 = vmul.f32 %v3951_v53, %v4791_v44  ;;  %v3953_v2 = vpop.eup %3952  ;;  %v4852_v44 = vld [vmem:[%s5432_s5 + $0x90] ss:$12 sps:$4 sm:$0xff]  }
 0x796   :  { %v4820_v1 = vadd.f32 %v1860_v42, %v1859_v50 }
 0x798   :  { %3954 = vtanh.f32 %v4820_v1 }
 0x7a5   :  { %v3955_v45 = vpop.eup %3954 }
 0x7a6   :  { %v1863_v39 = vmul.f32 %v3955_v45, %v3953_v2 }
 0x7a8   :  { %1865 = vst [vmem:[#allocation3 + $0xc] sm:$0x3] %v1863_v39  ;;  %v1868_v49 = vpack.c.bf16 %v1863_v39, %v1863_v39 }
 0x7aa   :  { %1902 = vmatmul.mubr.bf16.vlgmr.msra.gmra.mxu0 %v1868_v49  ;;  %1943 = vmatmul.mubr.bf16.vlgmr.msra.gmra.mxu1 %v1868_v49 }
 0x7ab   :  { %2221 = vmatprep.mubr.bf16.mxu0 %v4261_v14  ;;  %2190 = vmatpush1.bf16.msra.mxu0 %v4832_v47 }
 0x7ac   :  { %3457 = vmatpush3.bf16.msra.mxu1 %v4837_v52  ;;  %2191 = vmatprep.subr.bf16.mxu0 %v4846_v43 }
 0x7ad   :  { %3458 = vmatprep.subr.bf16.mxu1 %v4263_v40  ;;  %3472 = vmatprep.mubr.msk.bf16.mxu1 %vm4264_vm0, %v4263_v40 }
 0x7af   :  { %2192 = vmatpush1.bf16.msra.mxu0 %v4852_v44 }
 0x7b0   :  { %3459 = vmatpush3.bf16.msra.mxu1 %v4857_v37  ;;  %2193 = vmatprep.subr.bf16.mxu0 %v4865_v54 }
 0x7b1   :  { %3460 = vmatprep.subr.bf16.mxu1 %v4263_v40 }
 0x7b3   :  { %2194 = vmatpush1.bf16.msra.mxu0 %v4871_v38 }
 0x7b4   :  { %3461 = vmatpush3.bf16.msra.mxu1 %v4876_v41  ;;  %2195 = vmatprep.subr.bf16.mxu0 %v4884_v62 }
 0x7b5   :  { %3462 = vmatprep.subr.bf16.mxu1 %v4263_v40 }
 0x7b7   :  { %2196 = vmatpush1.bf16.msra.mxu0 %v4890_v46 }
 0x7b8   :  { %3463 = vmatpush3.bf16.msra.mxu1 %v4895_v51  ;;  %2197 = vmatprep.subr.bf16.mxu0 %v4903_v59 }
 0x7b9   :  { %3464 = vmatprep.subr.bf16.mxu1 %v4263_v40 }
 0x7bb   :  { %2198 = vmatpush1.bf16.msra.mxu0 %v4909_v61 }
 0x7bc   :  { %3465 = vmatpush3.bf16.msra.mxu1 %v4914_v60  ;;  %2199 = vmatprep.subr.bf16.mxu0 %v4922_v56 }
 0x7bd   :  { %3466 = vmatprep.subr.bf16.mxu1 %v4263_v40 }
 0x7bf   :  { %2200 = vmatpush1.bf16.msra.mxu0 %v4928_v63 }
 0x7c0   :  { %3467 = vmatpush3.bf16.msra.mxu1 %v4933_v0  ;;  %2201 = vmatprep.subr.bf16.mxu0 %v4939_v3 }
 0x7c1   :  { %3468 = vmatprep.subr.bf16.mxu1 %v4263_v40 }
 0x7c3   :  { %2202 = vmatpush1.bf16.msra.mxu0 %v4946_v6 }
 0x7c4   :  { %3469 = vmatpush3.bf16.msra.mxu1 %v4951_v7  ;;  %2203 = vmatprep.subr.bf16.mxu0 %v4958_v8 }
 0x7c5   :  { %3470 = vmatprep.subr.bf16.mxu1 %v4263_v40 }
 0x7c7   :  { %2204 = vmatpush1.bf16.msra.mxu0 %v4967_v9 }
 0x7c8   :  { %3471 = vmatpush3.bf16.msra.mxu1 %v4972_v10  ;;  %2291 = vmatprep.subr.bf16.mxu0 %v4827_v57 }
 0x7c9   :  { %3476 = vmatprep.subr.bf16.mxu1 %v4263_v40 }
 0x86a   :  { %v1903_v11 = vpop.f32.mrf.mxu0  ;;  %v1944_v12 = vpop.f32.mrf.mxu1 }
 0x86c   :  { %v1905_v13 = vpop.f32.mrf.mxu0  ;;  %v1946_v15 = vpop.f32.mrf.mxu1 }
 0x86d   :  { %v1955_v16 = vcombine.low %v1903_v11, %v1905_v13  ;;  %v1956_v17 = vcombine.low %v1944_v12, %v1946_v15  ;;  %v2008_v12 = vld [vmem:[#allocation3] sm:$0x3] }
 0x86e   :  { %v1907_v18 = vpop.f32.mrf.mxu0  ;;  %v1948_v23 = vpop.f32.mrf.mxu1 }
 0x86f   :  { %v1963_v24 = vrot.slane %v1955_v16, %v4492_v55  ;;  %v1970_v25 = vrot.slane %v1956_v17, %v4492_v55  ;;  %v5445_v16 = vsub.s32 0, %v4476_v36 }
 0x870   :  { %v1908_v26 = vpop.f32.mrf.mxu0  ;;  %v1949_v27 = vpop.f32.mrf.mxu1 }
 0x871   :  { %v1971_v28 = vcombine.low %v1963_v24, %v1970_v25 }
 0x873   :  { %v1973_v30 = vadd.f32 %v1971_v28, %v5444_v29  ;;  %v5446_v28 = vsub.s32 2, %v4476_v36 }
 0x875   :  { %v3316_v31 = vmul.f32 -1.442695, %v1973_v30  ;;  %v1981_v32 = vrot.slane %v1973_v30, 2  ;;  %v1992_v33 = vrot.slane %v1973_v30, 6  ;;  %v1989_v4 = vrot.slane %v1973_v30, 4 }
 0x877   :  { %3956 = vpow2.f32 %v3316_v31  ;;  %v3317_v19 = vmul.f32 -1.442695, %v1981_v32  ;;  %v3318_v20 = vmul.f32 -1.442695, %v1992_v33 }
 0x879   :  { %3958 = vpow2.f32 %v3317_v19 }
 0x87a   :  { %3960 = vpow2.f32 %v3318_v20  ;;  %v5447_v20 = vsub.s32 1, %v4476_v36 }
 0x884   :  { %v3957_v34 = vpop.eup %3956 }
 0x885   :  { %v1977_v5 = vadd.f32 1.0, %v3957_v34 }
 0x886   :  { %v3959_v21 = vpop.eup %3958 }
 0x887   :  { %3962 = vrcp.f32 %v1977_v5  ;;  %v1986_v55 = vadd.f32 1.0, %v3959_v21  ;;  %v3961_v22 = vpop.eup %3960 }
 0x888   :  { %3964 = vtanh.f32 %v1989_v4  ;;  %v1997_v35 = vadd.f32 1.0, %v3961_v22 }
 0x889   :  { %3966 = vrcp.f32 %v1986_v55 }
 0x88a   :  { %3968 = vrcp.f32 %v1997_v35 }
 0x894   :  { %v3963_v53 = vpop.eup %3962 }
 0x895   :  { %v3965_v58 = vpop.eup %3964 }
 0x896   :  { %v3967_v48 = vpop.eup %3966  ;;  %v2001_v42 = vmul.f32 %v3965_v58, %v3963_v53 }
 0x897   :  { %v2000_v50 = vmul.f32 %v3967_v48, %v4820_v1  ;;  %v3969_v45 = vpop.eup %3968  ;;  %v2043_v1 = vld [vmem:[#allocation9] sm:$0x7] }
 0x898   :  { %v5023_v17 = vrot.slane %v2043_v1, %v5445_v16  ;;  %v5028_v29 = vrot.slane %v2043_v1, %v5446_v28  ;;  %v5033_v34 = vrot.slane %v2043_v1, %v5447_v20 }
 0x899   :  { %v2002_v2 = vadd.f32 %v2001_v42, %v2000_v50 }
 0x89b   :  { %3970 = vtanh.f32 %v2002_v2 }
 0x8a8   :  { %v3971_v39 = vpop.eup %3970 }
 0x8a9   :  { %v2004_v49 = vmul.f32 %v3971_v39, %v3969_v45 }
 0x8ab   :  { %2006 = vst [vmem:[#allocation3 + $0xe] sm:$0x3] %v2004_v49 }
 0x8b2   :  { %v2007_v11 = vld [vmem:[#allocation3 + $0xe] sm:$0x3] }
 0x8b3   :  { %v2010_v13 = vsel %vm2009_vm1, %v2007_v11, %v2008_v12 }
 0x8b4   :  { %v2044_v15 = vpack.c.bf16 %v2010_v13, %v2010_v13 }
 0x8b6   :  { %2222 = vmatmul.mubr.bf16.vlgmr.msra.gmra.mxu0 %v2044_v15  ;;  %3473 = vmatmul.mubr.bf16.vlgmr.msra.gmra.mxu1 %v2044_v15 }
 0x8b7   :  { %2292 = vmatpush1.bf16.msra.mxu0 %v4832_v47  ;;  %3477 = vmatpush3.bf16.msra.mxu1 %v4837_v52 }
 0x8b8   :  { %2293 = vmatprep.subr.bf16.mxu0 %v4846_v43  ;;  %3478 = vmatprep.subr.bf16.mxu1 %v4263_v40 }
 0x8b9   :  { %2323 = vmatprep.mubr.bf16.mxu0 %v4261_v14  ;;  %3492 = vmatprep.mubr.msk.bf16.mxu1 %vm4264_vm0, %v4263_v40 }
 0x8bb   :  { %2294 = vmatpush1.bf16.msra.mxu0 %v4852_v44  ;;  %3479 = vmatpush3.bf16.msra.mxu1 %v4857_v37 }
 0x8bc   :  { %2295 = vmatprep.subr.bf16.mxu0 %v4865_v54  ;;  %3480 = vmatprep.subr.bf16.mxu1 %v4263_v40 }
 0x8bf   :  { %2296 = vmatpush1.bf16.msra.mxu0 %v4871_v38  ;;  %3481 = vmatpush3.bf16.msra.mxu1 %v4876_v41 }
 0x8c0   :  { %2297 = vmatprep.subr.bf16.mxu0 %v4884_v62  ;;  %3482 = vmatprep.subr.bf16.mxu1 %v4263_v40 }
 0x8c3   :  { %2298 = vmatpush1.bf16.msra.mxu0 %v4890_v46  ;;  %3483 = vmatpush3.bf16.msra.mxu1 %v4895_v51 }
 0x8c4   :  { %2299 = vmatprep.subr.bf16.mxu0 %v4903_v59  ;;  %3484 = vmatprep.subr.bf16.mxu1 %v4263_v40 }
 0x8c7   :  { %2300 = vmatpush1.bf16.msra.mxu0 %v4909_v61  ;;  %3485 = vmatpush3.bf16.msra.mxu1 %v4914_v60 }
 0x8c8   :  { %2301 = vmatprep.subr.bf16.mxu0 %v4922_v56  ;;  %3486 = vmatprep.subr.bf16.mxu1 %v4263_v40 }
 0x8cb   :  { %2302 = vmatpush1.bf16.msra.mxu0 %v4928_v63  ;;  %3487 = vmatpush3.bf16.msra.mxu1 %v4933_v0 }
 0x8cc   :  { %2303 = vmatprep.subr.bf16.mxu0 %v4939_v3  ;;  %3488 = vmatprep.subr.bf16.mxu1 %v4263_v40 }
 0x8cf   :  { %2304 = vmatpush1.bf16.msra.mxu0 %v4946_v6  ;;  %3489 = vmatpush3.bf16.msra.mxu1 %v4951_v7 }
 0x8d0   :  { %2305 = vmatprep.subr.bf16.mxu0 %v4958_v8  ;;  %3490 = vmatprep.subr.bf16.mxu1 %v4263_v40 }
 0x8d3   :  { %2306 = vmatpush1.bf16.msra.mxu0 %v4967_v9  ;;  %3491 = vmatpush3.bf16.msra.mxu1 %v4972_v10 }
 0x8d4   :  { %2394 = vmatprep.subr.bf16.mxu0 %v4827_v57  ;;  %3496 = vmatprep.subr.bf16.mxu1 %v4263_v40 }
 0x976   :  { %v2223_v18 = vpop.f32.mrf.mxu0  ;;  %v2264_v23 = vpop.f32.mrf.mxu1 }
 0x977   :  { %v2224_v24 = vadd.f32 %v2223_v18, %v5023_v17  ;;  %v2265_v33 = vadd.f32 %v2264_v23, %v5028_v29 }
 0x978   :  { %v2225_v25 = vpop.f32.mrf.mxu0  ;;  %v3474_v26 = vpop.f32.mrf.mxu1 }
 0x979   :  { %v3343_v27 = vmul.f32 -1.442695, %v2224_v24  ;;  %v3344_v4 = vmul.f32 -1.442695, %v2265_v33  ;;  %v2226_v5 = vadd.f32 %v2225_v25, %v5033_v34  ;;  %v2286_v33 = vld [vmem:[%s5427_s0] sm:$0x3] }
 0x97a   :  { %v2227_v30 = vpop.f32.mrf.mxu0  ;;  %v2267_v31 = vpop.f32.mrf.mxu1 }
 0x97b   :  { %3972 = vpow2.f32 %v3343_v27 }
 0x97c   :  { %v2228_v32 = vpop.f32.mrf.mxu0  ;;  %v3475_v19 = vpop.f32.mrf.mxu1  ;;  %3974 = vpow2.f32 %v3344_v4 }
 0x97d   :  { %3976 = vtanh.f32 %v2226_v5  ;;  %v3347_v5 = vld [vmem:[%s5427_s0 + $0x2] sm:$0x3] }
 0x988   :  { %v3973_v21 = vpop.eup %3972 }
 0x989   :  { %v2273_v55 = vadd.f32 1.0, %v3973_v21  ;;  %v3975_v22 = vpop.eup %3974 }
 0x98a   :  { %v2280_v53 = vadd.f32 1.0, %v3975_v22  ;;  %v3977_v58 = vpop.eup %3976 }
 0x98b   :  { %3978 = vrcp.f32 %v2273_v55 }
 0x98c   :  { %3980 = vrcp.f32 %v2280_v53 }
 0x998   :  { %v3979_v48 = vpop.eup %3978 }
 0x999   :  { %v2283_v35 = vmul.f32 %v3979_v48, %v3977_v58  ;;  %v3981_v50 = vpop.eup %3980 }
 0x99b   :  { %3982 = vtanh.f32 %v2283_v35 }
 0x9a8   :  { %v3983_v42 = vpop.eup %3982 }
 0x9a9   :  { %v5036_v36 = vmul.f32 %v3983_v42, %v3981_v50 }
 0x9ab   :  { %v2290_v2 = vpack.c.bf16 %v5036_v36, %v5036_v36  ;;  %v2287_v21 = vsub.f32 %v2286_v33, %v5036_v36 }
 0x9ad   :  { %2324 = vmatmul.mubr.bf16.vlgmr.msra.gmra.mxu0 %v2290_v2  ;;  %3493 = vmatmul.mubr.bf16.vlgmr.msra.gmra.mxu1 %v2290_v2  ;;  %v2288_v58 = vmul.f32 %v2287_v21, %v2287_v21 }
 0x9ae   :  { %2395 = vmatpush1.bf16.msra.mxu0 %v4832_v47  ;;  %3497 = vmatpush3.bf16.msra.mxu1 %v4837_v52 }
 0x9af   :  { %2396 = vmatprep.subr.bf16.mxu0 %v4846_v43  ;;  %3498 = vmatprep.subr.bf16.mxu1 %v4263_v40 }
 0x9b0   :  { %2426 = vmatprep.mubr.bf16.mxu0 %v4261_v14  ;;  %3512 = vmatprep.mubr.msk.bf16.mxu1 %vm4264_vm0, %v4263_v40 }
 0x9b2   :  { %2397 = vmatpush1.bf16.msra.mxu0 %v4852_v44  ;;  %3499 = vmatpush3.bf16.msra.mxu1 %v4857_v37 }
 0x9b3   :  { %2398 = vmatprep.subr.bf16.mxu0 %v4865_v54  ;;  %3500 = vmatprep.subr.bf16.mxu1 %v4263_v40 }
 0x9b6   :  { %2399 = vmatpush1.bf16.msra.mxu0 %v4871_v38  ;;  %3501 = vmatpush3.bf16.msra.mxu1 %v4876_v41 }
 0x9b7   :  { %2400 = vmatprep.subr.bf16.mxu0 %v4884_v62  ;;  %3502 = vmatprep.subr.bf16.mxu1 %v4263_v40 }
 0x9ba   :  { %2401 = vmatpush1.bf16.msra.mxu0 %v4890_v46  ;;  %3503 = vmatpush3.bf16.msra.mxu1 %v4895_v51 }
 0x9bb   :  { %2402 = vmatprep.subr.bf16.mxu0 %v4903_v59  ;;  %3504 = vmatprep.subr.bf16.mxu1 %v4263_v40 }
 0x9be   :  { %2403 = vmatpush1.bf16.msra.mxu0 %v4909_v61  ;;  %3505 = vmatpush3.bf16.msra.mxu1 %v4914_v60 }
 0x9bf   :  { %2404 = vmatprep.subr.bf16.mxu0 %v4922_v56  ;;  %3506 = vmatprep.subr.bf16.mxu1 %v4263_v40 }
 0x9c2   :  { %2405 = vmatpush1.bf16.msra.mxu0 %v4928_v63  ;;  %3507 = vmatpush3.bf16.msra.mxu1 %v4933_v0 }
 0x9c3   :  { %2406 = vmatprep.subr.bf16.mxu0 %v4939_v3  ;;  %3508 = vmatprep.subr.bf16.mxu1 %v4263_v40 }
 0x9c6   :  { %2407 = vmatpush1.bf16.msra.mxu0 %v4946_v6  ;;  %3509 = vmatpush3.bf16.msra.mxu1 %v4951_v7 }
 0x9c7   :  { %2408 = vmatprep.subr.bf16.mxu0 %v4958_v8  ;;  %3510 = vmatprep.subr.bf16.mxu1 %v4263_v40 }
 0x9ca   :  { %2409 = vmatpush1.bf16.msra.mxu0 %v4967_v9  ;;  %3511 = vmatpush3.bf16.msra.mxu1 %v4972_v10 }
 0x9cb   :  { %2497 = vmatprep.subr.bf16.mxu0 %v4827_v57  ;;  %3516 = vmatprep.subr.bf16.mxu1 %v4263_v40 }
 0xa6d   :  { %v2325_v45 = vpop.f32.mrf.mxu0  ;;  %v2366_v39 = vpop.f32.mrf.mxu1 }
 0xa6e   :  { %v2326_v49 = vadd.f32 %v2325_v45, %v5023_v17  ;;  %v2367_v23 = vadd.f32 %v2366_v39, %v5028_v29 }
 0xa6f   :  { %v2327_v11 = vpop.f32.mrf.mxu0  ;;  %v3494_v12 = vpop.f32.mrf.mxu1 }
 0xa70   :  { %v3345_v13 = vmul.f32 -1.442695, %v2326_v49  ;;  %v3346_v24 = vmul.f32 -1.442695, %v2367_v23  ;;  %v2328_v25 = vadd.f32 %v2327_v11, %v5033_v34 }
 0xa71   :  { %v2329_v15 = vpop.f32.mrf.mxu0  ;;  %v2369_v1 = vpop.f32.mrf.mxu1 }
 0xa72   :  { %3984 = vpow2.f32 %v3345_v13 }
 0xa73   :  { %v2330_v16 = vpop.f32.mrf.mxu0  ;;  %v3495_v18 = vpop.f32.mrf.mxu1  ;;  %3986 = vpow2.f32 %v3346_v24 }
 0xa74   :  { %3988 = vtanh.f32 %v2328_v25 }
 0xa7f   :  { %v3985_v26 = vpop.eup %3984 }
 0xa80   :  { %v2375_v27 = vadd.f32 1.0, %v3985_v26  ;;  %v3987_v28 = vpop.eup %3986 }
 0xa81   :  { %v2382_v30 = vadd.f32 1.0, %v3987_v28  ;;  %v3989_v31 = vpop.eup %3988 }
 0xa82   :  { %3990 = vrcp.f32 %v2375_v27 }
 0xa83   :  { %3992 = vrcp.f32 %v2382_v30 }
 0xa8f   :  { %v3991_v32 = vpop.eup %3990 }
 0xa90   :  { %v2385_v19 = vmul.f32 %v3991_v32, %v3989_v31  ;;  %v3993_v20 = vpop.eup %3992  ;;  %v3350_v32 = vld [vmem:[%s5427_s0 + $0x4] sm:$0x3] }
 0xa92   :  { %3994 = vtanh.f32 %v2385_v19 }
 0xa9f   :  { %v3995_v4 = vpop.eup %3994 }
 0xaa0   :  { %v2387_v55 = vmul.f32 %v3995_v4, %v3993_v20 }
 0xaa2   :  { %v2390_v22 = vsub.f32 %v3347_v5, %v2387_v55  ;;  %v2393_v53 = vpack.c.bf16 %v2387_v55, %v2387_v55 }
 0xaa4   :  { %v2391_v48 = vmul.f32 %v2390_v22, %v2390_v22  ;;  %2427 = vmatmul.mubr.bf16.vlgmr.msra.gmra.mxu0 %v2393_v53  ;;  %3513 = vmatmul.mubr.bf16.vlgmr.msra.gmra.mxu1 %v2393_v53 }
 0xaa5   :  { %2498 = vmatpush1.bf16.msra.mxu0 %v4832_v47  ;;  %3517 = vmatpush3.bf16.msra.mxu1 %v4837_v52 }
 0xaa6   :  { %2499 = vmatprep.subr.bf16.mxu0 %v4846_v43  ;;  %3518 = vmatprep.subr.bf16.mxu1 %v4263_v40  ;;  %v5089_v35 = vadd.f32 %v2391_v48, %v2288_v58 }
 0xaa7   :  { %2529 = vmatprep.mubr.bf16.mxu0 %v4261_v14  ;;  %3532 = vmatprep.mubr.msk.bf16.mxu1 %vm4264_vm0, %v4263_v40 }
 0xaa9   :  { %2500 = vmatpush1.bf16.msra.mxu0 %v4852_v44  ;;  %3519 = vmatpush3.bf16.msra.mxu1 %v4857_v37 }
 0xaaa   :  { %2501 = vmatprep.subr.bf16.mxu0 %v4865_v54  ;;  %3520 = vmatprep.subr.bf16.mxu1 %v4263_v40 }
 0xaad   :  { %2502 = vmatpush1.bf16.msra.mxu0 %v4871_v38  ;;  %3521 = vmatpush3.bf16.msra.mxu1 %v4876_v41 }
 0xaae   :  { %2503 = vmatprep.subr.bf16.mxu0 %v4884_v62  ;;  %3522 = vmatprep.subr.bf16.mxu1 %v4263_v40 }
 0xab1   :  { %2504 = vmatpush1.bf16.msra.mxu0 %v4890_v46  ;;  %3523 = vmatpush3.bf16.msra.mxu1 %v4895_v51 }
 0xab2   :  { %2505 = vmatprep.subr.bf16.mxu0 %v4903_v59  ;;  %3524 = vmatprep.subr.bf16.mxu1 %v4263_v40 }
 0xab5   :  { %2506 = vmatpush1.bf16.msra.mxu0 %v4909_v61  ;;  %3525 = vmatpush3.bf16.msra.mxu1 %v4914_v60 }
 0xab6   :  { %2507 = vmatprep.subr.bf16.mxu0 %v4922_v56  ;;  %3526 = vmatprep.subr.bf16.mxu1 %v4263_v40 }
 0xab9   :  { %2508 = vmatpush1.bf16.msra.mxu0 %v4928_v63  ;;  %3527 = vmatpush3.bf16.msra.mxu1 %v4933_v0 }
 0xaba   :  { %2509 = vmatprep.subr.bf16.mxu0 %v4939_v3  ;;  %3528 = vmatprep.subr.bf16.mxu1 %v4263_v40 }
 0xabd   :  { %2510 = vmatpush1.bf16.msra.mxu0 %v4946_v6  ;;  %3529 = vmatpush3.bf16.msra.mxu1 %v4951_v7 }
 0xabe   :  { %2511 = vmatprep.subr.bf16.mxu0 %v4958_v8  ;;  %3530 = vmatprep.subr.bf16.mxu1 %v4263_v40 }
 0xac1   :  { %2512 = vmatpush1.bf16.msra.mxu0 %v4967_v9  ;;  %3531 = vmatpush3.bf16.msra.mxu1 %v4972_v10 }
 0xac2   :  { %2600 = vmatprep.subr.bf16.mxu0 %v4827_v57  ;;  %3536 = vmatprep.subr.bf16.mxu1 %v4263_v40 }
 0xb64   :  { %v2428_v50 = vpop.f32.mrf.mxu0  ;;  %v2469_v42 = vpop.f32.mrf.mxu1 }
 0xb65   :  { %v2429_v36 = vadd.f32 %v2428_v50, %v5023_v17  ;;  %v2470_v15 = vadd.f32 %v2469_v42, %v5028_v29 }
 0xb66   :  { %v2430_v2 = vpop.f32.mrf.mxu0  ;;  %v3514_v45 = vpop.f32.mrf.mxu1 }
 0xb67   :  { %v3348_v39 = vmul.f32 -1.442695, %v2429_v36  ;;  %v3349_v1 = vmul.f32 -1.442695, %v2470_v15  ;;  %v2431_v16 = vadd.f32 %v2430_v2, %v5033_v34 }
 0xb68   :  { %v2432_v49 = vpop.f32.mrf.mxu0  ;;  %v2472_v11 = vpop.f32.mrf.mxu1 }
 0xb69   :  { %3996 = vpow2.f32 %v3348_v39 }
 0xb6a   :  { %v2433_v12 = vpop.f32.mrf.mxu0  ;;  %v3515_v13 = vpop.f32.mrf.mxu1  ;;  %3998 = vpow2.f32 %v3349_v1 }
 0xb6b   :  { %4000 = vtanh.f32 %v2431_v16 }
 0xb76   :  { %v3997_v18 = vpop.eup %3996 }
 0xb77   :  { %v2478_v23 = vadd.f32 1.0, %v3997_v18  ;;  %v3999_v24 = vpop.eup %3998 }
 0xb78   :  { %v2485_v25 = vadd.f32 1.0, %v3999_v24  ;;  %v4001_v26 = vpop.eup %4000  ;;  %v3353_v24 = vld [vmem:[%s5427_s0 + $0x6] sm:$0x3] }
 0xb79   :  { %4002 = vrcp.f32 %v2478_v23 }
 0xb7a   :  { %4004 = vrcp.f32 %v2485_v25 }
 0xb86   :  { %v4003_v27 = vpop.eup %4002 }
 0xb87   :  { %v2488_v28 = vmul.f32 %v4003_v27, %v4001_v26  ;;  %v4005_v30 = vpop.eup %4004 }
 0xb89   :  { %4006 = vtanh.f32 %v2488_v28 }
 0xb96   :  { %v4007_v31 = vpop.eup %4006 }
 0xb97   :  { %v2490_v19 = vmul.f32 %v4007_v31, %v4005_v30 }
 0xb99   :  { %v2493_v33 = vsub.f32 %v3350_v32, %v2490_v19  ;;  %v2496_v20 = vpack.c.bf16 %v2490_v19, %v2490_v19 }
 0xb9b   :  { %v2494_v4 = vmul.f32 %v2493_v33, %v2493_v33  ;;  %2530 = vmatmul.mubr.bf16.vlgmr.msra.gmra.mxu0 %v2496_v20  ;;  %3533 = vmatmul.mubr.bf16.vlgmr.msra.gmra.mxu1 %v2496_v20 }
 0xb9c   :  { %2601 = vmatpush1.bf16.msra.mxu0 %v4832_v47  ;;  %3537 = vmatpush3.bf16.msra.mxu1 %v4837_v52 }
 0xb9d   :  { %2602 = vmatprep.subr.bf16.mxu0 %v4846_v43  ;;  %3538 = vmatprep.subr.bf16.mxu1 %v4263_v40  ;;  %v5133_v5 = vadd.f32 %v2494_v4, %v5089_v35 }
 0xb9e   :  { %2632 = vmatprep.mubr.bf16.mxu0 %v4261_v14  ;;  %3552 = vmatprep.mubr.msk.bf16.mxu1 %vm4264_vm0, %v4263_v40 }
 0xba0   :  { %2603 = vmatpush1.bf16.msra.mxu0 %v4852_v44  ;;  %3539 = vmatpush3.bf16.msra.mxu1 %v4857_v37 }
 0xba1   :  { %2604 = vmatprep.subr.bf16.mxu0 %v4865_v54  ;;  %3540 = vmatprep.subr.bf16.mxu1 %v4263_v40 }
 0xba4   :  { %2605 = vmatpush1.bf16.msra.mxu0 %v4871_v38  ;;  %3541 = vmatpush3.bf16.msra.mxu1 %v4876_v41 }
 0xba5   :  { %2606 = vmatprep.subr.bf16.mxu0 %v4884_v62  ;;  %3542 = vmatprep.subr.bf16.mxu1 %v4263_v40 }
 0xba8   :  { %2607 = vmatpush1.bf16.msra.mxu0 %v4890_v46  ;;  %3543 = vmatpush3.bf16.msra.mxu1 %v4895_v51 }
 0xba9   :  { %2608 = vmatprep.subr.bf16.mxu0 %v4903_v59  ;;  %3544 = vmatprep.subr.bf16.mxu1 %v4263_v40 }
 0xbac   :  { %2609 = vmatpush1.bf16.msra.mxu0 %v4909_v61  ;;  %3545 = vmatpush3.bf16.msra.mxu1 %v4914_v60 }
 0xbad   :  { %2610 = vmatprep.subr.bf16.mxu0 %v4922_v56  ;;  %3546 = vmatprep.subr.bf16.mxu1 %v4263_v40 }
 0xbb0   :  { %2611 = vmatpush1.bf16.msra.mxu0 %v4928_v63  ;;  %3547 = vmatpush3.bf16.msra.mxu1 %v4933_v0 }
 0xbb1   :  { %2612 = vmatprep.subr.bf16.mxu0 %v4939_v3  ;;  %3548 = vmatprep.subr.bf16.mxu1 %v4263_v40 }
 0xbb4   :  { %2613 = vmatpush1.bf16.msra.mxu0 %v4946_v6  ;;  %3549 = vmatpush3.bf16.msra.mxu1 %v4951_v7 }
 0xbb5   :  { %2614 = vmatprep.subr.bf16.mxu0 %v4958_v8  ;;  %3550 = vmatprep.subr.bf16.mxu1 %v4263_v40 }
 0xbb8   :  { %2615 = vmatpush1.bf16.msra.mxu0 %v4967_v9  ;;  %3551 = vmatpush3.bf16.msra.mxu1 %v4972_v10 }
 0xbb9   :  { %2703 = vmatprep.subr.bf16.mxu0 %v4827_v57  ;;  %3556 = vmatprep.subr.bf16.mxu1 %v4263_v40 }
 0xc5b   :  { %v2531_v21 = vpop.f32.mrf.mxu0  ;;  %v2572_v55 = vpop.f32.mrf.mxu1 }
 0xc5c   :  { %v2532_v22 = vadd.f32 %v2531_v21, %v5023_v17  ;;  %v2573_v2 = vadd.f32 %v2572_v55, %v5028_v29 }
 0xc5d   :  { %v2533_v53 = vpop.f32.mrf.mxu0  ;;  %v3534_v58 = vpop.f32.mrf.mxu1 }
 0xc5e   :  { %v3351_v48 = vmul.f32 -1.442695, %v2532_v22  ;;  %v3352_v45 = vmul.f32 -1.442695, %v2573_v2  ;;  %v2534_v39 = vadd.f32 %v2533_v53, %v5033_v34 }
 0xc5f   :  { %v2535_v35 = vpop.f32.mrf.mxu0  ;;  %v2575_v50 = vpop.f32.mrf.mxu1 }
 0xc60   :  { %4008 = vpow2.f32 %v3351_v48 }
 0xc61   :  { %v2536_v42 = vpop.f32.mrf.mxu0  ;;  %v3535_v36 = vpop.f32.mrf.mxu1  ;;  %4010 = vpow2.f32 %v3352_v45 }
 0xc62   :  { %4012 = vtanh.f32 %v2534_v39 }
 0xc6d   :  { %v4009_v49 = vpop.eup %4008 }
 0xc6e   :  { %v2581_v11 = vadd.f32 1.0, %v4009_v49  ;;  %v4011_v12 = vpop.eup %4010 }
 0xc6f   :  { %v2588_v13 = vadd.f32 1.0, %v4011_v12  ;;  %v4013_v15 = vpop.eup %4012  ;;  %v3356_v12 = vld [vmem:[%s5427_s0 + $0x8] sm:$0x3] }
 0xc70   :  { %4014 = vrcp.f32 %v2581_v11 }
 0xc71   :  { %4016 = vrcp.f32 %v2588_v13 }
 0xc7d   :  { %v4015_v1 = vpop.eup %4014 }
 0xc7e   :  { %v2591_v16 = vmul.f32 %v4015_v1, %v4013_v15  ;;  %v4017_v18 = vpop.eup %4016 }
 0xc80   :  { %4018 = vtanh.f32 %v2591_v16 }
 0xc8d   :  { %v4019_v23 = vpop.eup %4018 }
 0xc8e   :  { %v2593_v25 = vmul.f32 %v4019_v23, %v4017_v18 }
 0xc90   :  { %v2596_v26 = vsub.f32 %v3353_v24, %v2593_v25  ;;  %v2599_v27 = vpack.c.bf16 %v2593_v25, %v2593_v25 }
 0xc92   :  { %2633 = vmatmul.mubr.bf16.vlgmr.msra.gmra.mxu0 %v2599_v27  ;;  %3553 = vmatmul.mubr.bf16.vlgmr.msra.gmra.mxu1 %v2599_v27  ;;  %v2597_v28 = vmul.f32 %v2596_v26, %v2596_v26  ;;  %v4100_v26 = vld [vmem:[%s5432_s5 + $0xa8] ss:$12 sps:$4 sm:$0xff]   ;;  %v4101_v27 = vld [vmem:[%s5432_s5 + $0xb0] ss:$12 sps:$4 sm:$0xff]  }
 0xc93   :  { %2704 = vmatpush1.bf16.msra.mxu0 %v4832_v47  ;;  %3557 = vmatpush3.bf16.msra.mxu1 %v4837_v52 }
 0xc94   :  { %2705 = vmatprep.subr.bf16.mxu0 %v4846_v43  ;;  %3558 = vmatprep.subr.bf16.mxu1 %v4263_v40  ;;  %v5177_v30 = vadd.f32 %v2597_v28, %v5133_v5  ;;  %v4102_v28 = vld [vmem:[%s5432_s5 + $0x94] ss:$12 sps:$4 sm:$0xff]  }
 0xc95   :  { %2735 = vmatprep.mubr.bf16.mxu0 %v4261_v14  ;;  %3572 = vmatprep.mubr.msk.bf16.mxu1 %vm4264_vm0, %v4263_v40 }
 0xc97   :  { %2706 = vmatpush1.bf16.msra.mxu0 %v4852_v44  ;;  %3559 = vmatpush3.bf16.msra.mxu1 %v4857_v37 }
 0xc98   :  { %2707 = vmatprep.subr.bf16.mxu0 %v4865_v54  ;;  %3560 = vmatprep.subr.bf16.mxu1 %v4263_v40 }
 0xc9b   :  { %2708 = vmatpush1.bf16.msra.mxu0 %v4871_v38  ;;  %3561 = vmatpush3.bf16.msra.mxu1 %v4876_v41 }
 0xc9c   :  { %2709 = vmatprep.subr.bf16.mxu0 %v4884_v62  ;;  %3562 = vmatprep.subr.bf16.mxu1 %v4263_v40 }
 0xc9f   :  { %2710 = vmatpush1.bf16.msra.mxu0 %v4890_v46  ;;  %3563 = vmatpush3.bf16.msra.mxu1 %v4895_v51 }
 0xca0   :  { %2711 = vmatprep.subr.bf16.mxu0 %v4903_v59  ;;  %3564 = vmatprep.subr.bf16.mxu1 %v4263_v40 }
 0xca3   :  { %2712 = vmatpush1.bf16.msra.mxu0 %v4909_v61  ;;  %3565 = vmatpush3.bf16.msra.mxu1 %v4914_v60 }
 0xca4   :  { %2713 = vmatprep.subr.bf16.mxu0 %v4922_v56  ;;  %3566 = vmatprep.subr.bf16.mxu1 %v4263_v40 }
 0xca7   :  { %2714 = vmatpush1.bf16.msra.mxu0 %v4928_v63  ;;  %3567 = vmatpush3.bf16.msra.mxu1 %v4933_v0 }
 0xca8   :  { %2715 = vmatprep.subr.bf16.mxu0 %v4939_v3  ;;  %3568 = vmatprep.subr.bf16.mxu1 %v4263_v40 }
 0xcab   :  { %2716 = vmatpush1.bf16.msra.mxu0 %v4946_v6  ;;  %3569 = vmatpush3.bf16.msra.mxu1 %v4951_v7 }
 0xcac   :  { %2717 = vmatprep.subr.bf16.mxu0 %v4958_v8  ;;  %3570 = vmatprep.subr.bf16.mxu1 %v4263_v40 }
 0xcaf   :  { %2718 = vmatpush1.bf16.msra.mxu0 %v4967_v9  ;;  %3571 = vmatpush3.bf16.msra.mxu1 %v4972_v10 }
 0xcb0   :  { %2806 = vmatprep.subr.bf16.mxu0 %v4827_v57  ;;  %3576 = vmatprep.subr.bf16.mxu1 %v4263_v40 }
 0xd52   :  { %v2634_v31 = vpop.f32.mrf.mxu0  ;;  %v2675_v32 = vpop.f32.mrf.mxu1 }
 0xd53   :  { %v2635_v19 = vadd.f32 %v2634_v31, %v5023_v17  ;;  %v2676_v53 = vadd.f32 %v2675_v32, %v5028_v29  ;;  %v4103_v31 = vld [vmem:[%s5432_s5 + $0x90] ss:$12 sps:$4 sm:$0xff]   ;;  %v4104_v32 = vld [vmem:[%s5432_s5 + $0x98] ss:$12 sps:$4 sm:$0xff]  }
 0xd54   :  { %v2636_v33 = vpop.f32.mrf.mxu0  ;;  %v3554_v20 = vpop.f32.mrf.mxu1 }
 0xd55   :  { %v3354_v4 = vmul.f32 -1.442695, %v2635_v19  ;;  %v3355_v58 = vmul.f32 -1.442695, %v2676_v53  ;;  %v2637_v48 = vadd.f32 %v2636_v33, %v5033_v34  ;;  %v4105_v19 = vld [vmem:[%s5432_s5 + $0x7c] ss:$12 sps:$4 sm:$0xff]  }
 0xd56   :  { %v2638_v5 = vpop.f32.mrf.mxu0  ;;  %v2678_v21 = vpop.f32.mrf.mxu1  ;;  %v4107_v33 = vld [vmem:[%s5432_s5 + $0x80] ss:$12 sps:$4 sm:$0xff]   ;;  %v4108_v20 = vld [vmem:[%s5432_s5 + $0x64] ss:$12 sps:$4 sm:$0xff]  }
 0xd57   :  { %4020 = vpow2.f32 %v3354_v4  ;;  %v4109_v4 = vld [vmem:[%s5432_s5 + $0x60] ss:$12 sps:$4 sm:$0xff]   ;;  %v4110_v5 = vld [vmem:[%s5432_s5 + $0x68] ss:$12 sps:$4 sm:$0xff]  }
 0xd58   :  { %v2639_v55 = vpop.f32.mrf.mxu0  ;;  %v3555_v22 = vpop.f32.mrf.mxu1  ;;  %4022 = vpow2.f32 %v3355_v58  ;;  %v4111_v21 = vld [vmem:[%s5432_s5 + $0x4c] ss:$12 sps:$4 sm:$0xff]   ;;  %v4114_v53 = vld [vmem:[%s5432_s5 + $0x34] ss:$12 sps:$4 sm:$0xff]   ;;  %v4115_v58 = vld [vmem:[%s5432_s5 + $0x30] ss:$12 sps:$4 sm:$0xff]  }
 0xd59   :  { %4024 = vtanh.f32 %v2637_v48  ;;  %v4112_v55 = vld [vmem:[%s5432_s5 + $0x48] ss:$12 sps:$4 sm:$0xff]   ;;  %v4113_v22 = vld [vmem:[%s5432_s5 + $0x50] ss:$12 sps:$4 sm:$0xff]   ;;  %v4116_v48 = vld [vmem:[%s5432_s5 + $0x38] ss:$12 sps:$4 sm:$0xff]  }
 0xd64   :  { %v4021_v35 = vpop.eup %4020 }
 0xd65   :  { %v2684_v50 = vadd.f32 1.0, %v4021_v35  ;;  %v4023_v42 = vpop.eup %4022  ;;  %v4117_v35 = vld [vmem:[%s5432_s5 + $0x1c] ss:$12 sps:$4 sm:$0xff]  }
 0xd66   :  { %v2691_v36 = vadd.f32 1.0, %v4023_v42  ;;  %v4025_v2 = vpop.eup %4024  ;;  %v4119_v42 = vld [vmem:[%s5432_s5 + $0x20] ss:$12 sps:$4 sm:$0xff]  }
 0xd67   :  { %4026 = vrcp.f32 %v2684_v50  ;;  %v4118_v50 = vld [vmem:[%s5432_s5 + $0x18] ss:$12 sps:$4 sm:$0xff]  }
 0xd68   :  { %4028 = vrcp.f32 %v2691_v36  ;;  %v4120_v36 = vld [vmem:[%s5432_s5 + $0x4] ss:$12 sps:$4 sm:$0xff]  }
 0xd74   :  { %v4027_v45 = vpop.eup %4026 }
 0xd75   :  { %v2694_v39 = vmul.f32 %v4027_v45, %v4025_v2  ;;  %v4029_v49 = vpop.eup %4028  ;;  %v4121_v2 = vld [vmem:[%s5432_s5] ss:$12 sps:$4 sm:$0xff]   ;;  %v4122_v45 = vld [vmem:[%s5432_s5 + $0x8] ss:$12 sps:$4 sm:$0xff]  }
 0xd77   :  { %4030 = vtanh.f32 %v2694_v39 }
 0xd84   :  { %v4031_v11 = vpop.eup %4030 }
 0xd85   :  { %v2696_v13 = vmul.f32 %v4031_v11, %v4029_v49 }
 0xd87   :  { %v2702_v15 = vpack.c.bf16 %v2696_v13, %v2696_v13  ;;  %v2699_v1 = vsub.f32 %v3356_v12, %v2696_v13 }
 0xd89   :  { %2736 = vmatmul.mubr.bf16.vlgmr.msra.gmra.mxu0 %v2702_v15  ;;  %3573 = vmatmul.mubr.bf16.vlgmr.msra.gmra.mxu1 %v2702_v15  ;;  %v2700_v16 = vmul.f32 %v2699_v1, %v2699_v1 }
 0xd8a   :  { %2807 = vmatpush1.bf16.msra.mxu0 %v4832_v47  ;;  %3577 = vmatpush3.bf16.msra.mxu1 %v4837_v52 }
 0xd8b   :  { %2808 = vmatprep.subr.bf16.mxu0 %v4846_v43  ;;  %3578 = vmatprep.subr.bf16.mxu1 %v4263_v40  ;;  %v5221_v18 = vadd.f32 %v2700_v16, %v5177_v30 }
 0xd8c   :  { %2838 = vmatprep.mubr.bf16.mxu0 %v4261_v14  ;;  %3592 = vmatprep.mubr.msk.bf16.mxu1 %vm4264_vm0, %v4263_v40 }
 0xd8e   :  { %2809 = vmatpush1.bf16.msra.mxu0 %v4852_v44  ;;  %3579 = vmatpush3.bf16.msra.mxu1 %v4857_v37 }
 0xd8f   :  { %2810 = vmatprep.subr.bf16.mxu0 %v4865_v54  ;;  %3580 = vmatprep.subr.bf16.mxu1 %v4263_v40 }
 0xd92   :  { %2811 = vmatpush1.bf16.msra.mxu0 %v4871_v38  ;;  %3581 = vmatpush3.bf16.msra.mxu1 %v4876_v41 }
 0xd93   :  { %2812 = vmatprep.subr.bf16.mxu0 %v4884_v62  ;;  %3582 = vmatprep.subr.bf16.mxu1 %v4263_v40 }
 0xd96   :  { %2813 = vmatpush1.bf16.msra.mxu0 %v4890_v46  ;;  %3583 = vmatpush3.bf16.msra.mxu1 %v4895_v51 }
 0xd97   :  { %2814 = vmatprep.subr.bf16.mxu0 %v4903_v59  ;;  %3584 = vmatprep.subr.bf16.mxu1 %v4263_v40 }
 0xd9a   :  { %2815 = vmatpush1.bf16.msra.mxu0 %v4909_v61  ;;  %3585 = vmatpush3.bf16.msra.mxu1 %v4914_v60 }
 0xd9b   :  { %2816 = vmatprep.subr.bf16.mxu0 %v4922_v56  ;;  %3586 = vmatprep.subr.bf16.mxu1 %v4263_v40 }
 0xd9e   :  { %2817 = vmatpush1.bf16.msra.mxu0 %v4928_v63  ;;  %3587 = vmatpush3.bf16.msra.mxu1 %v4933_v0 }
 0xd9f   :  { %2818 = vmatprep.subr.bf16.mxu0 %v4939_v3  ;;  %3588 = vmatprep.subr.bf16.mxu1 %v4263_v40 }
 0xda2   :  { %2819 = vmatpush1.bf16.msra.mxu0 %v4946_v6  ;;  %3589 = vmatpush3.bf16.msra.mxu1 %v4951_v7 }
 0xda3   :  { %2820 = vmatprep.subr.bf16.mxu0 %v4958_v8  ;;  %3590 = vmatprep.subr.bf16.mxu1 %v4263_v40 }
 0xda6   :  { %2821 = vmatpush1.bf16.msra.mxu0 %v4967_v9  ;;  %3591 = vmatpush3.bf16.msra.mxu1 %v4972_v10  ;;  %v3359_v9 = vld [vmem:[%s5427_s0 + $0xa] sm:$0x3] }
 0xda7   :  { %2909 = vmatprep.subr.bf16.mxu0 %v4827_v57  ;;  %3596 = vmatprep.subr.bf16.mxu1 %v4263_v40 }
 0xe49   :  { %v2737_v47 = vpop.f32.mrf.mxu0  ;;  %v2778_v52 = vpop.f32.mrf.mxu1 }
 0xe4a   :  { %v2738_v43 = vadd.f32 %v2737_v47, %v5023_v17  ;;  %v2779_v51 = vadd.f32 %v2778_v52, %v5028_v29 }
 0xe4b   :  { %v2739_v44 = vpop.f32.mrf.mxu0  ;;  %v3574_v37 = vpop.f32.mrf.mxu1 }
 0xe4c   :  { %v3357_v54 = vmul.f32 -1.442695, %v2738_v43  ;;  %v3358_v59 = vmul.f32 -1.442695, %v2779_v51  ;;  %v2740_v57 = vadd.f32 %v2739_v44, %v5033_v34 }
 0xe4d   :  { %v2741_v38 = vpop.f32.mrf.mxu0  ;;  %v2781_v41 = vpop.f32.mrf.mxu1 }
 0xe4e   :  { %4032 = vpow2.f32 %v3357_v54 }
 0xe4f   :  { %v2742_v62 = vpop.f32.mrf.mxu0  ;;  %v3575_v46 = vpop.f32.mrf.mxu1  ;;  %4034 = vpow2.f32 %v3358_v59 }
 0xe50   :  { %4036 = vtanh.f32 %v2740_v57 }
 0xe5b   :  { %v4033_v61 = vpop.eup %4032 }
 0xe5c   :  { %v2787_v60 = vadd.f32 1.0, %v4033_v61  ;;  %v4035_v56 = vpop.eup %4034  ;;  %v3362_v61 = vld [vmem:[%s5427_s0 + $0xc] sm:$0x3] }
 0xe5d   :  { %v2794_v63 = vadd.f32 1.0, %v4035_v56  ;;  %v4037_v0 = vpop.eup %4036  ;;  %v3025_v56 = vld [vmem:[%s5427_s0] sm:$0x3] }
 0xe5e   :  { %4038 = vrcp.f32 %v2787_v60 }
 0xe5f   :  { %4040 = vrcp.f32 %v2794_v63  ;;  %v3026_v63 = vld [vmem:[%s5427_s0 + $0x2] sm:$0x3] }
 0xe6b   :  { %v4039_v3 = vpop.eup %4038 }
 0xe6c   :  { %v2797_v6 = vmul.f32 %v4039_v3, %v4037_v0  ;;  %v4041_v7 = vpop.eup %4040  ;;  %v3087_v3 = vld [vmem:[#allocation10 + $0x78] sm:$0xff] }
 0xe6e   :  { %4042 = vtanh.f32 %v2797_v6 }
 0xe7b   :  { %v4043_v8 = vpop.eup %4042 }
 0xe7c   :  { %v2799_v10 = vmul.f32 %v4043_v8, %v4041_v7  ;;  %v3033_v7 = vsel %vm3011_vm2, %v3025_v56, 0.0  ;;  %v3034_v8 = vsel %vm3011_vm2, %v3026_v63, 0.0  ;;  %v3074_v56 = vld [vmem:[#allocation10 + $0x10] sm:$0xff] }
 0xe7e   :  { %v2805_v23 = vpack.c.bf16 %v2799_v10, %v2799_v10  ;;  %v2802_v24 = vsub.f32 %v3359_v9, %v2799_v10  ;;  %v3086_v9 = vld [vmem:[#allocation10 + $0x70] sm:$0xff] }
 0xe7f   :  { %v3027_v10 = vld [vmem:[%s5427_s0 + $0x4] sm:$0x3] }
 0xe80   :  { %2839 = vmatmul.mubr.bf16.vlgmr.msra.gmra.mxu0 %v2805_v23  ;;  %3593 = vmatmul.mubr.bf16.vlgmr.msra.gmra.mxu1 %v2805_v23  ;;  %v2803_v25 = vmul.f32 %v2802_v24, %v2802_v24  ;;  %v3085_v24 = vld [vmem:[#allocation10 + $0x68] sm:$0xff] }
 0xe81   :  { %2910 = vmatpush1.bf16.msra.mxu0 %v4100_v26  ;;  %3597 = vmatpush3.bf16.msra.mxu1 %v4101_v27  ;;  %v3036_v27 = vsel %vm3011_vm2, %v3027_v10, 0.0 }
 0xe82   :  { %2911 = vmatprep.subr.bf16.mxu0 %v4102_v28  ;;  %3598 = vmatprep.subr.bf16.mxu1 %v4263_v40  ;;  %v5271_v30 = vadd.f32 %v2803_v25, %v5221_v18  ;;  %v3035_v25 = vadd.f32 %v3034_v8, %v3033_v7  ;;  %v3084_v28 = vld [vmem:[#allocation10 + $0x60] sm:$0xff] }
 0xe83   :  { %2941 = vmatprep.mubr.bf16.mxu0 %v4261_v14  ;;  %3612 = vmatprep.mubr.msk.bf16.mxu1 %vm4264_vm0, %v4263_v40  ;;  %v4106_v14 = vld [vmem:[%s5432_s5 + $0x78] ss:$12 sps:$4 sm:$0xff]  }
 0xe84   :  { %v3072_v7 = vld [vmem:[#allocation10] sm:$0xff] }
 0xe85   :  { %2912 = vmatpush1.bf16.msra.mxu0 %v4103_v31  ;;  %3599 = vmatpush3.bf16.msra.mxu1 %v4104_v32  ;;  %v3028_v31 = vld [vmem:[%s5427_s0 + $0x6] sm:$0x3]  ;;  %v3083_v32 = vld [vmem:[#allocation10 + $0x58] sm:$0xff] }
 0xe86   :  { %2913 = vmatprep.subr.bf16.mxu0 %v4105_v19  ;;  %3600 = vmatprep.subr.bf16.mxu1 %v4263_v40  ;;  %v3037_v19 = vadd.f32 %v3036_v27, %v3035_v25 }
 0xe89   :  { %2914 = vmatpush1.bf16.msra.mxu0 %v4106_v14  ;;  %3601 = vmatpush3.bf16.msra.mxu1 %v4107_v33  ;;  %v3038_v14 = vsel %vm3011_vm2, %v3028_v31, 0.0  ;;  %v3029_v33 = vld [vmem:[%s5427_s0 + $0x8] sm:$0x3] }
 0xe8a   :  { %2915 = vmatprep.subr.bf16.mxu0 %v4108_v20  ;;  %3602 = vmatprep.subr.bf16.mxu1 %v4263_v40  ;;  %v3049_v20 = vld [vmem:[#allocation3 + $0x2] sm:$0x3] }
 0xe8d   :  { %2916 = vmatpush1.bf16.msra.mxu0 %v4109_v4  ;;  %3603 = vmatpush3.bf16.msra.mxu1 %v4110_v5  ;;  %v3081_v4 = vld [vmem:[#allocation10 + $0x48] sm:$0xff]  ;;  %v3039_v5 = vadd.f32 %v3038_v14, %v3037_v19 }
 0xe8e   :  { %2917 = vmatprep.subr.bf16.mxu0 %v4111_v21  ;;  %3604 = vmatprep.subr.bf16.mxu1 %v4263_v40  ;;  %v3048_v21 = vld [vmem:[#allocation3] sm:$0x3] }
 0xe91   :  { %2918 = vmatpush1.bf16.msra.mxu0 %v4112_v55  ;;  %3605 = vmatpush3.bf16.msra.mxu1 %v4113_v22  ;;  %v3050_v55 = vld [vmem:[#allocation3 + $0x4] sm:$0x3]  ;;  %v3040_v22 = vsel %vm3011_vm2, %v3029_v33, 0.0 }
 0xe92   :  { %2919 = vmatprep.subr.bf16.mxu0 %v4114_v53  ;;  %3606 = vmatprep.subr.bf16.mxu1 %v4263_v40  ;;  %v3057_v53 = vsel %vm3011_vm2, %v3049_v20, 0.0 }
 0xe95   :  { %2920 = vmatpush1.bf16.msra.mxu0 %v4115_v58  ;;  %3607 = vmatpush3.bf16.msra.mxu1 %v4116_v48  ;;  %v3080_v58 = vld [vmem:[#allocation10 + $0x40] sm:$0xff]  ;;  %v3030_v48 = vld [vmem:[%s5427_s0 + $0xa] sm:$0x3] }
 0xe96   :  { %2921 = vmatprep.subr.bf16.mxu0 %v4117_v35  ;;  %3608 = vmatprep.subr.bf16.mxu1 %v4263_v40  ;;  %v3051_v35 = vld [vmem:[#allocation3 + $0x6] sm:$0x3] }
 0xe99   :  { %2922 = vmatpush1.bf16.msra.mxu0 %v4118_v50  ;;  %3609 = vmatpush3.bf16.msra.mxu1 %v4119_v42  ;;  %v3056_v50 = vsel %vm3011_vm2, %v3048_v21, 0.0  ;;  %v3059_v42 = vsel %vm3011_vm2, %v3050_v55, 0.0 }
 0xe9a   :  { %2923 = vmatprep.subr.bf16.mxu0 %v4120_v36  ;;  %3610 = vmatprep.subr.bf16.mxu1 %v4263_v40  ;;  %v3079_v36 = vld [vmem:[#allocation10 + $0x38] sm:$0xff] }
 0xe9d   :  { %2924 = vmatpush1.bf16.msra.mxu0 %v4121_v2  ;;  %3611 = vmatpush3.bf16.msra.mxu1 %v4122_v45  ;;  %v3041_v2 = vadd.f32 %v3040_v22, %v3039_v5  ;;  %v3052_v45 = vld [vmem:[#allocation3 + $0x8] sm:$0x3] }
 0xe9e   :  { %3616 = vmatprep.subr.mxu0 %v4263_v40 }
 0xf40   :  { %v2840_v39 = vpop.f32.mrf.mxu0  ;;  %v2881_v49 = vpop.f32.mrf.mxu1 }
 0xf41   :  { %v2841_v11 = vadd.f32 %v2840_v39, %v5023_v17  ;;  %v2882_v52 = vadd.f32 %v2881_v49, %v5028_v29  ;;  %v3058_v39 = vadd.f32 %v3057_v53, %v3056_v50  ;;  %v3042_v49 = vsel %vm3011_vm2, %v3030_v48, 0.0 }
 0xf42   :  { %v2842_v12 = vpop.f32.mrf.mxu0  ;;  %v3594_v13 = vpop.f32.mrf.mxu1 }
 0xf43   :  { %v3360_v15 = vmul.f32 -1.442695, %v2841_v11  ;;  %v3361_v43 = vmul.f32 -1.442695, %v2882_v52  ;;  %v2843_v44 = vadd.f32 %v2842_v12, %v5033_v34  ;;  %v3061_v11 = vsel %vm3011_vm2, %v3051_v35, 0.0  ;;  %v3078_v12 = vld [vmem:[#allocation10 + $0x30] sm:$0xff] }
 0xf44   :  { %v2844_v1 = vpop.f32.mrf.mxu0  ;;  %v2884_v16 = vpop.f32.mrf.mxu1  ;;  %v3031_v13 = vld [vmem:[%s5427_s0 + $0xc] sm:$0x3]  ;;  %v3365_v35 = vld [vmem:[%s5427_s0 + $0xe] sm:$0x3] }
 0xf45   :  { %4044 = vpow2.f32 %v3360_v15  ;;  %v3053_v15 = vld [vmem:[#allocation3 + $0xa] sm:$0x3]  ;;  %v3060_v1 = vadd.f32 %v3059_v42, %v3058_v39  ;;  %v3063_v16 = vsel %vm3011_vm2, %v3052_v45, 0.0  ;;  %v3054_v52 = vld [vmem:[#allocation3 + $0xc] sm:$0x3] }
 0xf46   :  { %v2845_v18 = vpop.f32.mrf.mxu0  ;;  %v3595_v47 = vpop.f32.mrf.mxu1  ;;  %4046 = vpow2.f32 %v3361_v43 }
 0xf47   :  { %4048 = vtanh.f32 %v2843_v44  ;;  %v3077_v18 = vld [vmem:[#allocation10 + $0x28] sm:$0xff]  ;;  %v3043_v47 = vadd.f32 %v3042_v49, %v3041_v2  ;;  %v3062_v43 = vadd.f32 %v3061_v11, %v3060_v1  ;;  %v3044_v44 = vsel %vm3011_vm2, %v3031_v13, 0.0 }
 0xf52   :  { %v4045_v37 = vpop.eup %4044 }
 0xf53   :  { %v2890_v54 = vadd.f32 1.0, %v4045_v37  ;;  %v4047_v38 = vpop.eup %4046  ;;  %v3065_v37 = vsel %vm3011_vm2, %v3053_v15, 0.0 }
 0xf54   :  { %v2897_v41 = vadd.f32 1.0, %v4047_v38  ;;  %v4049_v62 = vpop.eup %4048  ;;  %v3032_v38 = vld [vmem:[%s5427_s0 + $0xe] sm:$0x3] }
 0xf55   :  { %4050 = vrcp.f32 %v2890_v54  ;;  %v3076_v54 = vld [vmem:[#allocation10 + $0x20] sm:$0xff] }
 0xf56   :  { %4052 = vrcp.f32 %v2897_v41  ;;  %v3055_v41 = vld [vmem:[#allocation3 + $0xe] sm:$0x3] }
 0xf62   :  { %v4051_v46 = vpop.eup %4050 }
 0xf63   :  { %v2900_v51 = vmul.f32 %v4051_v46, %v4049_v62  ;;  %v4053_v59 = vpop.eup %4052  ;;  %v3064_v62 = vadd.f32 %v3063_v16, %v3062_v43  ;;  %v3067_v46 = vsel %vm3011_vm2, %v3054_v52, 0.0 }
 0xf65   :  { %4054 = vtanh.f32 %v2900_v51  ;;  %v3075_v51 = vld [vmem:[#allocation10 + $0x18] sm:$0xff] }
 0xf72   :  { %v4055_v57 = vpop.eup %4054 }
 0xf73   :  { %v2902_v60 = vmul.f32 %v4055_v57, %v4053_v59  ;;  %v3045_v59 = vadd.f32 %v3044_v44, %v3043_v47  ;;  %v3066_v57 = vadd.f32 %v3065_v37, %v3064_v62 }
 0xf75   :  { %v2908_v0 = vpack.c.bf16 %v2902_v60, %v2902_v60  ;;  %v2905_v6 = vsub.f32 %v3362_v61, %v2902_v60  ;;  %v3046_v61 = vsel %vm3011_vm2, %v3032_v38, 0.0  ;;  %v3069_v60 = vsel %vm3011_vm2, %v3055_v41, 0.0 }
 0xf76   :  { %v3068_v63 = vadd.f32 %v3067_v46, %v3066_v57 }
 0xf77   :  { %2942 = vmatmul.mubr.bf16.vlgmr.msra.gmra.mxu0 %v2908_v0  ;;  %3613 = vmatmul.mubr.bf16.vlgmr.msra.gmra.mxu1 %v2908_v0  ;;  %v2906_v23 = vmul.f32 %v2905_v6, %v2905_v6  ;;  %v3073_v0 = vld [vmem:[#allocation10 + $0x8] sm:$0xff] }
 0xf78   :  { %3617 = vmatpush3.msra.mxu0 %v3087_v3  ;;  %3648 = vmatprep.mubr.msk.f32.mxu0 %vm4264_vm0, %v4263_v40  ;;  %v3047_v3 = vadd.f32 %v3046_v61, %v3045_v59  ;;  %v3070_v6 = vadd.f32 %v3069_v60, %v3068_v63 }
 0xf79   :  { %3618 = vmatprep.subr.mxu0 %v4263_v40  ;;  %v5364_v26 = vadd.f32 %v2906_v23, %v5271_v30  ;;  %v3082_v30 = vld [vmem:[#allocation10 + $0x50] sm:$0xff] }
 0xf7a   :  { %3619 = vmatpush3.msra.mxu0 %v3086_v9  ;;  %v3071_v8 = vadd.f32 %v3070_v6, %v3047_v3 }
 0xf7b   :  { %3620 = vmatprep.subr.mxu0 %v4263_v40 }
 0xf7c   :  { %3621 = vmatpush3.msra.mxu0 %v3085_v24 }
 0xf7d   :  { %3622 = vmatprep.subr.mxu0 %v4263_v40 }
 0xf7e   :  { %3623 = vmatpush3.msra.mxu0 %v3084_v28 }
 0xf7f   :  { %3624 = vmatprep.subr.mxu0 %v4263_v40 }
 0xf80   :  { %3625 = vmatpush3.msra.mxu0 %v3083_v32 }
 0xf81   :  { %3626 = vmatprep.subr.mxu0 %v4263_v40 }
 0xf82   :  { %3627 = vmatpush3.msra.mxu0 %v3082_v30 }
 0xf83   :  { %3628 = vmatprep.subr.mxu0 %v4263_v40 }
 0xf84   :  { %3629 = vmatpush3.msra.mxu0 %v3081_v4 }
 0xf85   :  { %3630 = vmatprep.subr.mxu0 %v4263_v40 }
 0xf86   :  { %3631 = vmatpush3.msra.mxu0 %v3080_v58 }
 0xf87   :  { %3632 = vmatprep.subr.mxu0 %v4263_v40 }
 0xf88   :  { %3633 = vmatpush3.msra.mxu0 %v3079_v36 }
 0xf89   :  { %3634 = vmatprep.subr.mxu0 %v4263_v40 }
 0xf8a   :  { %3635 = vmatpush3.msra.mxu0 %v3078_v12 }
 0xf8b   :  { %3636 = vmatprep.subr.mxu0 %v4263_v40 }
 0xf8c   :  { %3637 = vmatpush3.msra.mxu0 %v3077_v18 }
 0xf8d   :  { %3638 = vmatprep.subr.mxu0 %v4263_v40 }
 0xf8e   :  { %3639 = vmatpush3.msra.mxu0 %v3076_v54 }
 0xf8f   :  { %3640 = vmatprep.subr.mxu0 %v4263_v40 }
 0xf90   :  { %3641 = vmatpush3.msra.mxu0 %v3075_v51 }
 0xf91   :  { %3642 = vmatprep.subr.mxu0 %v4263_v40 }
 0xf92   :  { %3643 = vmatpush3.msra.mxu0 %v3074_v56 }
 0xf93   :  { %3644 = vmatprep.subr.mxu0 %v4263_v40 }
 0xf94   :  { %3645 = vmatpush3.msra.mxu0 %v3073_v0 }
 0xf95   :  { %3646 = vmatprep.subr.mxu0 %v4263_v40 }
 0xf96   :  { %3647 = vmatpush3.msra.mxu0 %v3072_v7 }
 0xf97   :  { %3649 = vmatmul.mubr.f32.vlgmr.msra.gmra.mxu0 %v3071_v8 }
0x1037   :  { %v2943_v9 = vpop.f32.mrf.mxu0  ;;  %v2984_v10 = vpop.f32.mrf.mxu1 }
0x1038   :  { %v2944_v23 = vadd.f32 %v2943_v9, %v5023_v17  ;;  %v2985_v14 = vadd.f32 %v2984_v10, %v5028_v29  ;;  %v3366_v17 = vld [vmem:[%s5435_s8] ss:$0 sm:$0xff]  ;;  %s4265_s8 = smov [#allocation12]  }
0x1039   :  { %v2945_v24 = vpop.f32.mrf.mxu0  ;;  %v3614_v25 = vpop.f32.mrf.mxu1  ;;  %s3172_s17 = sshll.u32 %s4265_s8, 4  ;;  %s3173_s17 = int_to_ptr.vmem [resolvable:$true] %s3172_s17 }
0x103a   :  { %v3363_v27 = vmul.f32 -1.442695, %v2944_v23  ;;  %v3364_v30 = vmul.f32 -1.442695, %v2985_v14  ;;  %v2946_v40 = vadd.f32 %v2945_v24, %v5033_v34  ;;  %s4203_s1 = scalar_lea.vmem %s3173_s17, 32  ;;  %p4208_p7 = scmp.lt.s32.totalorder %s3173_s17, %s3173_s17 }
0x103b   :  { %v2947_v28 = vpop.f32.mrf.mxu0  ;;  %v2987_v31 = vpop.f32.mrf.mxu1  ;;  %p4204_p6 = scmp.ne.s32.totalorder %s3173_s17, %s4203_s1  ;;  %p4209_p8 = scmp.lt.s32.totalorder %s4203_s1, %s4203_s1 }
0x103c   :  { %4056 = vpow2.f32 %v3363_v27 }
0x103d   :  { %v2948_v32 = vpop.f32.mrf.mxu0  ;;  %v3615_v19 = vpop.f32.mrf.mxu1  ;;  %4058 = vpow2.f32 %v3364_v30  ;;  %p4210_p9 = por %p4209_p8, %p4208_p7 }
0x103e   :  { %4060 = vtanh.f32 %v2946_v40 }
0x103f   :  { %p4211_p10 = pnand %p4210_p9, %p4204_p6 }
0x1049   :  { %v4057_v33 = vpop.eup %4056 }
0x104a   :  { %v2993_v20 = vadd.f32 1.0, %v4057_v33  ;;  %v4059_v4 = vpop.eup %4058 }
0x104b   :  { %v3000_v5 = vadd.f32 1.0, %v4059_v4  ;;  %v4061_v55 = vpop.eup %4060 }
0x104c   :  { %4062 = vrcp.f32 %v2993_v20 }
0x104d   :  { %4064 = vrcp.f32 %v3000_v5 }
0x1057   :  { %v3161_v21 = vpop.f32.mrf.mxu0 }
0x1058   :  { %v3162_v22 = vadd.f32 %v3366_v17, %v3161_v21 }
0x1059   :  { %v4063_v53 = vpop.eup %4062  ;;  %v3650_v58 = vpop.f32.mrf.mxu0 }
0x105a   :  { %v3003_v29 = vmul.f32 %v4063_v53, %v4061_v55  ;;  %3165 = vst [vmem:[#allocation12] sm:$0x3] %v3162_v22  ;;  %v4065_v34 = vpop.eup %4064 }
0x105c   :  { %4066 = vtanh.f32 %v3003_v29 }
0x1069   :  { %v4067_v48 = vpop.eup %4066 }
0x106a   :  { %v3005_v50 = vmul.f32 %v4067_v48, %v4065_v34 }
0x106c   :  { %v3008_v42 = vsub.f32 %v3365_v35, %v3005_v50 }
0x106e   :  { %v3009_v36 = vmul.f32 %v3008_v42, %v3008_v42 }
0x1070   :  { %v3010_v2 = vadd.f32 %v3009_v36, %v5364_v26 }
0x1072   :  { %v3012_v45 = vsel %vm3011_vm2, %v3010_v2, 0.0 }
0x1073   :  { %3013 = vadd.xlane.f32.xlu0 %v3012_v45 }
0x1074   :  { %4214 = shalt.err (!%p4211_p10)
}
0x1075   :  { %3175 = dma.vmem_to_hbm [thread:$0]  %s3173_s17, 32, %s5436_s9, [#allocation6]   ;;  %vm3023_vm3 = vcmask 0  }
0x1076   :  { %s4266_s4 = smov [#allocation13]  }
0x1077   :  { %s3182_s19 = sshll.u32 %s4266_s4, 4  ;;  %s3183_s19 = int_to_ptr.vmem [resolvable:$true] %s3182_s19 }
0x1078   :  { %s4223_s5 = scalar_lea.vmem %s3183_s19, 16  ;;  %s4227_s20 = scalar_lea.vmem %s3183_s19, 32 }
0x1079   :  { %p4224_p11 = scmp.ne.s32.totalorder %s3183_s19, %s4223_s5  ;;  %p4228_p12 = scmp.lt.s32.totalorder %s3183_s19, %s3183_s19 }
0x107a   :  { %p4229_p13 = scmp.lt.s32.totalorder %s4227_s20, %s4223_s5 }
0x107c   :  { %p4230_p0 = por %p4229_p13, %p4228_p12 }
0x107e   :  { %p4231_p1 = pnand %p4230_p0, %p4224_p11 }
0x10fc   :  { %v3014_v39 = vpop.xlane.xlu0 %3013 }
0x10fd   :  { %v3015_v26 = vsel %vm3011_vm2, %v3014_v39, 0.0 }
0x10fe   :  { %v3016_v49 = vrot.slane %v3015_v26, 4 }
0x1100   :  { %v3017_v11 = vadd.f32 %v3016_v49, %v3015_v26 }
0x1102   :  { %v3018_v12 = vrot.slane %v3017_v11, 2 }
0x1104   :  { %v3019_v13 = vadd.f32 %v3018_v12, %v3017_v11 }
0x1106   :  { %v3020_v15 = vrot.slane %v3019_v13, 1 }
0x1108   :  { %v3021_v1 = vadd.f32 %v3020_v15, %v3019_v13 }
0x110a   :  { %v3022_v16 = vmul.f32 0.00048828125, %v3021_v1 }
0x110c   :  { %3024 = vst.msk [vmem:[#allocation13] sm:$0x1] %vm3023_vm3, %v3022_v16 }
0x110d   :  { %4234 = shalt.err (!%p4231_p1)
}
0x110e   :  { %3185 = dma.vmem_to_hbm [thread:$0]  %s3183_s19, 16, %s5437_s10, [#allocation14]  }
0x110f   :  { %4249 = dma.done.wait [#allocation6], 32  }
0x1110   :  { %4250 = vsyncadd [#allocation6], 4294967264 }
0x1111   :  { %4251 = dma.done.wait [#allocation14], 16  }
0x1112   :  { %4252 = vsyncadd [#allocation14], 4294967280 }
0x1113   :  { %3192 = vsyncpa [#allocation5], 1 }
0x1114   :  { %3193 = vsyncpa [#allocation8], 1 }
0x1115   :  { %3194 = vsyncpa [#allocation11], 1 }
0x1116   :  { %3195 = vsyncpa [#allocation6], 1 }
0x1117   :  { %3196 = vsyncpa [#allocation14], 1 }

</bundles_post_ra>
